<compile_context>
chip_gen: v7x
topology: tpu7x:2x2x1
jax: 0.10.0
libtpu: 0.0.40
codegen_flags: <defaults>
</compile_context>

<pallas_src>
import functools

import jax
import jax.numpy as jnp
from jax import lax
from jax.experimental import pallas as pl
from jax.experimental.pallas import tpu as pltpu

BN_EPS = 1e-5


# ---------------- kernel 1: (im2col) matmul + bias + ReLU (stride-2 stem conv) ----------------

def _matmul_bias_relu_kernel(x_ref, w_ref, b_ref, o_ref):
    # bf16 MXU operands, f32 accumulation; bias + ReLU fused epilogue.
    x = x_ref[...].astype(jnp.bfloat16)
    acc = jnp.dot(x, w_ref[...], preferred_element_type=jnp.float32)
    o_ref[...] = jnp.maximum(acc + b_ref[...], 0.0).astype(o_ref.dtype)


def matmul_bias_relu(x, w_bf16, b, tm=256):
    m, k = x.shape
    n = w_bf16.shape[1]
    mp = pl.cdiv(m, tm) * tm               # cdiv + padded tail (no giant single block)
    if mp != m:
        x = jnp.pad(x, ((0, mp - m), (0, 0)))
    out = pl.pallas_call(
        _matmul_bias_relu_kernel,
        out_shape=jax.ShapeDtypeStruct((mp, n), jnp.float32),
        grid=(mp // tm,),
        in_specs=[pl.BlockSpec((tm, k), lambda i: (i, 0)),
                  pl.BlockSpec((k, n), lambda i: (0, 0)),
                  pl.BlockSpec((1, n), lambda i: (0, 0))],
        out_specs=pl.BlockSpec((tm, n), lambda i: (i, 0)),
        compiler_params=pltpu.CompilerParams(dimension_semantics=("parallel",)),
    )(x, w_bf16, b)
    return out[:m] if mp != m else out


# ------------- kernel 2: fused 3x3 / stride-1 / pad-1 conv + bias + ReLU (9-tap matmuls) -------------

def _conv3x3_s1_bias_relu_kernel(x_ref, w_ref, b_ref, o_ref, *, TR, W, Cout):
    # x_ref: (1, H+2, W+2, Cin) padded image, resident in VMEM for the whole batch item.
    # Output row tile [r0, r0+TR); 9 tap matmuls accumulate into an f32 accumulator.
    r0 = pl.program_id(1) * TR
    acc = jnp.zeros((TR * W, Cout), jnp.float32)
    for dh in range(3):
        rows = x_ref[0, pl.ds(r0 + dh, TR), :, :].astype(jnp.bfloat16)   # (TR, W+2, Cin)
        for dw in range(3):
            slab = rows[:, dw:dw + W, :].reshape(TR * W, -1)             # (TR*W, Cin)
            acc = acc + jnp.dot(slab, w_ref[dh * 3 + dw],
                                preferred_element_type=jnp.float32)
    y = jnp.maximum(acc + b_ref[...], 0.0)
    o_ref[0] = y.reshape(TR, W, Cout).astype(o_ref.dtype)


def conv3x3_s1_bias_relu(x, w9_bf16, b):
    B, H, W, Cin = x.shape
    Cout = w9_bf16.shape[-1]
    xp = jnp.pad(x, ((0, 0), (1, 1), (1, 1), (0, 0)))                    # zero pad = conv padding 1
    Hp, Wp = H + 2, W + 2
    # Row tile chosen so the matmul M dimension (TR*W) is ~256 and the grid is deep.
    tr = min(H, max(1, 256 // W))
    while H % tr:
        tr -= 1
    kernel = functools.partial(_conv3x3_s1_bias_relu_kernel, TR=tr, W=W, Cout=Cout)
    return pl.pallas_call(
        kernel,
        out_shape=jax.ShapeDtypeStruct((B, H, W, Cout), jnp.float32),
        grid=(B, H // tr),
        in_specs=[pl.BlockSpec((1, Hp, Wp, Cin), lambda bi, ri: (bi, 0, 0, 0)),   # resident per batch
                  pl.BlockSpec((9, Cin, Cout), lambda bi, ri: (0, 0, 0)),
                  pl.BlockSpec((1, Cout), lambda bi, ri: (0, 0))],
        out_specs=pl.BlockSpec((1, tr, W, Cout), lambda bi, ri: (bi, ri, 0, 0)),
        compiler_params=pltpu.CompilerParams(
            dimension_semantics=("parallel", "arbitrary")),
    )(xp, w9_bf16, b)


# ------------------------- kernel 3: MaxPool 3x3 / stride-2 / pad-1 -------------------------

def _maxpool3x3_s2_kernel(xe_ref, xo_ref, o_ref, *, Ho, Wo):
    # xe/xo: even/odd padded columns, shape (1, 2*Ho+2, Wo+1, C).
    xe = xe_ref[0]
    xo = xo_ref[0]
    # max over the 3 columns of each window (cols 2j, 2j+1, 2j+2 of the padded input)
    colmax = jnp.maximum(jnp.maximum(xe[:, :Wo, :], xo[:, :Wo, :]), xe[:, 1:Wo + 1, :])
    out = None
    for dh in range(3):
        # rows 2i+dh via a layout-free leading-dim reshape (no strided loads)
        t = colmax[dh:dh + 2 * Ho].reshape(Ho, 2, Wo, colmax.shape[-1])[:, 0]
        out = t if out is None else jnp.maximum(out, t)
    o_ref[0] = out.astype(o_ref.dtype)


def maxpool3x3_s2(x):
    B, H, W, C = x.shape
    assert H % 2 == 0 and W % 2 == 0
    Ho, Wo = H // 2, W // 2
    # Padding value: input is post-ReLU (>= 0), so a large negative constant is
    # exactly equivalent to PyTorch's implicit -inf padding.
    xp = jnp.pad(x, ((0, 0), (1, 1), (1, 1), (0, 0)), constant_values=-1e30)
    xe = xp[:, :, 0::2, :]                                            # (B, H+2, Wo+1, C)
    xo = xp[:, :, 1::2, :]                                            # (B, H+2, Wo+1, C)
    kernel = functools.partial(_maxpool3x3_s2_kernel, Ho=Ho, Wo=Wo)
    return pl.pallas_call(
        kernel,
        out_shape=jax.ShapeDtypeStruct((B, Ho, Wo, C), x.dtype),
        grid=(B,),
        in_specs=[pl.BlockSpec((1, H + 2, Wo + 1, C), lambda bi: (bi, 0, 0, 0)),
                  pl.BlockSpec((1, H + 2, Wo + 1, C), lambda bi: (bi, 0, 0, 0))],
        out_specs=pl.BlockSpec((1, Ho, Wo, C), lambda bi: (bi, 0, 0, 0)),
        compiler_params=pltpu.CompilerParams(dimension_semantics=("parallel",)),
    )(xe, xo)


# ----------------------------------- glue (plain JAX) -----------------------------------

def _im2col_s2(x):
    """im2col for the 3x3 / stride-2 / pad-1 stem conv (Cin=3, so the expansion is tiny)."""
    B, H, W, C = x.shape
    Ho, Wo = (H + 1) // 2, (W + 1) // 2
    xp = jnp.pad(x, ((0, 0), (1, 1), (1, 1), (0, 0)))
    taps = [xp[:, dh:dh + 2 * Ho:2, dw:dw + 2 * Wo:2, :]
            for dh in range(3) for dw in range(3)]
    cols = jnp.stack(taps, axis=3)                                    # (B, Ho, Wo, 9, C)
    return cols.reshape(B * Ho * Wo, 9 * C), Ho, Wo


def _fold_bn(w_hwio, bn):
    """Fold eval-mode BatchNorm into the (bias-free) conv: exact algebraic fold."""
    scale = bn["g"] / jnp.sqrt(bn["v"] + BN_EPS)                      # (Cout,)
    return w_hwio * scale, bn["b"] - bn["m"] * scale


def conv_tokenizer(x, params):
    """NHWC forward of ConvTokenizer (eval mode)."""
    B, H, W, Cin = x.shape
    w1, b1 = _fold_bn(params["conv1_w"], params["bn1"])
    w2, b2 = _fold_bn(params["conv2_w"], params["bn2"])
    w3, b3 = _fold_bn(params["conv3_w"], params["bn3"])
    c1 = w1.shape[-1]

    # conv1 (3->c1, stride 2): im2col in JAX (3-channel input, negligible expansion)
    # + fused matmul+bias+ReLU kernel with 256-row tiles.
    cols, Ho, Wo = _im2col_s2(x)
    y = matmul_bias_relu(cols, w1.reshape(9 * Cin, c1).astype(jnp.bfloat16),
                         b1.reshape(1, -1))
    y = y.reshape(B, Ho, Wo, c1)

    # conv2 / conv3 (stride 1): fused in-kernel 9-tap conv — no HBM im2col.
    y = conv3x3_s1_bias_relu(y, w2.reshape(9, c1, -1).astype(jnp.bfloat16),
                             b2.reshape(1, -1))
    y = conv3x3_s1_bias_relu(y, w3.reshape(9, c1, -1).astype(jnp.bfloat16),
                             b3.reshape(1, -1))

    # MaxPool 3x3 / stride 2 / pad 1
    return maxpool3x3_s2(y)


# ----------------------------------- params & reference -----------------------------------

def init_params(key, in_channels=3, embedding_dim=64):
    c1 = embedding_dim // 2

    def nrm(k, shape, s):
        return s * jax.random.normal(k, shape, jnp.float32)

    ks = jax.random.split(key, 15)

    def bn(k0, k1, k2, k3, c):
        return dict(g=1.0 + nrm(k0, (c,), 0.1), b=nrm(k1, (c,), 0.1),
                    m=nrm(k2, (c,), 0.1), v=1.0 + jnp.abs(nrm(k3, (c,), 0.1)))

    return dict(
        conv1_w=nrm(ks[0], (3, 3, in_channels, c1), 0.2),
        bn1=bn(ks[1], ks[2], ks[3], ks[4], c1),
        conv2_w=nrm(ks[5], (3, 3, c1, c1), 0.1),
        bn2=bn(ks[6], ks[7], ks[8], ks[9], c1),
        conv3_w=nrm(ks[10], (3, 3, c1, embedding_dim), 0.1),
        bn3=bn(ks[11], ks[12], ks[13], ks[14], embedding_dim),
    )


def ref_conv_tokenizer(x, params):
    """Pure-JAX f32/HIGHEST reference of the PyTorch forward (eval mode), NHWC."""
    HI = lax.Precision.HIGHEST
    dn = ("NHWC", "HWIO", "NHWC")

    def bn(v, p):
        return (v - p["m"]) / jnp.sqrt(p["v"] + BN_EPS) * p["g"] + p["b"]

    def conv(v, w, stride):
        return lax.conv_general_dilated(v, w, (stride, stride), ((1, 1), (1, 1)),
                                        dimension_numbers=dn, precision=HI)

    y = jax.nn.relu(bn(conv(x, params["conv1_w"], 2), params["bn1"]))
    y = jax.nn.relu(bn(conv(y, params["conv2_w"], 1), params["bn2"]))
    y = jax.nn.relu(bn(conv(y, params["conv3_w"], 1), params["bn3"]))
    return lax.reduce_window(y, -jnp.inf, lax.max, (1, 3, 3, 1), (1, 2, 2, 1),
                             ((0, 0), (1, 1), (1, 1), (0, 0)))


# ------------------------------------------ main ------------------------------------------

if __name__ == "__main__":
    B, H, W = 2, 32, 32
    in_channels, embedding_dim = 3, 64

    key = jax.random.PRNGKey(0)
    kx, kp = jax.random.split(key)
    x = jax.random.normal(kx, (B, H, W, in_channels), jnp.float32)
    params = init_params(kp, in_channels, embedding_dim)

    out = jax.jit(conv_tokenizer)(x, params)
    out = jax.block_until_ready(out)
    assert out.shape == (B, H // 4, W // 4, embedding_dim), out.shape

    ref = ref_conv_tokenizer(x, params)
    err = float(jnp.max(jnp.abs(out - ref)))
    scale = float(jnp.max(jnp.abs(ref)))
    # bf16 MXU operands with f32 accumulation => small, bounded deviation vs f32 reference.
    assert err <= 3e-2 * scale + 3e-2, f"mismatch vs reference: max abs err {err} (scale {scale})"

    print("KERNEL_OK")
</pallas_src>

<mosaic_0001>
module attributes {stable_mosaic.version = 11 : i64} {
  func.func @_matmul_bias_relu_kernel(%arg0: i32, %arg1: memref<256x27xf32, #tpu.memory_space<vmem>>, %arg2: memref<27x32xbf16, #tpu.memory_space<vmem>>, %arg3: memref<1x32xf32, #tpu.memory_space<vmem>>, %arg4: memref<256x32xf32, #tpu.memory_space<vmem>>) attributes {dimension_semantics = [#tpu.dimension_semantics<parallel>], iteration_bounds = array<i64: 2>, scalar_prefetch = 0 : i64, scratch_operands = 0 : i64, tpu.core_type = #tpu.core_type<tc>, window_params = [{transform_indices = @transform_0, window_bounds = array<i64: 256, 27>}, {pipeline_mode = #tpu.pipeline_mode<synchronous>, transform_indices = @transform_1, window_bounds = array<i64: 27, 32>}, {pipeline_mode = #tpu.pipeline_mode<synchronous>, transform_indices = @transform_2, window_bounds = array<i64: 1, 32>}, {transform_indices = @transform_3, window_bounds = array<i64: 256, 32>}]} {
    %c0 = arith.constant 0 : index
    %c0_0 = arith.constant 0 : index
    %0 = vector.load %arg1[%c0, %c0_0] : memref<256x27xf32, #tpu.memory_space<vmem>>, vector<256x27xf32>
    %1 = arith.truncf %0 : vector<256x27xf32> to vector<256x27xbf16>
    %c0_1 = arith.constant 0 : index
    %c0_2 = arith.constant 0 : index
    %2 = vector.load %arg2[%c0_1, %c0_2] : memref<27x32xbf16, #tpu.memory_space<vmem>>, vector<27x32xbf16>
    %cst = arith.constant dense<0.000000e+00> : vector<256x32xf32>
    %3 = tpu.matmul %1, %2, %cst {dimension_numbers = #tpu.dot_dimension_numbers<[1], [0], [0], [1], [0, 0, 1, 1], [], []>} : vector<256x27xbf16>, vector<27x32xbf16>, vector<256x32xf32> -> vector<256x32xf32>
    %c0_3 = arith.constant 0 : index
    %c0_4 = arith.constant 0 : index
    %4 = vector.load %arg3[%c0_3, %c0_4] : memref<1x32xf32, #tpu.memory_space<vmem>>, vector<1x32xf32>
    %5 = vector.broadcast %4 : vector<1x32xf32> to vector<256x32xf32>
    %6 = arith.addf %3, %5 : vector<256x32xf32>
    %cst_5 = arith.constant 0.000000e+00 : f32
    %7 = vector.broadcast %cst_5 : f32 to vector<256x32xf32>
    %8 = arith.maximumf %6, %7 : vector<256x32xf32>
    %c0_6 = arith.constant 0 : index
    %c0_7 = arith.constant 0 : index
    %9 = vector.load %arg4[%c0_6, %c0_7] : memref<256x32xf32, #tpu.memory_space<vmem>>, vector<256x32xf32>
    tpu.vector_store %arg4[%c0_6, %c0_7], %8 {strides = array<i32>} : memref<256x32xf32, #tpu.memory_space<vmem>>, vector<256x32xf32>,
    return
  }
  func.func @transform_0(%arg0: i32) -> (i32, i32) {
    %c0_i32 = arith.constant 0 : i32
    %c0_i32_0 = arith.constant 0 : i32
    return %arg0, %c0_i32 : i32, i32
  }
  func.func @transform_1(%arg0: i32) -> (i32, i32) {
    %c0_i32 = arith.constant 0 : i32
    %c0_i32_0 = arith.constant 0 : i32
    %c0_i32_1 = arith.constant 0 : i32
    return %c0_i32, %c0_i32_0 : i32, i32
  }
  func.func @transform_2(%arg0: i32) -> (i32, i32) {
    %c0_i32 = arith.constant 0 : i32
    %c0_i32_0 = arith.constant 0 : i32
    %c0_i32_1 = arith.constant 0 : i32
    return %c0_i32, %c0_i32_0 : i32, i32
  }
  func.func @transform_3(%arg0: i32) -> (i32, i32) {
    %c0_i32 = arith.constant 0 : i32
    %c0_i32_0 = arith.constant 0 : i32
    return %arg0, %c0_i32 : i32, i32
  }
}

module attributes {stable_mosaic.version = 11 : i64} {
  func.func @_conv3x3_s1_bias_relu_kernel(%arg0: i32, %arg1: i32, %arg2: memref<1x18x18x32xf32, #tpu.memory_space<vmem>>, %arg3: memref<9x32x32xbf16, #tpu.memory_space<vmem>>, %arg4: memref<1x32xf32, #tpu.memory_space<vmem>>, %arg5: memref<1x16x16x32xf32, #tpu.memory_space<vmem>>) attributes {dimension_semantics = [#tpu.dimension_semantics<parallel>, #tpu.dimension_semantics<arbitrary>], iteration_bounds = array<i64: 2, 1>, scalar_prefetch = 0 : i64, scratch_operands = 0 : i64, tpu.core_type = #tpu.core_type<tc>, window_params = [{transform_indices = @transform_0, window_bounds = array<i64: 1, 18, 18, 32>}, {pipeline_mode = #tpu.pipeline_mode<synchronous>, transform_indices = @transform_1, window_bounds = array<i64: 9, 32, 32>}, {pipeline_mode = #tpu.pipeline_mode<synchronous>, transform_indices = @transform_2, window_bounds = array<i64: 1, 32>}, {transform_indices = @transform_3, window_bounds = array<i64: 1, 16, 16, 32>}]} {
    %c16_i32 = arith.constant 16 : i32
    %0 = arith.muli %arg1, %c16_i32 : i32
    %cst = arith.constant 0.000000e+00 : f32
    %1 = vector.broadcast %cst : f32 to vector<256x32xf32>
    %c0_i32 = arith.constant 0 : i32
    %2 = arith.addi %0, %c0_i32 : i32
    %c0 = arith.constant 0 : index
    %3 = arith.index_cast %2 : i32 to index
    %c0_0 = arith.constant 0 : index
    %c0_1 = arith.constant 0 : index
    %4 = vector.load %arg2[%c0, %3, %c0_0, %c0_1] : memref<1x18x18x32xf32, #tpu.memory_space<vmem>>, vector<1x16x18x32xf32>
    %5 = vector.shape_cast %4 : vector<1x16x18x32xf32> to vector<16x18x32xf32>
    %6 = arith.truncf %5 : vector<16x18x32xf32> to vector<16x18x32xbf16>
    %7 = vector.extract_strided_slice %6 {offsets = [0, 0, 0], sizes = [16, 16, 32], strides = [1, 1, 1]} : vector<16x18x32xbf16> to vector<16x16x32xbf16>
    %8 = vector.shape_cast %7 : vector<16x16x32xbf16> to vector<256x32xbf16>
    %c0_2 = arith.constant 0 : index
    %c0_3 = arith.constant 0 : index
    %c0_4 = arith.constant 0 : index
    %9 = vector.load %arg3[%c0_2, %c0_3, %c0_4] : memref<9x32x32xbf16, #tpu.memory_space<vmem>>, vector<1x32x32xbf16>
    %10 = vector.shape_cast %9 : vector<1x32x32xbf16> to vector<32x32xbf16>
    %cst_5 = arith.constant dense<0.000000e+00> : vector<256x32xf32>
    %11 = tpu.matmul %8, %10, %cst_5 {dimension_numbers = #tpu.dot_dimension_numbers<[1], [0], [0], [1], [0, 0, 1, 1], [], []>} : vector<256x32xbf16>, vector<32x32xbf16>, vector<256x32xf32> -> vector<256x32xf32>
    %12 = arith.addf %1, %11 : vector<256x32xf32>
    %13 = vector.extract_strided_slice %6 {offsets = [0, 1, 0], sizes = [16, 16, 32], strides = [1, 1, 1]} : vector<16x18x32xbf16> to vector<16x16x32xbf16>
    %14 = vector.shape_cast %13 : vector<16x16x32xbf16> to vector<256x32xbf16>
    %c1 = arith.constant 1 : index
    %c0_6 = arith.constant 0 : index
    %c0_7 = arith.constant 0 : index
    %15 = vector.load %arg3[%c1, %c0_6, %c0_7] : memref<9x32x32xbf16, #tpu.memory_space<vmem>>, vector<1x32x32xbf16>
    %16 = vector.shape_cast %15 : vector<1x32x32xbf16> to vector<32x32xbf16>
    %cst_8 = arith.constant dense<0.000000e+00> : vector<256x32xf32>
    %17 = tpu.matmul %14, %16, %cst_8 {dimension_numbers = #tpu.dot_dimension_numbers<[1], [0], [0], [1], [0, 0, 1, 1], [], []>} : vector<256x32xbf16>, vector<32x32xbf16>, vector<256x32xf32> -> vector<256x32xf32>
    %18 = arith.addf %12, %17 : vector<256x32xf32>
    %19 = vector.extract_strided_slice %6 {offsets = [0, 2, 0], sizes = [16, 16, 32], strides = [1, 1, 1]} : vector<16x18x32xbf16> to vector<16x16x32xbf16>
    %20 = vector.shape_cast %19 : vector<16x16x32xbf16> to vector<256x32xbf16>
    %c2 = arith.constant 2 : index
    %c0_9 = arith.constant 0 : index
    %c0_10 = arith.constant 0 : index
    %21 = vector.load %arg3[%c2, %c0_9, %c0_10] : memref<9x32x32xbf16, #tpu.memory_space<vmem>>, vector<1x32x32xbf16>
    %22 = vector.shape_cast %21 : vector<1x32x32xbf16> to vector<32x32xbf16>
    %cst_11 = arith.constant dense<0.000000e+00> : vector<256x32xf32>
    %23 = tpu.matmul %20, %22, %cst_11 {dimension_numbers = #tpu.dot_dimension_numbers<[1], [0], [0], [1], [0, 0, 1, 1], [], []>} : vector<256x32xbf16>, vector<32x32xbf16>, vector<256x32xf32> -> vector<256x32xf32>
    %24 = arith.addf %18, %23 : vector<256x32xf32>
    %c1_i32 = arith.constant 1 : i32
    %25 = arith.addi %0, %c1_i32 : i32
    %c0_12 = arith.constant 0 : index
    %26 = arith.index_cast %25 : i32 to index
    %c0_13 = arith.constant 0 : index
    %c0_14 = arith.constant 0 : index
    %27 = vector.load %arg2[%c0_12, %26, %c0_13, %c0_14] : memref<1x18x18x32xf32, #tpu.memory_space<vmem>>, vector<1x16x18x32xf32>
    %28 = vector.shape_cast %27 : vector<1x16x18x32xf32> to vector<16x18x32xf32>
    %29 = arith.truncf %28 : vector<16x18x32xf32> to vector<16x18x32xbf16>
    %30 = vector.extract_strided_slice %29 {offsets = [0, 0, 0], sizes = [16, 16, 32], strides = [1, 1, 1]} : vector<16x18x32xbf16> to vector<16x16x32xbf16>
    %31 = vector.shape_cast %30 : vector<16x16x32xbf16> to vector<256x32xbf16>
    %c3 = arith.constant 3 : index
    %c0_15 = arith.constant 0 : index
    %c0_16 = arith.constant 0 : index
    %32 = vector.load %arg3[%c3, %c0_15, %c0_16] : memref<9x32x32xbf16, #tpu.memory_space<vmem>>, vector<1x32x32xbf16>
    %33 = vector.shape_cast %32 : vector<1x32x32xbf16> to vector<32x32xbf16>
    %cst_17 = arith.constant dense<0.000000e+00> : vector<256x32xf32>
    %34 = tpu.matmul %31, %33, %cst_17 {dimension_numbers = #tpu.dot_dimension_numbers<[1], [0], [0], [1], [0, 0, 1, 1], [], []>} : vector<256x32xbf16>, vector<32x32xbf16>, vector<256x32xf32> -> vector<256x32xf32>
    %35 = arith.addf %24, %34 : vector<256x32xf32>
    %36 = vector.extract_strided_slice %29 {offsets = [0, 1, 0], sizes = [16, 16, 32], strides = [1, 1, 1]} : vector<16x18x32xbf16> to vector<16x16x32xbf16>
    %37 = vector.shape_cast %36 : vector<16x16x32xbf16> to vector<256x32xbf16>
    %c4 = arith.constant 4 : index
    %c0_18 = arith.constant 0 : index
    %c0_19 = arith.constant 0 : index
    %38 = vector.load %arg3[%c4, %c0_18, %c0_19] : memref<9x32x32xbf16, #tpu.memory_space<vmem>>, vector<1x32x32xbf16>
    %39 = vector.shape_cast %38 : vector<1x32x32xbf16> to vector<32x32xbf16>
    %cst_20 = arith.constant dense<0.000000e+00> : vector<256x32xf32>
    %40 = tpu.matmul %37, %39, %cst_20 {dimension_numbers = #tpu.dot_dimension_numbers<[1], [0], [0], [1], [0, 0, 1, 1], [], []>} : vector<256x32xbf16>, vector<32x32xbf16>, vector<256x32xf32> -> vector<256x32xf32>
    %41 = arith.addf %35, %40 : vector<256x32xf32>
    %42 = vector.extract_strided_slice %29 {offsets = [0, 2, 0], sizes = [16, 16, 32], strides = [1, 1, 1]} : vector<16x18x32xbf16> to vector<16x16x32xbf16>
    %43 = vector.shape_cast %42 : vector<16x16x32xbf16> to vector<256x32xbf16>
    %c5 = arith.constant 5 : index
    %c0_21 = arith.constant 0 : index
    %c0_22 = arith.constant 0 : index
    %44 = vector.load %arg3[%c5, %c0_21, %c0_22] : memref<9x32x32xbf16, #tpu.memory_space<vmem>>, vector<1x32x32xbf16>
    %45 = vector.shape_cast %44 : vector<1x32x32xbf16> to vector<32x32xbf16>
    %cst_23 = arith.constant dense<0.000000e+00> : vector<256x32xf32>
    %46 = tpu.matmul %43, %45, %cst_23 {dimension_numbers = #tpu.dot_dimension_numbers<[1], [0], [0], [1], [0, 0, 1, 1], [], []>} : vector<256x32xbf16>, vector<32x32xbf16>, vector<256x32xf32> -> vector<256x32xf32>
    %47 = arith.addf %41, %46 : vector<256x32xf32>
    %c2_i32 = arith.constant 2 : i32
    %48 = arith.addi %0, %c2_i32 : i32
    %c0_24 = arith.constant 0 : index
    %49 = arith.index_cast %48 : i32 to index
    %c0_25 = arith.constant 0 : index
    %c0_26 = arith.constant 0 : index
    %50 = vector.load %arg2[%c0_24, %49, %c0_25, %c0_26] : memref<1x18x18x32xf32, #tpu.memory_space<vmem>>, vector<1x16x18x32xf32>
    %51 = vector.shape_cast %50 : vector<1x16x18x32xf32> to vector<16x18x32xf32>
    %52 = arith.truncf %51 : vector<16x18x32xf32> to vector<16x18x32xbf16>
    %53 = vector.extract_strided_slice %52 {offsets = [0, 0, 0], sizes = [16, 16, 32], strides = [1, 1, 1]} : vector<16x18x32xbf16> to vector<16x16x32xbf16>
    %54 = vector.shape_cast %53 : vector<16x16x32xbf16> to vector<256x32xbf16>
    %c6 = arith.constant 6 : index
    %c0_27 = arith.constant 0 : index
    %c0_28 = arith.constant 0 : index
    %55 = vector.load %arg3[%c6, %c0_27, %c0_28] : memref<9x32x32xbf16, #tpu.memory_space<vmem>>, vector<1x32x32xbf16>
    %56 = vector.shape_cast %55 : vector<1x32x32xbf16> to vector<32x32xbf16>
    %cst_29 = arith.constant dense<0.000000e+00> : vector<256x32xf32>
    %57 = tpu.matmul %54, %56, %cst_29 {dimension_numbers = #tpu.dot_dimension_numbers<[1], [0], [0], [1], [0, 0, 1, 1], [], []>} : vector<256x32xbf16>, vector<32x32xbf16>, vector<256x32xf32> -> vector<256x32xf32>
    %58 = arith.addf %47, %57 : vector<256x32xf32>
    %59 = vector.extract_strided_slice %52 {offsets = [0, 1, 0], sizes = [16, 16, 32], strides = [1, 1, 1]} : vector<16x18x32xbf16> to vector<16x16x32xbf16>
    %60 = vector.shape_cast %59 : vector<16x16x32xbf16> to vector<256x32xbf16>
    %c7 = arith.constant 7 : index
    %c0_30 = arith.constant 0 : index
    %c0_31 = arith.constant 0 : index
    %61 = vector.load %arg3[%c7, %c0_30, %c0_31] : memref<9x32x32xbf16, #tpu.memory_space<vmem>>, vector<1x32x32xbf16>
    %62 = vector.shape_cast %61 : vector<1x32x32xbf16> to vector<32x32xbf16>
    %cst_32 = arith.constant dense<0.000000e+00> : vector<256x32xf32>
    %63 = tpu.matmul %60, %62, %cst_32 {dimension_numbers = #tpu.dot_dimension_numbers<[1], [0], [0], [1], [0, 0, 1, 1], [], []>} : vector<256x32xbf16>, vector<32x32xbf16>, vector<256x32xf32> -> vector<256x32xf32>
    %64 = arith.addf %58, %63 : vector<256x32xf32>
    %65 = vector.extract_strided_slice %52 {offsets = [0, 2, 0], sizes = [16, 16, 32], strides = [1, 1, 1]} : vector<16x18x32xbf16> to vector<16x16x32xbf16>
    %66 = vector.shape_cast %65 : vector<16x16x32xbf16> to vector<256x32xbf16>
    %c8 = arith.constant 8 : index
    %c0_33 = arith.constant 0 : index
    %c0_34 = arith.constant 0 : index
    %67 = vector.load %arg3[%c8, %c0_33, %c0_34] : memref<9x32x32xbf16, #tpu.memory_space<vmem>>, vector<1x32x32xbf16>
    %68 = vector.shape_cast %67 : vector<1x32x32xbf16> to vector<32x32xbf16>
    %cst_35 = arith.constant dense<0.000000e+00> : vector<256x32xf32>
    %69 = tpu.matmul %66, %68, %cst_35 {dimension_numbers = #tpu.dot_dimension_numbers<[1], [0], [0], [1], [0, 0, 1, 1], [], []>} : vector<256x32xbf16>, vector<32x32xbf16>, vector<256x32xf32> -> vector<256x32xf32>
    %70 = arith.addf %64, %69 : vector<256x32xf32>
    %c0_36 = arith.constant 0 : index
    %c0_37 = arith.constant 0 : index
    %71 = vector.load %arg4[%c0_36, %c0_37] : memref<1x32xf32, #tpu.memory_space<vmem>>, vector<1x32xf32>
    %72 = vector.broadcast %71 : vector<1x32xf32> to vector<256x32xf32>
    %73 = arith.addf %70, %72 : vector<256x32xf32>
    %cst_38 = arith.constant 0.000000e+00 : f32
    %74 = vector.broadcast %cst_38 : f32 to vector<256x32xf32>
    %75 = arith.maximumf %73, %74 : vector<256x32xf32>
    %76 = vector.shape_cast %75 : vector<256x32xf32> to vector<16x16x32xf32>
    %c0_39 = arith.constant 0 : index
    %c0_40 = arith.constant 0 : index
    %c0_41 = arith.constant 0 : index
    %c0_42 = arith.constant 0 : index
    %77 = vector.load %arg5[%c0_39, %c0_40, %c0_41, %c0_42] : memref<1x16x16x32xf32, #tpu.memory_space<vmem>>, vector<1x16x16x32xf32>
    %78 = vector.shape_cast %77 : vector<1x16x16x32xf32> to vector<16x16x32xf32>
    %79 = vector.shape_cast %76 : vector<16x16x32xf32> to vector<1x16x16x32xf32>
    tpu.vector_store %arg5[%c0_39, %c0_40, %c0_41, %c0_42], %79 {strides = array<i32>} : memref<1x16x16x32xf32, #tpu.memory_space<vmem>>, vector<1x16x16x32xf32>,
    return
  }
  func.func @transform_0(%arg0: i32, %arg1: i32) -> (i32, i32, i32, i32) {
    %c0_i32 = arith.constant 0 : i32
    %c0_i32_0 = arith.constant 0 : i32
    %c0_i32_1 = arith.constant 0 : i32
    %c0_i32_2 = arith.constant 0 : i32
    return %arg0, %c0_i32, %c0_i32_0, %c0_i32_1 : i32, i32, i32, i32
  }
  func.func @transform_1(%arg0: i32, %arg1: i32) -> (i32, i32, i32) {
    %c0_i32 = arith.constant 0 : i32
    %c0_i32_0 = arith.constant 0 : i32
    %c0_i32_1 = arith.constant 0 : i32
    %c0_i32_2 = arith.constant 0 : i32
    return %c0_i32, %c0_i32_0, %c0_i32_1 : i32, i32, i32
  }
  func.func @transform_2(%arg0: i32, %arg1: i32) -> (i32, i32) {
    %c0_i32 = arith.constant 0 : i32
    %c0_i32_0 = arith.constant 0 : i32
    %c0_i32_1 = arith.constant 0 : i32
    return %c0_i32, %c0_i32_0 : i32, i32
  }
  func.func @transform_3(%arg0: i32, %arg1: i32) -> (i32, i32, i32, i32) {
    %c0_i32 = arith.constant 0 : i32
    %c0_i32_0 = arith.constant 0 : i32
    %c0_i32_1 = arith.constant 0 : i32
    return %arg0, %arg1, %c0_i32, %c0_i32_0 : i32, i32, i32, i32
  }
}

module attributes {stable_mosaic.version = 11 : i64} {
  func.func @_conv3x3_s1_bias_relu_kernel(%arg0: i32, %arg1: i32, %arg2: memref<1x18x18x32xf32, #tpu.memory_space<vmem>>, %arg3: memref<9x32x64xbf16, #tpu.memory_space<vmem>>, %arg4: memref<1x64xf32, #tpu.memory_space<vmem>>, %arg5: memref<1x16x16x64xf32, #tpu.memory_space<vmem>>) attributes {dimension_semantics = [#tpu.dimension_semantics<parallel>, #tpu.dimension_semantics<arbitrary>], iteration_bounds = array<i64: 2, 1>, scalar_prefetch = 0 : i64, scratch_operands = 0 : i64, tpu.core_type = #tpu.core_type<tc>, window_params = [{transform_indices = @transform_0, window_bounds = array<i64: 1, 18, 18, 32>}, {pipeline_mode = #tpu.pipeline_mode<synchronous>, transform_indices = @transform_1, window_bounds = array<i64: 9, 32, 64>}, {pipeline_mode = #tpu.pipeline_mode<synchronous>, transform_indices = @transform_2, window_bounds = array<i64: 1, 64>}, {transform_indices = @transform_3, window_bounds = array<i64: 1, 16, 16, 64>}]} {
    %c16_i32 = arith.constant 16 : i32
    %0 = arith.muli %arg1, %c16_i32 : i32
    %cst = arith.constant 0.000000e+00 : f32
    %1 = vector.broadcast %cst : f32 to vector<256x64xf32>
    %c0_i32 = arith.constant 0 : i32
    %2 = arith.addi %0, %c0_i32 : i32
    %c0 = arith.constant 0 : index
    %3 = arith.index_cast %2 : i32 to index
    %c0_0 = arith.constant 0 : index
    %c0_1 = arith.constant 0 : index
    %4 = vector.load %arg2[%c0, %3, %c0_0, %c0_1] : memref<1x18x18x32xf32, #tpu.memory_space<vmem>>, vector<1x16x18x32xf32>
    %5 = vector.shape_cast %4 : vector<1x16x18x32xf32> to vector<16x18x32xf32>
    %6 = arith.truncf %5 : vector<16x18x32xf32> to vector<16x18x32xbf16>
    %7 = vector.extract_strided_slice %6 {offsets = [0, 0, 0], sizes = [16, 16, 32], strides = [1, 1, 1]} : vector<16x18x32xbf16> to vector<16x16x32xbf16>
    %8 = vector.shape_cast %7 : vector<16x16x32xbf16> to vector<256x32xbf16>
    %c0_2 = arith.constant 0 : index
    %c0_3 = arith.constant 0 : index
    %c0_4 = arith.constant 0 : index
    %9 = vector.load %arg3[%c0_2, %c0_3, %c0_4] : memref<9x32x64xbf16, #tpu.memory_space<vmem>>, vector<1x32x64xbf16>
    %10 = vector.shape_cast %9 : vector<1x32x64xbf16> to vector<32x64xbf16>
    %cst_5 = arith.constant dense<0.000000e+00> : vector<256x64xf32>
    %11 = tpu.matmul %8, %10, %cst_5 {dimension_numbers = #tpu.dot_dimension_numbers<[1], [0], [0], [1], [0, 0, 1, 1], [], []>} : vector<256x32xbf16>, vector<32x64xbf16>, vector<256x64xf32> -> vector<256x64xf32>
    %12 = arith.addf %1, %11 : vector<256x64xf32>
    %13 = vector.extract_strided_slice %6 {offsets = [0, 1, 0], sizes = [16, 16, 32], strides = [1, 1, 1]} : vector<16x18x32xbf16> to vector<16x16x32xbf16>
    %14 = vector.shape_cast %13 : vector<16x16x32xbf16> to vector<256x32xbf16>
    %c1 = arith.constant 1 : index
    %c0_6 = arith.constant 0 : index
    %c0_7 = arith.constant 0 : index
    %15 = vector.load %arg3[%c1, %c0_6, %c0_7] : memref<9x32x64xbf16, #tpu.memory_space<vmem>>, vector<1x32x64xbf16>
    %16 = vector.shape_cast %15 : vector<1x32x64xbf16> to vector<32x64xbf16>
    %cst_8 = arith.constant dense<0.000000e+00> : vector<256x64xf32>
    %17 = tpu.matmul %14, %16, %cst_8 {dimension_numbers = #tpu.dot_dimension_numbers<[1], [0], [0], [1], [0, 0, 1, 1], [], []>} : vector<256x32xbf16>, vector<32x64xbf16>, vector<256x64xf32> -> vector<256x64xf32>
    %18 = arith.addf %12, %17 : vector<256x64xf32>
    %19 = vector.extract_strided_slice %6 {offsets = [0, 2, 0], sizes = [16, 16, 32], strides = [1, 1, 1]} : vector<16x18x32xbf16> to vector<16x16x32xbf16>
    %20 = vector.shape_cast %19 : vector<16x16x32xbf16> to vector<256x32xbf16>
    %c2 = arith.constant 2 : index
    %c0_9 = arith.constant 0 : index
    %c0_10 = arith.constant 0 : index
    %21 = vector.load %arg3[%c2, %c0_9, %c0_10] : memref<9x32x64xbf16, #tpu.memory_space<vmem>>, vector<1x32x64xbf16>
    %22 = vector.shape_cast %21 : vector<1x32x64xbf16> to vector<32x64xbf16>
    %cst_11 = arith.constant dense<0.000000e+00> : vector<256x64xf32>
    %23 = tpu.matmul %20, %22, %cst_11 {dimension_numbers = #tpu.dot_dimension_numbers<[1], [0], [0], [1], [0, 0, 1, 1], [], []>} : vector<256x32xbf16>, vector<32x64xbf16>, vector<256x64xf32> -> vector<256x64xf32>
    %24 = arith.addf %18, %23 : vector<256x64xf32>
    %c1_i32 = arith.constant 1 : i32
    %25 = arith.addi %0, %c1_i32 : i32
    %c0_12 = arith.constant 0 : index
    %26 = arith.index_cast %25 : i32 to index
    %c0_13 = arith.constant 0 : index
    %c0_14 = arith.constant 0 : index
    %27 = vector.load %arg2[%c0_12, %26, %c0_13, %c0_14] : memref<1x18x18x32xf32, #tpu.memory_space<vmem>>, vector<1x16x18x32xf32>
    %28 = vector.shape_cast %27 : vector<1x16x18x32xf32> to vector<16x18x32xf32>
    %29 = arith.truncf %28 : vector<16x18x32xf32> to vector<16x18x32xbf16>
    %30 = vector.extract_strided_slice %29 {offsets = [0, 0, 0], sizes = [16, 16, 32], strides = [1, 1, 1]} : vector<16x18x32xbf16> to vector<16x16x32xbf16>
    %31 = vector.shape_cast %30 : vector<16x16x32xbf16> to vector<256x32xbf16>
    %c3 = arith.constant 3 : index
    %c0_15 = arith.constant 0 : index
    %c0_16 = arith.constant 0 : index
    %32 = vector.load %arg3[%c3, %c0_15, %c0_16] : memref<9x32x64xbf16, #tpu.memory_space<vmem>>, vector<1x32x64xbf16>
    %33 = vector.shape_cast %32 : vector<1x32x64xbf16> to vector<32x64xbf16>
    %cst_17 = arith.constant dense<0.000000e+00> : vector<256x64xf32>
    %34 = tpu.matmul %31, %33, %cst_17 {dimension_numbers = #tpu.dot_dimension_numbers<[1], [0], [0], [1], [0, 0, 1, 1], [], []>} : vector<256x32xbf16>, vector<32x64xbf16>, vector<256x64xf32> -> vector<256x64xf32>
    %35 = arith.addf %24, %34 : vector<256x64xf32>
    %36 = vector.extract_strided_slice %29 {offsets = [0, 1, 0], sizes = [16, 16, 32], strides = [1, 1, 1]} : vector<16x18x32xbf16> to vector<16x16x32xbf16>
    %37 = vector.shape_cast %36 : vector<16x16x32xbf16> to vector<256x32xbf16>
    %c4 = arith.constant 4 : index
    %c0_18 = arith.constant 0 : index
    %c0_19 = arith.constant 0 : index
    %38 = vector.load %arg3[%c4, %c0_18, %c0_19] : memref<9x32x64xbf16, #tpu.memory_space<vmem>>, vector<1x32x64xbf16>
    %39 = vector.shape_cast %38 : vector<1x32x64xbf16> to vector<32x64xbf16>
    %cst_20 = arith.constant dense<0.000000e+00> : vector<256x64xf32>
    %40 = tpu.matmul %37, %39, %cst_20 {dimension_numbers = #tpu.dot_dimension_numbers<[1], [0], [0], [1], [0, 0, 1, 1], [], []>} : vector<256x32xbf16>, vector<32x64xbf16>, vector<256x64xf32> -> vector<256x64xf32>
    %41 = arith.addf %35, %40 : vector<256x64xf32>
    %42 = vector.extract_strided_slice %29 {offsets = [0, 2, 0], sizes = [16, 16, 32], strides = [1, 1, 1]} : vector<16x18x32xbf16> to vector<16x16x32xbf16>
    %43 = vector.shape_cast %42 : vector<16x16x32xbf16> to vector<256x32xbf16>
    %c5 = arith.constant 5 : index
    %c0_21 = arith.constant 0 : index
    %c0_22 = arith.constant 0 : index
    %44 = vector.load %arg3[%c5, %c0_21, %c0_22] : memref<9x32x64xbf16, #tpu.memory_space<vmem>>, vector<1x32x64xbf16>
    %45 = vector.shape_cast %44 : vector<1x32x64xbf16> to vector<32x64xbf16>
    %cst_23 = arith.constant dense<0.000000e+00> : vector<256x64xf32>
    %46 = tpu.matmul %43, %45, %cst_23 {dimension_numbers = #tpu.dot_dimension_numbers<[1], [0], [0], [1], [0, 0, 1, 1], [], []>} : vector<256x32xbf16>, vector<32x64xbf16>, vector<256x64xf32> -> vector<256x64xf32>
    %47 = arith.addf %41, %46 : vector<256x64xf32>
    %c2_i32 = arith.constant 2 : i32
    %48 = arith.addi %0, %c2_i32 : i32
    %c0_24 = arith.constant 0 : index
    %49 = arith.index_cast %48 : i32 to index
    %c0_25 = arith.constant 0 : index
    %c0_26 = arith.constant 0 : index
    %50 = vector.load %arg2[%c0_24, %49, %c0_25, %c0_26] : memref<1x18x18x32xf32, #tpu.memory_space<vmem>>, vector<1x16x18x32xf32>
    %51 = vector.shape_cast %50 : vector<1x16x18x32xf32> to vector<16x18x32xf32>
    %52 = arith.truncf %51 : vector<16x18x32xf32> to vector<16x18x32xbf16>
    %53 = vector.extract_strided_slice %52 {offsets = [0, 0, 0], sizes = [16, 16, 32], strides = [1, 1, 1]} : vector<16x18x32xbf16> to vector<16x16x32xbf16>
    %54 = vector.shape_cast %53 : vector<16x16x32xbf16> to vector<256x32xbf16>
    %c6 = arith.constant 6 : index
    %c0_27 = arith.constant 0 : index
    %c0_28 = arith.constant 0 : index
    %55 = vector.load %arg3[%c6, %c0_27, %c0_28] : memref<9x32x64xbf16, #tpu.memory_space<vmem>>, vector<1x32x64xbf16>
    %56 = vector.shape_cast %55 : vector<1x32x64xbf16> to vector<32x64xbf16>
    %cst_29 = arith.constant dense<0.000000e+00> : vector<256x64xf32>
    %57 = tpu.matmul %54, %56, %cst_29 {dimension_numbers = #tpu.dot_dimension_numbers<[1], [0], [0], [1], [0, 0, 1, 1], [], []>} : vector<256x32xbf16>, vector<32x64xbf16>, vector<256x64xf32> -> vector<256x64xf32>
    %58 = arith.addf %47, %57 : vector<256x64xf32>
    %59 = vector.extract_strided_slice %52 {offsets = [0, 1, 0], sizes = [16, 16, 32], strides = [1, 1, 1]} : vector<16x18x32xbf16> to vector<16x16x32xbf16>
    %60 = vector.shape_cast %59 : vector<16x16x32xbf16> to vector<256x32xbf16>
    %c7 = arith.constant 7 : index
    %c0_30 = arith.constant 0 : index
    %c0_31 = arith.constant 0 : index
    %61 = vector.load %arg3[%c7, %c0_30, %c0_31] : memref<9x32x64xbf16, #tpu.memory_space<vmem>>, vector<1x32x64xbf16>
    %62 = vector.shape_cast %61 : vector<1x32x64xbf16> to vector<32x64xbf16>
    %cst_32 = arith.constant dense<0.000000e+00> : vector<256x64xf32>
    %63 = tpu.matmul %60, %62, %cst_32 {dimension_numbers = #tpu.dot_dimension_numbers<[1], [0], [0], [1], [0, 0, 1, 1], [], []>} : vector<256x32xbf16>, vector<32x64xbf16>, vector<256x64xf32> -> vector<256x64xf32>
    %64 = arith.addf %58, %63 : vector<256x64xf32>
    %65 = vector.extract_strided_slice %52 {offsets = [0, 2, 0], sizes = [16, 16, 32], strides = [1, 1, 1]} : vector<16x18x32xbf16> to vector<16x16x32xbf16>
    %66 = vector.shape_cast %65 : vector<16x16x32xbf16> to vector<256x32xbf16>
    %c8 = arith.constant 8 : index
    %c0_33 = arith.constant 0 : index
    %c0_34 = arith.constant 0 : index
    %67 = vector.load %arg3[%c8, %c0_33, %c0_34] : memref<9x32x64xbf16, #tpu.memory_space<vmem>>, vector<1x32x64xbf16>
    %68 = vector.shape_cast %67 : vector<1x32x64xbf16> to vector<32x64xbf16>
    %cst_35 = arith.constant dense<0.000000e+00> : vector<256x64xf32>
    %69 = tpu.matmul %66, %68, %cst_35 {dimension_numbers = #tpu.dot_dimension_numbers<[1], [0], [0], [1], [0, 0, 1, 1], [], []>} : vector<256x32xbf16>, vector<32x64xbf16>, vector<256x64xf32> -> vector<256x64xf32>
    %70 = arith.addf %64, %69 : vector<256x64xf32>
    %c0_36 = arith.constant 0 : index
    %c0_37 = arith.constant 0 : index
    %71 = vector.load %arg4[%c0_36, %c0_37] : memref<1x64xf32, #tpu.memory_space<vmem>>, vector<1x64xf32>
    %72 = vector.broadcast %71 : vector<1x64xf32> to vector<256x64xf32>
    %73 = arith.addf %70, %72 : vector<256x64xf32>
    %cst_38 = arith.constant 0.000000e+00 : f32
    %74 = vector.broadcast %cst_38 : f32 to vector<256x64xf32>
    %75 = arith.maximumf %73, %74 : vector<256x64xf32>
    %76 = vector.shape_cast %75 : vector<256x64xf32> to vector<16x16x64xf32>
    %c0_39 = arith.constant 0 : index
    %c0_40 = arith.constant 0 : index
    %c0_41 = arith.constant 0 : index
    %c0_42 = arith.constant 0 : index
    %77 = vector.load %arg5[%c0_39, %c0_40, %c0_41, %c0_42] : memref<1x16x16x64xf32, #tpu.memory_space<vmem>>, vector<1x16x16x64xf32>
    %78 = vector.shape_cast %77 : vector<1x16x16x64xf32> to vector<16x16x64xf32>
    %79 = vector.shape_cast %76 : vector<16x16x64xf32> to vector<1x16x16x64xf32>
    tpu.vector_store %arg5[%c0_39, %c0_40, %c0_41, %c0_42], %79 {strides = array<i32>} : memref<1x16x16x64xf32, #tpu.memory_space<vmem>>, vector<1x16x16x64xf32>,
    return
  }
  func.func @transform_0(%arg0: i32, %arg1: i32) -> (i32, i32, i32, i32) {
    %c0_i32 = arith.constant 0 : i32
    %c0_i32_0 = arith.constant 0 : i32
    %c0_i32_1 = arith.constant 0 : i32
    %c0_i32_2 = arith.constant 0 : i32
    return %arg0, %c0_i32, %c0_i32_0, %c0_i32_1 : i32, i32, i32, i32
  }
  func.func @transform_1(%arg0: i32, %arg1: i32) -> (i32, i32, i32) {
    %c0_i32 = arith.constant 0 : i32
    %c0_i32_0 = arith.constant 0 : i32
    %c0_i32_1 = arith.constant 0 : i32
    %c0_i32_2 = arith.constant 0 : i32
    return %c0_i32, %c0_i32_0, %c0_i32_1 : i32, i32, i32
  }
  func.func @transform_2(%arg0: i32, %arg1: i32) -> (i32, i32) {
    %c0_i32 = arith.constant 0 : i32
    %c0_i32_0 = arith.constant 0 : i32
    %c0_i32_1 = arith.constant 0 : i32
    return %c0_i32, %c0_i32_0 : i32, i32
  }
  func.func @transform_3(%arg0: i32, %arg1: i32) -> (i32, i32, i32, i32) {
    %c0_i32 = arith.constant 0 : i32
    %c0_i32_0 = arith.constant 0 : i32
    %c0_i32_1 = arith.constant 0 : i32
    return %arg0, %arg1, %c0_i32, %c0_i32_0 : i32, i32, i32, i32
  }
}

module attributes {stable_mosaic.version = 11 : i64} {
  func.func @_maxpool3x3_s2_kernel(%arg0: i32, %arg1: memref<1x18x9x64xf32, #tpu.memory_space<vmem>>, %arg2: memref<1x18x9x64xf32, #tpu.memory_space<vmem>>, %arg3: memref<1x8x8x64xf32, #tpu.memory_space<vmem>>) attributes {dimension_semantics = [#tpu.dimension_semantics<parallel>], iteration_bounds = array<i64: 2>, scalar_prefetch = 0 : i64, scratch_operands = 0 : i64, tpu.core_type = #tpu.core_type<tc>, window_params = [{transform_indices = @transform_0, window_bounds = array<i64: 1, 18, 9, 64>}, {transform_indices = @transform_1, window_bounds = array<i64: 1, 18, 9, 64>}, {transform_indices = @transform_2, window_bounds = array<i64: 1, 8, 8, 64>}]} {
    %c0 = arith.constant 0 : index
    %c0_0 = arith.constant 0 : index
    %c0_1 = arith.constant 0 : index
    %c0_2 = arith.constant 0 : index
    %0 = vector.load %arg1[%c0, %c0_0, %c0_1, %c0_2] : memref<1x18x9x64xf32, #tpu.memory_space<vmem>>, vector<1x18x9x64xf32>
    %1 = vector.shape_cast %0 : vector<1x18x9x64xf32> to vector<18x9x64xf32>
    %c0_3 = arith.constant 0 : index
    %c0_4 = arith.constant 0 : index
    %c0_5 = arith.constant 0 : index
    %c0_6 = arith.constant 0 : index
    %2 = vector.load %arg2[%c0_3, %c0_4, %c0_5, %c0_6] : memref<1x18x9x64xf32, #tpu.memory_space<vmem>>, vector<1x18x9x64xf32>
    %3 = vector.shape_cast %2 : vector<1x18x9x64xf32> to vector<18x9x64xf32>
    %4 = vector.extract_strided_slice %1 {offsets = [0, 0, 0], sizes = [18, 8, 64], strides = [1, 1, 1]} : vector<18x9x64xf32> to vector<18x8x64xf32>
    %5 = vector.extract_strided_slice %3 {offsets = [0, 0, 0], sizes = [18, 8, 64], strides = [1, 1, 1]} : vector<18x9x64xf32> to vector<18x8x64xf32>
    %6 = arith.maximumf %4, %5 : vector<18x8x64xf32>
    %7 = vector.extract_strided_slice %1 {offsets = [0, 1, 0], sizes = [18, 8, 64], strides = [1, 1, 1]} : vector<18x9x64xf32> to vector<18x8x64xf32>
    %8 = arith.maximumf %6, %7 : vector<18x8x64xf32>
    %9 = vector.extract_strided_slice %8 {offsets = [0, 0, 0], sizes = [16, 8, 64], strides = [1, 1, 1]} : vector<18x8x64xf32> to vector<16x8x64xf32>
    %10 = vector.shape_cast %9 : vector<16x8x64xf32> to vector<8x2x8x64xf32>
    %11 = vector.extract_strided_slice %10 {offsets = [0, 0, 0, 0], sizes = [8, 1, 8, 64], strides = [1, 1, 1, 1]} : vector<8x2x8x64xf32> to vector<8x1x8x64xf32>
    %12 = vector.shape_cast %11 : vector<8x1x8x64xf32> to vector<8x8x64xf32>
    %13 = vector.extract_strided_slice %8 {offsets = [1, 0, 0], sizes = [16, 8, 64], strides = [1, 1, 1]} : vector<18x8x64xf32> to vector<16x8x64xf32>
    %14 = vector.shape_cast %13 : vector<16x8x64xf32> to vector<8x2x8x64xf32>
    %15 = vector.extract_strided_slice %14 {offsets = [0, 0, 0, 0], sizes = [8, 1, 8, 64], strides = [1, 1, 1, 1]} : vector<8x2x8x64xf32> to vector<8x1x8x64xf32>
    %16 = vector.shape_cast %15 : vector<8x1x8x64xf32> to vector<8x8x64xf32>
    %17 = arith.maximumf %12, %16 : vector<8x8x64xf32>
    %18 = vector.extract_strided_slice %8 {offsets = [2, 0, 0], sizes = [16, 8, 64], strides = [1, 1, 1]} : vector<18x8x64xf32> to vector<16x8x64xf32>
    %19 = vector.shape_cast %18 : vector<16x8x64xf32> to vector<8x2x8x64xf32>
    %20 = vector.extract_strided_slice %19 {offsets = [0, 0, 0, 0], sizes = [8, 1, 8, 64], strides = [1, 1, 1, 1]} : vector<8x2x8x64xf32> to vector<8x1x8x64xf32>
    %21 = vector.shape_cast %20 : vector<8x1x8x64xf32> to vector<8x8x64xf32>
    %22 = arith.maximumf %17, %21 : vector<8x8x64xf32>
    %c0_7 = arith.constant 0 : index
    %c0_8 = arith.constant 0 : index
    %c0_9 = arith.constant 0 : index
    %c0_10 = arith.constant 0 : index
    %23 = vector.load %arg3[%c0_7, %c0_8, %c0_9, %c0_10] : memref<1x8x8x64xf32, #tpu.memory_space<vmem>>, vector<1x8x8x64xf32>
    %24 = vector.shape_cast %23 : vector<1x8x8x64xf32> to vector<8x8x64xf32>
    %25 = vector.shape_cast %22 : vector<8x8x64xf32> to vector<1x8x8x64xf32>
    tpu.vector_store %arg3[%c0_7, %c0_8, %c0_9, %c0_10], %25 {strides = array<i32>} : memref<1x8x8x64xf32, #tpu.memory_space<vmem>>, vector<1x8x8x64xf32>,
    return
  }
  func.func @transform_0(%arg0: i32) -> (i32, i32, i32, i32) {
    %c0_i32 = arith.constant 0 : i32
    %c0_i32_0 = arith.constant 0 : i32
    %c0_i32_1 = arith.constant 0 : i32
    %c0_i32_2 = arith.constant 0 : i32
    return %arg0, %c0_i32, %c0_i32_0, %c0_i32_1 : i32, i32, i32, i32
  }
  func.func @transform_1(%arg0: i32) -> (i32, i32, i32, i32) {
    %c0_i32 = arith.constant 0 : i32
    %c0_i32_0 = arith.constant 0 : i32
    %c0_i32_1 = arith.constant 0 : i32
    %c0_i32_2 = arith.constant 0 : i32
    return %arg0, %c0_i32, %c0_i32_0, %c0_i32_1 : i32, i32, i32, i32
  }
  func.func @transform_2(%arg0: i32) -> (i32, i32, i32, i32) {
    %c0_i32 = arith.constant 0 : i32
    %c0_i32_0 = arith.constant 0 : i32
    %c0_i32_1 = arith.constant 0 : i32
    %c0_i32_2 = arith.constant 0 : i32
    return %arg0, %c0_i32, %c0_i32_0, %c0_i32_1 : i32, i32, i32, i32
  }
}

</mosaic_0001>

<bundles_post_ra>
// kernel: conv_tokenizer.4
= control target key start
LH: loop header
LB: loop body
LE: loop exit
PB: predicated region body
PF: predicated region fallthrough
CT: control target
= control target key end

     0   :  { %s711_s12 = smov 0   ;;  %s894_s0 = inlined_call_operand.vmem [shape: f32[512,27], index: 0, kind: input, shape index: {}]   ;;  %s895_s1 = inlined_call_operand.vmem [shape: bf16[27,32], index: 1, kind: input, shape index: {}]   ;;  %s896_s2 = inlined_call_operand.vmem [shape: f32[1,32], index: 2, kind: input, shape index: {}]   ;;  %s897_s3 = inlined_call_operand.vmem [shape: f32[512,32], index: 3, kind: output, shape index: {}]  }
   0x1 LB: > { %s583_s13 = sadd.s32 4294967295, %s688_s12   ;;  %p587_p0 = scmp.ge.s32.totalorder %s688_s12, 1  ;;  %s688_s12 = sphi %s711_s12, %s13_s12  }
   0x2   : > { %p138_p1 = scmp.lt.s32.totalorder %s688_s12, 3 }
   0x4   : > { %p139_p2 = pnand %p587_p0, %p138_p1 }
   0x5   : > { %v680_v0 = vld [vmem:[%s895_s1] sm:$0xff] (!%p139_p2)   ;;  %vm294_vm0 = vcmask (!%p139_p2), 1044480   ;;  %v681_v1 = vld [vmem:[%s895_s1 + $0x8] sm:$0x3f] (!%p139_p2)   ;;  %vm295_vm1 = vcmask (!%p139_p2), 1045504   ;;  %s588_s18 = sshll.u32 (!%p139_p2), %s583_s13, 5 }
   0x6   : > { %142 = sbr.rel (%p139_p2) target bundleno = 265 (0x109), region = 32  ;;  %631 = vmatprep.subr.bf16.mxu0 (!%p139_p2), %v680_v0  ;;  %667 = vmatprep.subr.bf16.mxu1 (!%p139_p2), %v680_v0  ;;  %v690_v2 = vmov (!%p139_p2), 65535   ;;  %p163_p3 = scmp.lt.s32.totalorder (!%p139_p2), %s588_s18, 63  ;;  %vm245_vm2 = vcmask (!%p139_p2), 220160   ;;  %v786_v54 = vld [vmem:[%s896_s2] ss:$0 sm:$0xff] (!%p139_p2) }
   0x7   : > { %632 = vmatpush3.bf16.msra.mxu0 (!%p139_p2), %v680_v0  ;;  %669 = vmatpush3.bf16.msra.mxu1 (!%p139_p2), %v680_v0  ;;  %v296_v3 = vsel (!%p139_p2), %vm294_vm0, 4294967295, %v690_v2  ;;  %vm494_vm3 = vcmask (!%p139_p2), 261120  }
   0x8   : > { %v297_v4 = vsel (!%p139_p2), %vm295_vm1, %v296_v3, 0 }
   0x9   : > { %v299_v5 = vand.u32 (!%p139_p2), %v681_v1, %v297_v4 }
   0xb   : > { %633 = vmatprep.subr.bf16.mxu0 (!%p139_p2), %v299_v5  ;;  %668 = vmatprep.subr.bf16.mxu1 (!%p139_p2), %v299_v5 }
   0xc   : > { %634 = vmatpush3.bf16.msra.mxu0 (!%p139_p2), %v299_v5  ;;  %670 = vmatpush3.bf16.msra.mxu1 (!%p139_p2), %v299_v5 }
   0xd   : > { %s899_s18 = smov (!%p163_p3, %s588_s18), 63 }
   0xe   : > { %s589_s19 = sshll.u32 %s899_s18, 3 }
   0xf   : > { %s733_s22 = scalar_lea.vmem %s894_s0, %s589_s19  ;;  %s794_s27 = scalar_lea.vmem %s897_s3, %s589_s19 }
  0x10   : > { %v175_v6 = vld [vmem:[%s733_s22] sm:$0xff]  ;;  %v176_v7 = vld [vmem:[%s733_s22 + $0x8] sm:$0xff]  ;;  %v177_v11 = vld [vmem:[%s733_s22 + $0x10] sm:$0xff] }
  0x11   : > { %v191_v8 = vld [vmem:[%s733_s22 + $0x80] sm:$0xff]  ;;  %v207_v9 = vpack.c.bf16 %v176_v7, %v175_v6  ;;  %v192_v10 = vld [vmem:[%s733_s22 + $0x88] sm:$0xff]  ;;  %v178_v12 = vld [vmem:[%s733_s22 + $0x18] sm:$0xff] }
  0x12   : > { %v215_v13 = vpack.c.bf16 %v192_v10, %v191_v8  ;;  %v208_v14 = vpack.c.bf16 %v178_v12, %v177_v11  ;;  %v193_v15 = vld [vmem:[%s733_s22 + $0x90] sm:$0xff]  ;;  %v194_v16 = vld [vmem:[%s733_s22 + $0x98] sm:$0xff]  ;;  %v179_v17 = vld [vmem:[%s733_s22 + $0x20] sm:$0xff] }
  0x13   : > { %635 = vmatprep.mubr.msk.bf16.mxu0 %vm245_vm2, %v207_v9  ;;  %v216_v18 = vpack.c.bf16 %v194_v16, %v193_v15  ;;  %v180_v19 = vld [vmem:[%s733_s22 + $0x28] sm:$0xff]  ;;  %v195_v20 = vld [vmem:[%s733_s22 + $0xa0] sm:$0xff]  ;;  %v181_v24 = vld [vmem:[%s733_s22 + $0x30] sm:$0xff] }
  0x14   : > { %v196_v21 = vld [vmem:[%s733_s22 + $0xa8] sm:$0xff]  ;;  %651 = vmatprep.mubr.msk.bf16.mxu1 %vm245_vm2, %v215_v13  ;;  %636 = vmatmul.mubr.msk.bf16.vlgmr.msra.gmra.mrb[0].mxu0 %vm245_vm2, %v208_v14  ;;  %v209_v22 = vpack.c.bf16 %v180_v19, %v179_v17  ;;  %v182_v25 = vld [vmem:[%s733_s22 + $0x38] sm:$0xff]  ;;  %v197_v26 = vld [vmem:[%s733_s22 + $0xb0] sm:$0xff] }
  0x15   : > { %v217_v23 = vpack.c.bf16 %v196_v21, %v195_v20  ;;  %652 = vmatmul.mubr.msk.bf16.vlgmr.msra.gmra.mrb[0].mxu1 %vm245_vm2, %v216_v18  ;;  %v198_v27 = vld [vmem:[%s733_s22 + $0xb8] sm:$0xff]  ;;  %v183_v28 = vld [vmem:[%s733_s22 + $0x40] sm:$0xff]  ;;  %v184_v29 = vld [vmem:[%s733_s22 + $0x48] sm:$0xff]  ;;  %v210_v32 = vpack.c.bf16 %v182_v25, %v181_v24 }
  0x16   : > { %639 = vmatprep.mubr.msk.bf16.mxu0 %vm245_vm2, %v209_v22  ;;  %v199_v30 = vld [vmem:[%s733_s22 + $0xc0] sm:$0xff]  ;;  %v200_v31 = vld [vmem:[%s733_s22 + $0xc8] sm:$0xff]  ;;  %v218_v33 = vpack.c.bf16 %v198_v27, %v197_v26  ;;  %v211_v34 = vpack.c.bf16 %v184_v29, %v183_v28  ;;  %v185_v36 = vld [vmem:[%s733_s22 + $0x50] sm:$0xff] }
  0x17   : > { %655 = vmatprep.mubr.msk.bf16.mxu1 %vm245_vm2, %v217_v23  ;;  %v219_v35 = vpack.c.bf16 %v200_v31, %v199_v30  ;;  %v186_v37 = vld [vmem:[%s733_s22 + $0x58] sm:$0xff]  ;;  %v201_v38 = vld [vmem:[%s733_s22 + $0xd0] sm:$0xff]  ;;  %v187_v40 = vld [vmem:[%s733_s22 + $0x60] sm:$0xff] }
  0x18   : > { %v202_v39 = vld [vmem:[%s733_s22 + $0xd8] sm:$0xff]  ;;  %v188_v41 = vld [vmem:[%s733_s22 + $0x68] sm:$0xff]  ;;  %v203_v42 = vld [vmem:[%s733_s22 + $0xe0] sm:$0xff]  ;;  %v212_v44 = vpack.c.bf16 %v186_v37, %v185_v36 }
  0x19   : > { %v204_v43 = vld [vmem:[%s733_s22 + $0xe8] sm:$0xff]  ;;  %v220_v45 = vpack.c.bf16 %v202_v39, %v201_v38  ;;  %v213_v46 = vpack.c.bf16 %v188_v41, %v187_v40  ;;  %v189_v48 = vld [vmem:[%s733_s22 + $0x70] sm:$0xff]  ;;  %v190_v49 = vld [vmem:[%s733_s22 + $0x78] sm:$0xff] }
  0x1a   : > { %v221_v47 = vpack.c.bf16 %v204_v43, %v203_v42  ;;  %v205_v50 = vld [vmem:[%s733_s22 + $0xf0] sm:$0xff]  ;;  %v206_v51 = vld [vmem:[%s733_s22 + $0xf8] sm:$0xff]  ;;  %v214_v52 = vpack.c.bf16 %v190_v49, %v189_v48 }
  0x1b   : > { %v222_v53 = vpack.c.bf16 %v206_v51, %v205_v50 }
  0x1c   : > { %640 = vmatmul.mubr.msk.bf16.gmra.mrb[4].mxu0 %vm245_vm2, %v210_v32 }
  0x1d   : > { %656 = vmatmul.mubr.msk.bf16.gmra.mrb[4].mxu1 %vm245_vm2, %v218_v33  ;;  %643 = vmatprep.mubr.msk.bf16.mxu0 %vm245_vm2, %v211_v34 }
  0x1e   : > { %659 = vmatprep.mubr.msk.bf16.mxu1 %vm245_vm2, %v219_v35 }
  0x24   : > { %644 = vmatmul.mubr.msk.bf16.gmra.mrb[8].mxu0 %vm245_vm2, %v212_v44 }
  0x25   : > { %660 = vmatmul.mubr.msk.bf16.gmra.mrb[8].mxu1 %vm245_vm2, %v220_v45  ;;  %647 = vmatprep.mubr.msk.bf16.mxu0 %vm245_vm2, %v213_v46 }
  0x26   : > { %663 = vmatprep.mubr.msk.bf16.mxu1 %vm245_vm2, %v221_v47 }
  0x2c   : > { %648 = vmatmul.mubr.msk.bf16.gmra.mrb[12].mxu0 %vm245_vm2, %v214_v52 }
  0x2d   : > { %664 = vmatmul.mubr.msk.bf16.gmra.mrb[12].mxu1 %vm245_vm2, %v222_v53 }
  0xe7   : > { %v637_v55 = vpop.f32.mrb[0].mxu0 }
  0xe8   : > { %v344_v56 = vadd.f32 %v637_v55, %v786_v54  ;;  %v653_v57 = vpop.f32.mrb[0].mxu1  ;;  %v335_v58 = vpop.f32.mrb[1].mxu0 }
  0xe9   : > { %v408_v59 = vadd.f32 %v653_v57, %v786_v54  ;;  %v336_v60 = vadd.f32 %v786_v54, %v335_v58  ;;  %v399_v61 = vpop.f32.mrb[1].mxu1  ;;  %v638_v62 = vpop.f32.mrb[2].mxu0 }
  0xea   : > { %v464_v63 = vmax.f32 %v344_v56, 0.0  ;;  %v400_v0 = vadd.f32 %v786_v54, %v399_v61  ;;  %v347_v1 = vadd.f32 %v638_v62, %v786_v54  ;;  %v654_v2 = vpop.f32.mrb[2].mxu1  ;;  %v338_v3 = vpop.f32.mrb[3].mxu0 }
  0xeb   : > { %v480_v4 = vmax.f32 %v408_v59, 0.0  ;;  %v462_v5 = vmax.f32 %v336_v60, 0.0  ;;  %v411_v6 = vadd.f32 %v654_v2, %v786_v54  ;;  %v339_v7 = vadd.f32 %v786_v54, %v338_v3  ;;  %v402_v8 = vpop.f32.mrb[3].mxu1 }
  0xec   : > { %497 = vst.msk [vmem:[%s794_s27 + $0x10] sm:$0xff] %vm494_vm3, %v464_v63  ;;  %v478_v9 = vmax.f32 %v400_v0, 0.0  ;;  %v465_v10 = vmax.f32 %v347_v1, 0.0  ;;  %v403_v11 = vadd.f32 %v786_v54, %v402_v8 }
  0xed   : > { %513 = vst.msk [vmem:[%s794_s27 + $0x90] sm:$0xff] %vm494_vm3, %v480_v4  ;;  %495 = vst.msk [vmem:[%s794_s27] sm:$0xff] %vm494_vm3, %v462_v5  ;;  %v481_v12 = vmax.f32 %v411_v6, 0.0  ;;  %v463_v13 = vmax.f32 %v339_v7, 0.0 }
  0xee   : > { %511 = vst.msk [vmem:[%s794_s27 + $0x80] sm:$0xff] %vm494_vm3, %v478_v9  ;;  %498 = vst.msk [vmem:[%s794_s27 + $0x18] sm:$0xff] %vm494_vm3, %v465_v10  ;;  %v479_v14 = vmax.f32 %v403_v11, 0.0 }
  0xef   : > { %514 = vst.msk [vmem:[%s794_s27 + $0x98] sm:$0xff] %vm494_vm3, %v481_v12  ;;  %496 = vst.msk [vmem:[%s794_s27 + $0x8] sm:$0xff] %vm494_vm3, %v463_v13  ;;  %v641_v15 = vpop.f32.mrb[4].mxu0 }
  0xf0   : > { %512 = vst.msk [vmem:[%s794_s27 + $0x88] sm:$0xff] %vm494_vm3, %v479_v14  ;;  %v360_v16 = vadd.f32 %v641_v15, %v786_v54  ;;  %v657_v17 = vpop.f32.mrb[4].mxu1  ;;  %v351_v18 = vpop.f32.mrb[5].mxu0 }
  0xf1   : > { %v424_v19 = vadd.f32 %v657_v17, %v786_v54  ;;  %v352_v20 = vadd.f32 %v786_v54, %v351_v18  ;;  %v415_v21 = vpop.f32.mrb[5].mxu1  ;;  %v642_v22 = vpop.f32.mrb[6].mxu0 }
  0xf2   : > { %v468_v23 = vmax.f32 %v360_v16, 0.0  ;;  %v416_v24 = vadd.f32 %v786_v54, %v415_v21  ;;  %v363_v25 = vadd.f32 %v642_v22, %v786_v54  ;;  %v658_v26 = vpop.f32.mrb[6].mxu1  ;;  %v354_v27 = vpop.f32.mrb[7].mxu0 }
  0xf3   : > { %v484_v28 = vmax.f32 %v424_v19, 0.0  ;;  %v466_v29 = vmax.f32 %v352_v20, 0.0  ;;  %v427_v30 = vadd.f32 %v658_v26, %v786_v54  ;;  %v355_v31 = vadd.f32 %v786_v54, %v354_v27  ;;  %v418_v32 = vpop.f32.mrb[7].mxu1 }
  0xf4   : > { %501 = vst.msk [vmem:[%s794_s27 + $0x30] sm:$0xff] %vm494_vm3, %v468_v23  ;;  %v482_v33 = vmax.f32 %v416_v24, 0.0  ;;  %v469_v34 = vmax.f32 %v363_v25, 0.0  ;;  %v419_v35 = vadd.f32 %v786_v54, %v418_v32 }
  0xf5   : > { %517 = vst.msk [vmem:[%s794_s27 + $0xb0] sm:$0xff] %vm494_vm3, %v484_v28  ;;  %499 = vst.msk [vmem:[%s794_s27 + $0x20] sm:$0xff] %vm494_vm3, %v466_v29  ;;  %v485_v36 = vmax.f32 %v427_v30, 0.0  ;;  %v467_v37 = vmax.f32 %v355_v31, 0.0 }
  0xf6   : > { %515 = vst.msk [vmem:[%s794_s27 + $0xa0] sm:$0xff] %vm494_vm3, %v482_v33  ;;  %502 = vst.msk [vmem:[%s794_s27 + $0x38] sm:$0xff] %vm494_vm3, %v469_v34  ;;  %v483_v38 = vmax.f32 %v419_v35, 0.0 }
  0xf7   : > { %518 = vst.msk [vmem:[%s794_s27 + $0xb8] sm:$0xff] %vm494_vm3, %v485_v36  ;;  %500 = vst.msk [vmem:[%s794_s27 + $0x28] sm:$0xff] %vm494_vm3, %v467_v37  ;;  %v645_v39 = vpop.f32.mrb[8].mxu0 }
  0xf8   : > { %516 = vst.msk [vmem:[%s794_s27 + $0xa8] sm:$0xff] %vm494_vm3, %v483_v38  ;;  %v376_v40 = vadd.f32 %v645_v39, %v786_v54  ;;  %v661_v41 = vpop.f32.mrb[8].mxu1  ;;  %v367_v42 = vpop.f32.mrb[9].mxu0 }
  0xf9   : > { %v440_v43 = vadd.f32 %v661_v41, %v786_v54  ;;  %v368_v44 = vadd.f32 %v786_v54, %v367_v42  ;;  %v431_v45 = vpop.f32.mrb[9].mxu1  ;;  %v646_v46 = vpop.f32.mrb[10].mxu0 }
  0xfa   : > { %v472_v47 = vmax.f32 %v376_v40, 0.0  ;;  %v432_v48 = vadd.f32 %v786_v54, %v431_v45  ;;  %v379_v49 = vadd.f32 %v646_v46, %v786_v54  ;;  %v662_v50 = vpop.f32.mrb[10].mxu1  ;;  %v370_v51 = vpop.f32.mrb[11].mxu0 }
  0xfb   : > { %v488_v52 = vmax.f32 %v440_v43, 0.0  ;;  %v470_v53 = vmax.f32 %v368_v44, 0.0  ;;  %v443_v55 = vadd.f32 %v662_v50, %v786_v54  ;;  %v371_v56 = vadd.f32 %v786_v54, %v370_v51  ;;  %v434_v57 = vpop.f32.mrb[11].mxu1 }
  0xfc   : > { %505 = vst.msk [vmem:[%s794_s27 + $0x50] sm:$0xff] %vm494_vm3, %v472_v47  ;;  %v486_v58 = vmax.f32 %v432_v48, 0.0  ;;  %v473_v59 = vmax.f32 %v379_v49, 0.0  ;;  %v435_v60 = vadd.f32 %v786_v54, %v434_v57 }
  0xfd   : > { %521 = vst.msk [vmem:[%s794_s27 + $0xd0] sm:$0xff] %vm494_vm3, %v488_v52  ;;  %503 = vst.msk [vmem:[%s794_s27 + $0x40] sm:$0xff] %vm494_vm3, %v470_v53  ;;  %v489_v61 = vmax.f32 %v443_v55, 0.0  ;;  %v471_v62 = vmax.f32 %v371_v56, 0.0 }
  0xfe   : > { %519 = vst.msk [vmem:[%s794_s27 + $0xc0] sm:$0xff] %vm494_vm3, %v486_v58  ;;  %506 = vst.msk [vmem:[%s794_s27 + $0x58] sm:$0xff] %vm494_vm3, %v473_v59  ;;  %v487_v63 = vmax.f32 %v435_v60, 0.0 }
  0xff   : > { %522 = vst.msk [vmem:[%s794_s27 + $0xd8] sm:$0xff] %vm494_vm3, %v489_v61  ;;  %504 = vst.msk [vmem:[%s794_s27 + $0x48] sm:$0xff] %vm494_vm3, %v471_v62  ;;  %v649_v0 = vpop.f32.mrb[12].mxu0 }
 0x100   : > { %520 = vst.msk [vmem:[%s794_s27 + $0xc8] sm:$0xff] %vm494_vm3, %v487_v63  ;;  %v392_v1 = vadd.f32 %v649_v0, %v786_v54  ;;  %v665_v2 = vpop.f32.mrb[12].mxu1  ;;  %v383_v3 = vpop.f32.mrb[13].mxu0 }
 0x101   : > { %v456_v4 = vadd.f32 %v665_v2, %v786_v54  ;;  %v384_v5 = vadd.f32 %v786_v54, %v383_v3  ;;  %v447_v6 = vpop.f32.mrb[13].mxu1  ;;  %v650_v7 = vpop.f32.mrb[14].mxu0 }
 0x102   : > { %v476_v8 = vmax.f32 %v392_v1, 0.0  ;;  %v448_v9 = vadd.f32 %v786_v54, %v447_v6  ;;  %v395_v10 = vadd.f32 %v650_v7, %v786_v54  ;;  %v666_v11 = vpop.f32.mrb[14].mxu1  ;;  %v386_v12 = vpop.f32.mrb[15].mxu0 }
 0x103   : > { %v492_v13 = vmax.f32 %v456_v4, 0.0  ;;  %v474_v14 = vmax.f32 %v384_v5, 0.0  ;;  %v459_v15 = vadd.f32 %v666_v11, %v786_v54  ;;  %v387_v16 = vadd.f32 %v786_v54, %v386_v12  ;;  %v450_v17 = vpop.f32.mrb[15].mxu1 }
 0x104   : > { %509 = vst.msk [vmem:[%s794_s27 + $0x70] sm:$0xff] %vm494_vm3, %v476_v8  ;;  %v490_v18 = vmax.f32 %v448_v9, 0.0  ;;  %v477_v19 = vmax.f32 %v395_v10, 0.0  ;;  %v451_v20 = vadd.f32 %v786_v54, %v450_v17 }
 0x105   : > { %525 = vst.msk [vmem:[%s794_s27 + $0xf0] sm:$0xff] %vm494_vm3, %v492_v13  ;;  %507 = vst.msk [vmem:[%s794_s27 + $0x60] sm:$0xff] %vm494_vm3, %v474_v14  ;;  %v493_v21 = vmax.f32 %v459_v15, 0.0  ;;  %v475_v22 = vmax.f32 %v387_v16, 0.0 }
 0x106   : > { %523 = vst.msk [vmem:[%s794_s27 + $0xe0] sm:$0xff] %vm494_vm3, %v490_v18  ;;  %510 = vst.msk [vmem:[%s794_s27 + $0x78] sm:$0xff] %vm494_vm3, %v477_v19  ;;  %v491_v23 = vmax.f32 %v451_v20, 0.0 }
 0x107   : > { %526 = vst.msk [vmem:[%s794_s27 + $0xf8] sm:$0xff] %vm494_vm3, %v493_v21  ;;  %508 = vst.msk [vmem:[%s794_s27 + $0x68] sm:$0xff] %vm494_vm3, %v475_v22 }
 0x108   : > { %524 = vst.msk [vmem:[%s794_s27 + $0xe8] sm:$0xff] %vm494_vm3, %v491_v23 }
 0x109 PF: > { %s13_s12 = sadd.s32 1, %s688_s12  }
 0x10a   : > { %p10_p4 = scmp.ge.s32.totalorder %s13_s12, 4  }
 0x10c   :  { %12 = sbr.rel (!%p10_p4) target bundleno = 1 (0x1), region = 62 }

// kernel: conv_tokenizer.7
= control target key start
LH: loop header
LB: loop body
LE: loop exit
PB: predicated region body
PF: predicated region fallthrough
CT: control target
= control target key end

     0   :  { %7 = vsyncpa [#allocation3], 0  ;;  %s804_s0 = inlined_call_operand.vmem [shape: f32[2,18,9,64], index: 0, kind: input, shape index: {}]   ;;  %s805_s1 = inlined_call_operand.vmem [shape: f32[2,18,9,64], index: 1, kind: input, shape index: {}]   ;;  %s806_s2 = inlined_call_operand.hbm [shape: f32[2,8,8,64], index: 2, kind: output, shape index: {}]  }
   0x1   :  { %9 = vsyncpa [#allocation3 + $0x1], 0  ;;  %s600_s9 = smov 0   ;;  %s602_s10 = smov 0  }
   0x2   :  { %s604_s11 = smov 0   ;;  %s606_s12 = smov 0  }
   0x3 LB: > { %s621_s13 = sadd.s32 4294967295, %s580_s12   ;;  %s463_s14 = sadd.s32 4294967294, %s580_s12   ;;  %s580_s12 = sphi %s606_s12, %s812_s12   ;;  %s576_s11 = sphi %s604_s11, %s811_s11   ;;  %s572_s10 = sphi %s602_s10, %s810_s10   ;;  %s568_s9 = sphi %s600_s9, %s809_s9  }
   0x4   : > { %s625_s15 = sadd.s32 1, %s580_s12   ;;  %s74_s16 = sadd.s32 1, %s576_s11 }
   0x5   : > { %s71_s17 = ssub.s32 %s580_s12, %s625_s15  ;;  %p84_p0 = scmp.ne.s32.totalorder %s576_s11, %s572_s10 }
   0x6   : > { %p72_p1 = scmp.eq.s32.totalorder %s71_s17, 0  ;;  %p85_p2 = scmp.eq.s32.totalorder %s621_s13, 1 }
   0x7   : > { %p90_p3 = scmp.ne.s32.totalorder %s572_s10, %s568_s9  ;;  %p91_p4 = scmp.eq.s32.totalorder %s463_s14, 1 }
   0x8   : > { %s636_s18 = scalar_select %p72_p1, %s576_s11, %s74_s16  }
   0x9   : > { %p638_p5 = por %p85_p2, %p84_p0  ;;  %p642_p6 = por %p91_p4, %p90_p3 }
   0xa   : > { %p466_p7 = scmp.ge.s32.totalorder %s580_s12, 1  ;;  %p125_p8 = scmp.lt.s32.totalorder %s580_s12, 3 }
   0xc   : > { %p126_p9 = pnand %p466_p7, %p125_p8 }
   0xd   : > { %p152_p10 = scmp.lt.s32.totalorder (!%p126_p9), %s621_s13, 1  ;;  %s149_s23 = sand.u32 (!%p126_p9), 1, %s572_s10   ;;  %vm264_vm0 = vcmask (!%p126_p9), 1046528   ;;  %vm366_vm1 = vcmask (!%p126_p9), 523264  }
   0xe   : > { %129 = sbr.rel (%p126_p9) target bundleno = 73 (0x49), region = 28  ;;  %s680_s30 = sshll.u32 (!%p126_p9), %s149_s23, 6 }
   0xf   : > { %s701_s3 = scalar_lea.vmem (!%p126_p9), [#allocation2], %s680_s30  ;;  %s475_s5 = sshll.u32 (!%p126_p9), %s621_s13, 10 }
  0x10   : > { %s389_s4 = sshll.u32 (!%p126_p9), %s701_s3, 4  ;;  %s755_s8 = scalar_lea.hbm (!%p126_p9), %s806_s2, %s475_s5  ;;  %s750_s4 = int_to_ptr.vmem [resolvable:$true] %s389_s4 }
  0x11   : > { %s518_s14 = scalar_lea.vmem (!%p126_p9), %s750_s4, 1024  ;;  %s582_s16 = smov (!%p126_p9), [#allocation2]  }
  0x12   : > { %p519_p11 = scmp.ne.s32.totalorder (!%p126_p9), %s750_s4, %s518_s14  ;;  %s522_s17 = sshll.u32 (!%p126_p9), %s582_s16, 4  ;;  %s523_s17 = int_to_ptr.vmem [resolvable:$false] %s522_s17 }
  0x13   : > { %p525_p0 = scmp.lt.s32.totalorder (!%p126_p9), %s750_s4, %s523_s17 }
  0x14   : > { %p520_p12 = pnand (!%p126_p9), %p519_p11, %p638_p5 }
  0x15   : > { %s153_s21 = scalar_select %p152_p10, %s621_s13, 1 }
  0x16   : > { %s763_s13 = scalar_lea.sflag [#allocation3], %s149_s23  ;;  %p521_p13 = pneg %p520_p12 }
  0x17   : > { %s476_s22 = smul.u32 288, %s153_s21  ;;  %s524_s21 = scalar_lea.vmem %s523_s17, 2048 }
  0x18   : > { %p526_p1 = scmp.lt.s32.totalorder %s524_s21, %s518_s14 }
  0x19   : > { %s654_s26 = scalar_lea.vmem %s804_s0, %s476_s22  ;;  %s659_s29 = scalar_lea.vmem %s805_s1, %s476_s22 }
  0x1a   : > { %v162_v0 = vld [vmem:[%s654_s26] sm:$0xff]  ;;  %v163_v1 = vld [vmem:[%s654_s26 + $0x8] sm:$0x1]  ;;  %v164_v2 = vld [vmem:[%s654_s26 + $0x10] sm:$0xff]  ;;  %p527_p2 = por %p526_p1, %p525_p0 }
  0x1b   : > { %v165_v3 = vld [vmem:[%s654_s26 + $0x18] sm:$0x1]  ;;  %v166_v4 = vld [vmem:[%s654_s26 + $0x20] sm:$0xff]  ;;  %v167_v5 = vld [vmem:[%s654_s26 + $0x28] sm:$0x1]  ;;  %v265_v6 = vrot.slane %v162_v0, 1 }
  0x1c   : > { %v196_v7 = vld [vmem:[%s659_s29] sm:$0xff]  ;;  %v197_v8 = vld [vmem:[%s659_s29 + $0x10] sm:$0xff]  ;;  %v266_v10 = vrot.slane %v163_v1, 1  ;;  %v268_v11 = vrot.slane %v164_v2, 1  ;;  %v269_v12 = vrot.slane %v165_v3, 1  ;;  %v271_v16 = vrot.slane %v166_v4, 1  ;;  %p528_p3 = pnand %p527_p2, %p521_p13 }
  0x1d   : > { %v198_v9 = vld [vmem:[%s659_s29 + $0x20] sm:$0xff]  ;;  %v213_v13 = vmax.f32 %v162_v0, %v196_v7  ;;  %v214_v14 = vmax.f32 %v164_v2, %v197_v8  ;;  %v168_v17 = vld [vmem:[%s654_s26 + $0x30] sm:$0xff]  ;;  %v169_v18 = vld [vmem:[%s654_s26 + $0x38] sm:$0x1]  ;;  %v272_v22 = vrot.slane %v167_v5, 1 }
  0x1e   : > { %v215_v15 = vmax.f32 %v166_v4, %v198_v9  ;;  %v170_v19 = vld [vmem:[%s654_s26 + $0x40] sm:$0xff]  ;;  %v267_v20 = vsel %vm264_vm0, %v265_v6, %v266_v10  ;;  %v270_v21 = vsel %vm264_vm0, %v268_v11, %v269_v12  ;;  %v171_v23 = vld [vmem:[%s654_s26 + $0x48] sm:$0x1]  ;;  %v199_v24 = vld [vmem:[%s659_s29 + $0x30] sm:$0xff]  ;;  %v274_v26 = vrot.slane %v168_v17, 1 }
  0x1f   : > { %v200_v25 = vld [vmem:[%s659_s29 + $0x40] sm:$0xff]  ;;  %v333_v27 = vmax.f32 %v213_v13, %v267_v20  ;;  %v334_v28 = vmax.f32 %v214_v14, %v270_v21  ;;  %v216_v29 = vmax.f32 %v168_v17, %v199_v24  ;;  %v172_v31 = vld [vmem:[%s654_s26 + $0x50] sm:$0xff]  ;;  %v173_v32 = vld [vmem:[%s654_s26 + $0x58] sm:$0x1]  ;;  %v273_v34 = vsel %vm264_vm0, %v271_v16, %v272_v22 }
  0x20   : > { %v217_v30 = vmax.f32 %v170_v19, %v200_v25  ;;  %v174_v33 = vld [vmem:[%s654_s26 + $0x60] sm:$0xff]  ;;  %v275_v35 = vrot.slane %v169_v18, 1  ;;  %v277_v36 = vrot.slane %v170_v19, 1  ;;  %v278_v37 = vrot.slane %v171_v23, 1  ;;  %v201_v38 = vld [vmem:[%s659_s29 + $0x50] sm:$0xff] }
  0x21   : > { %v335_v39 = vmax.f32 %v215_v15, %v273_v34  ;;  %v350_v40 = vmax.f32 %v333_v27, %v334_v28  ;;  %v175_v41 = vld [vmem:[%s654_s26 + $0x68] sm:$0x1]  ;;  %v202_v42 = vld [vmem:[%s659_s29 + $0x60] sm:$0xff]  ;;  %v218_v43 = vmax.f32 %v172_v31, %v201_v38  ;;  %v280_v44 = vrot.slane %v172_v31, 1  ;;  %v176_v45 = vld [vmem:[%s654_s26 + $0x70] sm:$0xff] }
  0x22   : > { %v276_v46 = vsel %vm264_vm0, %v274_v26, %v275_v35  ;;  %v279_v47 = vsel %vm264_vm0, %v277_v36, %v278_v37  ;;  %v219_v48 = vmax.f32 %v174_v33, %v202_v42  ;;  %v281_v49 = vrot.slane %v173_v32, 1  ;;  %v177_v50 = vld [vmem:[%s654_s26 + $0x78] sm:$0x1]  ;;  %v178_v51 = vld [vmem:[%s654_s26 + $0x80] sm:$0xff]  ;;  %v203_v52 = vld [vmem:[%s659_s29 + $0x70] sm:$0xff] }
  0x23   : > { %v358_v53 = vmax.f32 %v350_v40, %v335_v39  ;;  %v336_v54 = vmax.f32 %v216_v29, %v276_v46  ;;  %v337_v55 = vmax.f32 %v217_v30, %v279_v47  ;;  %v283_v56 = vrot.slane %v174_v33, 1  ;;  %v179_v57 = vld [vmem:[%s654_s26 + $0x88] sm:$0x1]  ;;  %v204_v58 = vld [vmem:[%s659_s29 + $0x80] sm:$0xff]  ;;  %v180_v59 = vld [vmem:[%s654_s26 + $0x90] sm:$0xff] }
  0x24   : > { %v282_v60 = vsel %vm264_vm0, %v280_v44, %v281_v49  ;;  %v284_v61 = vrot.slane %v175_v41, 1  ;;  %v220_v62 = vmax.f32 %v176_v45, %v203_v52  ;;  %v221_v63 = vmax.f32 %v178_v51, %v204_v58  ;;  %v205_v0 = vld [vmem:[%s659_s29 + $0x90] sm:$0xff]  ;;  %v181_v5 = vld [vmem:[%s654_s26 + $0x98] sm:$0x1]  ;;  %v182_v6 = vld [vmem:[%s654_s26 + $0xa0] sm:$0xff] }
  0x25   : > { %367 = vst.msk [vmem:[%s701_s3] sm:$0xff] %vm366_vm1, %v358_v53  ;;  %v351_v1 = vmax.f32 %v335_v39, %v336_v54  ;;  %v338_v2 = vmax.f32 %v218_v43, %v282_v60  ;;  %v286_v3 = vrot.slane %v176_v45, 1  ;;  %v287_v4 = vrot.slane %v177_v50, 1  ;;  %v206_v7 = vld [vmem:[%s659_s29 + $0xa0] sm:$0xff]  ;;  %v183_v11 = vld [vmem:[%s654_s26 + $0xa8] sm:$0x1] }
  0x26   : > { %v285_v8 = vsel %vm264_vm0, %v283_v56, %v284_v61  ;;  %v289_v9 = vrot.slane %v178_v51, 1  ;;  %v290_v10 = vrot.slane %v179_v57, 1  ;;  %v222_v12 = vmax.f32 %v180_v59, %v205_v0  ;;  %v184_v13 = vld [vmem:[%s654_s26 + $0xb0] sm:$0xff]  ;;  %v186_v18 = vld [vmem:[%s654_s26 + $0xc0] sm:$0xff]  ;;  %v185_v25 = vld [vmem:[%s654_s26 + $0xb8] sm:$0x1] }
  0x27   : > { %v359_v14 = vmax.f32 %v351_v1, %v337_v55  ;;  %v339_v15 = vmax.f32 %v219_v48, %v285_v8  ;;  %v352_v16 = vmax.f32 %v337_v55, %v338_v2  ;;  %v288_v17 = vsel %vm264_vm0, %v286_v3, %v287_v4  ;;  %v207_v19 = vld [vmem:[%s659_s29 + $0xb0] sm:$0xff]  ;;  %v208_v20 = vld [vmem:[%s659_s29 + $0xc0] sm:$0xff]  ;;  %v187_v30 = vld [vmem:[%s654_s26 + $0xc8] sm:$0x1] }
  0x28   : > { %v291_v21 = vsel %vm264_vm0, %v289_v9, %v290_v10  ;;  %v340_v22 = vmax.f32 %v220_v62, %v288_v17  ;;  %v223_v23 = vmax.f32 %v182_v6, %v206_v7  ;;  %v292_v24 = vrot.slane %v180_v59, 1  ;;  %v188_v31 = vld [vmem:[%s654_s26 + $0xd0] sm:$0xff]  ;;  %v190_v36 = vld [vmem:[%s654_s26 + $0xe0] sm:$0xff]  ;;  %v189_v47 = vld [vmem:[%s654_s26 + $0xd8] sm:$0x1] }
  0x29   : > { %368 = vst.msk [vmem:[%s701_s3 + $0x8] sm:$0xff] %vm366_vm1, %v359_v14  ;;  %v360_v26 = vmax.f32 %v352_v16, %v339_v15  ;;  %v341_v27 = vmax.f32 %v221_v63, %v291_v21  ;;  %v293_v28 = vrot.slane %v181_v5, 1  ;;  %v295_v29 = vrot.slane %v182_v6, 1  ;;  %v209_v37 = vld [vmem:[%s659_s29 + $0xd0] sm:$0xff]  ;;  %v210_v38 = vld [vmem:[%s659_s29 + $0xe0] sm:$0xff] }
  0x2a   : > { %v353_v32 = vmax.f32 %v339_v15, %v340_v22  ;;  %v296_v33 = vrot.slane %v183_v11, 1  ;;  %v224_v34 = vmax.f32 %v184_v13, %v207_v19  ;;  %v225_v35 = vmax.f32 %v186_v18, %v208_v20  ;;  %v191_v48 = vld [vmem:[%s654_s26 + $0xe8] sm:$0x1]  ;;  %v192_v49 = vld [vmem:[%s654_s26 + $0xf0] sm:$0xff]  ;;  %v194_v54 = vld [vmem:[%s654_s26 + $0x100] sm:$0xff] }
  0x2b   : > { %369 = vst.msk [vmem:[%s701_s3 + $0x10] sm:$0xff] %vm366_vm1, %v360_v26  ;;  %v294_v39 = vsel %vm264_vm0, %v292_v24, %v293_v28  ;;  %v298_v40 = vrot.slane %v184_v13, 1  ;;  %v299_v41 = vrot.slane %v185_v25, 1  ;;  %v301_v42 = vrot.slane %v186_v18, 1  ;;  %v211_v55 = vld [vmem:[%s659_s29 + $0xf0] sm:$0xff]  ;;  %v212_v56 = vld [vmem:[%s659_s29 + $0x100] sm:$0xff] }
  0x2c   : > { %v361_v43 = vmax.f32 %v353_v32, %v341_v27  ;;  %v297_v44 = vsel %vm264_vm0, %v295_v29, %v296_v33  ;;  %v342_v45 = vmax.f32 %v222_v12, %v294_v39  ;;  %v302_v46 = vrot.slane %v187_v30, 1  ;;  %v193_v61 = vld [vmem:[%s654_s26 + $0xf8] sm:$0x1]  ;;  %v195_v4 = vld [vmem:[%s654_s26 + $0x108] sm:$0x1] }
  0x2d   : > { %v343_v50 = vmax.f32 %v223_v23, %v297_v44  ;;  %v300_v51 = vsel %vm264_vm0, %v298_v40, %v299_v41  ;;  %v226_v52 = vmax.f32 %v188_v31, %v209_v37  ;;  %v227_v53 = vmax.f32 %v190_v36, %v210_v38 }
  0x2e   : > { %370 = vst.msk [vmem:[%s701_s3 + $0x18] sm:$0xff] %vm366_vm1, %v361_v43  ;;  %v354_v57 = vmax.f32 %v341_v27, %v342_v45  ;;  %v303_v58 = vsel %vm264_vm0, %v301_v42, %v302_v46  ;;  %v344_v59 = vmax.f32 %v224_v34, %v300_v51  ;;  %v304_v60 = vrot.slane %v188_v31, 1 }
  0x2f   : > { %v345_v62 = vmax.f32 %v225_v35, %v303_v58  ;;  %v305_v63 = vrot.slane %v189_v47, 1  ;;  %v307_v0 = vrot.slane %v190_v36, 1  ;;  %v308_v1 = vrot.slane %v191_v48, 1 }
  0x30   : > { %v362_v2 = vmax.f32 %v354_v57, %v343_v50  ;;  %v355_v3 = vmax.f32 %v343_v50, %v344_v59  ;;  %v228_v5 = vmax.f32 %v192_v49, %v211_v55  ;;  %v229_v6 = vmax.f32 %v194_v54, %v212_v56 }
  0x31   : > { %v306_v7 = vsel %vm264_vm0, %v304_v60, %v305_v63  ;;  %v309_v8 = vsel %vm264_vm0, %v307_v0, %v308_v1  ;;  %v310_v9 = vrot.slane %v192_v49, 1  ;;  %v311_v10 = vrot.slane %v193_v61, 1 }
  0x32   : > { %371 = vst.msk [vmem:[%s701_s3 + $0x20] sm:$0xff] %vm366_vm1, %v362_v2  ;;  %v363_v11 = vmax.f32 %v355_v3, %v345_v62  ;;  %v346_v12 = vmax.f32 %v226_v52, %v306_v7  ;;  %v347_v13 = vmax.f32 %v227_v53, %v309_v8  ;;  %v313_v14 = vrot.slane %v194_v54, 1 }
  0x33   : > { %v312_v15 = vsel %vm264_vm0, %v310_v9, %v311_v10  ;;  %v314_v16 = vrot.slane %v195_v4, 1 }
  0x34   : > { %372 = vst.msk [vmem:[%s701_s3 + $0x28] sm:$0xff] %vm366_vm1, %v363_v11  ;;  %v356_v17 = vmax.f32 %v345_v62, %v346_v12  ;;  %v348_v18 = vmax.f32 %v228_v5, %v312_v15 }
  0x35   : > { %v315_v19 = vsel %vm264_vm0, %v313_v14, %v314_v16 }
  0x36   : > { %v364_v20 = vmax.f32 %v356_v17, %v347_v13  ;;  %v349_v21 = vmax.f32 %v229_v6, %v315_v19  ;;  %v357_v22 = vmax.f32 %v347_v13, %v348_v18 }
  0x38   : > { %373 = vst.msk [vmem:[%s701_s3 + $0x30] sm:$0xff] %vm366_vm1, %v364_v20  ;;  %v365_v23 = vmax.f32 %v357_v22, %v349_v21 }
  0x3a   : > { %374 = vst.msk [vmem:[%s701_s3 + $0x38] sm:$0xff] %vm366_vm1, %v365_v23 }
  0x3b   : > { %531 = shalt.err (!%p528_p3)
}
  0x3c   : > { %s532_s22 = scalar_lea.hbm %s755_s8, 1024  ;;  %s536_s25 = scalar_lea.hbm %s806_s2, 2048 }
  0x3d   : > { %p533_p4 = scmp.ne.s32.totalorder %s755_s8, %s532_s22  ;;  %p537_p9 = scmp.lt.u32.totalorder %s755_s8, %s806_s2 }
  0x3e   : > { %p538_p10 = scmp.lt.u32.totalorder %s536_s25, %s532_s22  ;;  %p540_p12 = scmp.lt.u32.totalorder %s532_s22, %s755_s8 }
  0x3f   : > { %p534_p7 = pnand %p533_p4, %p638_p5 }
  0x40   : > { %p539_p11 = por %p538_p10, %p537_p9 }
  0x41   : > { %p535_p8 = pneg %p534_p7 }
  0x42   : > { %p541_p13 = por %p540_p12, %p539_p11 }
  0x44   : > { %p542_p0 = pnand %p541_p13, %p535_p8 }
  0x46   : > { %545 = shalt.err (!%p542_p0)
}
  0x47   : > { %s583_s28 = smov 128   ;;  %s584_s29 = smov 8  }
  0x48   : > { %477 = dma.vmem_to_hbm [thread:$0]  (%p638_p5), %s750_s4, 1024, %s755_s8, %s763_s13, %s583_s28, %s583_s28, %s584_s29  }
  0x49 PF: > { %p483_p1 = scmp.ge.s32.totalorder %s580_s12, 2  ;;  %s404_s30 = sand.u32 1, %s568_s9  }
  0x4a   : > { %s405_s3 = scalar_lea.sflag [#allocation3], %s404_s30 }
  0x4b   : > { %p480_p2 = pnand %p483_p1, %p642_p6 }
  0x4d   : > { %563 = dma.done.wait (!%p480_p2), %s405_s3, 1024  }
  0x4e   : > { %565 = vsyncadd (!%p480_p2), %s405_s3, 4294966272  ;;  %p12_p3 = scmp.ge.s32.totalorder %s625_s15, 4   ;;  %s809_s9 = smov %s572_s10 }
  0x4f   : > { %s810_s10 = smov %s576_s11  ;;  %s811_s11 = smov %s636_s18 }
  0x50   : > { %s812_s12 = smov %s625_s15  ;;  %14 = sbr.rel (!%p12_p3) target bundleno = 3 (0x3), region = 66 }
  0x57   :  { %410 = vsyncpa [#allocation3], 1 }
  0x58   :  { %412 = vsyncpa [#allocation3 + $0x1], 1 }

// kernel: conv_tokenizer.5
= control target key start
LH: loop header
LB: loop body
LE: loop exit
PB: predicated region body
PF: predicated region fallthrough
CT: control target
= control target key end

     0   :  { %s4811_s12 = smov 0   ;;  %s4813_s13 = smov 0   ;;  %s5878_s0 = inlined_call_operand.vmem [shape: f32[2,18,18,32], index: 0, kind: input, shape index: {}]   ;;  %s5879_s1 = inlined_call_operand.vmem [shape: bf16[9,32,32], index: 1, kind: input, shape index: {}]   ;;  %s5880_s2 = inlined_call_operand.vmem [shape: f32[1,32], index: 2, kind: input, shape index: {}]   ;;  %s5881_s3 = inlined_call_operand.vmem [shape: f32[2,16,16,32], index: 3, kind: output, shape index: {}]  }
   0x1   :  { %s4815_s14 = smov 0  }
   0x2 LB: > { %s25_s15 = sadd.s32 1, %s4785_s13  ;;  %p3678_p0 = scmp.ge.s32.totalorder %s4789_s14, 1  ;;  %s4789_s14 = sphi %s4815_s14, %s13_s14   ;;  %s4785_s13 = sphi %s4813_s13, %s5941_s13   ;;  %s4781_s12 = sphi %s4811_s12, %s5940_s12  }
   0x3   : > { %p27_p1 = scmp.ge.s32.totalorder %s25_s15, 2  ;;  %p151_p2 = scmp.lt.s32.totalorder %s4789_s14, 3 }
   0x5   : > { %s5943_s15 = smov (%p27_p1, %s25_s15), 0  ;;  %p152_p3 = pnand %p3678_p0, %p151_p2 }
   0x7   : > { %155 = sbr.rel (%p152_p3) target bundleno = 535 (0x217), region = 32 }
   0xe   : > { %v4747_v0 = vld [vmem:[%s5879_s1 + $0x10] sm:$0xff]   ;;  %p180_p4 = scmp.lt.s32.totalorder %s4781_s12, 1  ;;  %v4835_v1 = vld [vmem:[%s5879_s1 + $0x40] sm:$0xff]   ;;  %v4749_v2 = vld [vmem:[%s5879_s1 + $0x18] sm:$0xff]   ;;  %vm284_vm0 = vsmask.f32 7424 }
   0xf   : > { %4138 = vmatprep.subr.bf16.mxu1 %v4747_v0  ;;  %4282 = vmatprep.subr.bf16.mxu0 %v4835_v1  ;;  %v4750_v3 = vld [vmem:[%s5879_s1 + $0x48] sm:$0xff]   ;;  %v4851_v4 = vld [vmem:[%s5879_s1] sm:$0xff]   ;;  %v4861_v5 = vld [vmem:[%s5879_s1 + $0x50] sm:$0xff]   ;;  %vm494_vm1 = vcmask 261120   ;;  %vm941_vm2 = vcmask 1046528  }
  0x10   : > { %s5945_s12 = smov (!%p180_p4, %s4781_s12), 1  ;;  %4139 = vmatpush3.bf16.msra.mxu1 %v4747_v0  ;;  %4283 = vmatpush3.bf16.msra.mxu0 %v4835_v1 }
  0x11   : > { %4140 = vmatprep.subr.bf16.mxu1 %v4749_v2  ;;  %s4722_s24 = smul.u32 432, %s5945_s12  ;;  %4284 = vmatprep.subr.bf16.mxu0 %v4750_v3  ;;  %s3975_s16 = sshll.u32 %s5945_s12, 8 }
  0x12   : > { %s5768_s19 = scalar_lea.vmem %s5881_s3, %s3975_s16 }
  0x13   : > { %s4856_s29 = scalar_lea.vmem %s5878_s0, %s4722_s24 }
  0x14   : > { %4141 = vmatpush3.bf16.msra.mxu1 %v4749_v2  ;;  %v200_v6 = vld [vmem:[%s4856_s29] sm:$0xff]  ;;  %v201_v7 = vld [vmem:[%s4856_s29 + $0x8] sm:$0xff]  ;;  %v202_v8 = vld [vmem:[%s4856_s29 + $0x10] sm:$0x3]  ;;  %4285 = vmatpush3.bf16.msra.mxu0 %v4750_v3 }
  0x15   : > { %v4866_v9 = vpack.c.bf16 %v201_v7, %v200_v6  ;;  %v4868_v10 = vpack.c.bf16 %v202_v8, %v202_v8  ;;  %4174 = vmatprep.subr.bf16.mxu1 %v4851_v4  ;;  %v3744_v11 = vld [vmem:[%s4856_s29 + $0x18] sm:$0xff]  ;;  %v3745_v12 = vld [vmem:[%s4856_s29 + $0x20] sm:$0xff]  ;;  %v3746_v13 = vld [vmem:[%s4856_s29 + $0x28] sm:$0x3]  ;;  %4318 = vmatprep.subr.bf16.mxu0 %v4861_v5 }
  0x16   : > { %v4874_v14 = vpack.c.bf16 %v3745_v12, %v3744_v11  ;;  %v4876_v15 = vpack.c.bf16 %v3746_v13, %v3746_v13  ;;  %v205_v16 = vld [vmem:[%s4856_s29 + $0x28] sm:$0x3]  ;;  %v3747_v17 = vld [vmem:[%s4856_s29 + $0x30] sm:$0xff]  ;;  %v3748_v18 = vld [vmem:[%s4856_s29 + $0x38] sm:$0xff] }
  0x17   : > { %v286_v19 = vshrl.u32 %v4866_v9, 16  ;;  %v288_v20 = vshll.u32 %v4866_v9, 16  ;;  %v293_v21 = vshll.u32 %v4868_v10, 16  ;;  %v4885_v22 = vpack.c.bf16 %v205_v16, %v205_v16  ;;  %v3749_v23 = vld [vmem:[%s4856_s29 + $0x40] sm:$0x3]  ;;  %v3750_v32 = vld [vmem:[%s4856_s29 + $0x48] sm:$0xff] }
  0x18   : > { %v1589_v24 = vshrl.u32 %v4874_v14, 16  ;;  %v1591_v25 = vshll.u32 %v4874_v14, 16  ;;  %v1596_v26 = vshll.u32 %v4876_v15, 16  ;;  %v4891_v27 = vpack.c.bf16 %v3748_v18, %v3747_v17  ;;  %v208_v28 = vld [vmem:[%s4856_s29 + $0x40] sm:$0x3]  ;;  %v3751_v33 = vld [vmem:[%s4856_s29 + $0x50] sm:$0xff] }
  0x19   : > { %v290_v29 = vrot.slane %v288_v20, 1  ;;  %v295_v30 = vrot.slane %v293_v21, 1  ;;  %v305_v31 = vshll.u32 %v4885_v22, 16  ;;  %v4897_v36 = vpack.c.bf16 %v3749_v23, %v3749_v23  ;;  %v3752_v38 = vld [vmem:[%s4856_s29 + $0x58] sm:$0x3]  ;;  %v3753_v47 = vld [vmem:[%s4856_s29 + $0x60] sm:$0xff] }
  0x1a   : > { %v1593_v34 = vrot.slane %v1591_v25, 1  ;;  %v1598_v35 = vrot.slane %v1596_v26, 1  ;;  %v1600_v37 = vshrl.u32 %v4891_v27, 16  ;;  %v1602_v41 = vshll.u32 %v4891_v27, 16  ;;  %v211_v46 = vld [vmem:[%s4856_s29 + $0x58] sm:$0x3] }
  0x1b   : > { %v291_v39 = vor.u32 %v290_v29, %v286_v19  ;;  %v307_v40 = vrot.slane %v305_v31, 1  ;;  %v4902_v42 = vpack.c.bf16 %v208_v28, %v208_v28  ;;  %v1607_v44 = vshll.u32 %v4897_v36, 16  ;;  %v3754_v48 = vld [vmem:[%s4856_s29 + $0x68] sm:$0xff]  ;;  %v3755_v53 = vld [vmem:[%s4856_s29 + $0x70] sm:$0x3]  ;;  %v3756_v63 = vld [vmem:[%s4856_s29 + $0x78] sm:$0xff] }
  0x1c   : > { %v1594_v43 = vor.u32 %v1593_v34, %v1589_v24  ;;  %v4905_v45 = vpack.c.bf16 %v3751_v33, %v3750_v32  ;;  %v1604_v50 = vrot.slane %v1602_v41, 1  ;;  %v4912_v52 = vpack.c.bf16 %v3752_v38, %v3752_v38  ;;  %v214_v54 = vld [vmem:[%s4856_s29 + $0x70] sm:$0x3]  ;;  %v3757_v7 = vld [vmem:[%s4856_s29 + $0x80] sm:$0xff]  ;;  %v3758_v8 = vld [vmem:[%s4856_s29 + $0x88] sm:$0x3] }
  0x1d   : > { %v296_v49 = vsel %vm284_vm0, %v291_v39, %v295_v30  ;;  %v317_v51 = vshll.u32 %v4902_v42, 16  ;;  %v1609_v57 = vrot.slane %v1607_v44, 1  ;;  %v4928_v0 = vpack.c.bf16 %v211_v46, %v211_v46  ;;  %v4753_v11 = vld [vmem:[%s5879_s1 + $0x58] sm:$0xff]   ;;  %v217_v17 = vld [vmem:[%s4856_s29 + $0x88] sm:$0x3]  ;;  %v3759_v23 = vld [vmem:[%s4856_s29 + $0x90] sm:$0xff] }
  0x1e   : > { %4142 = vmatprep.mubr.msk.bf16.mxu1 %vm494_vm1, %v296_v49  ;;  %v1599_v55 = vsel %vm284_vm0, %v1594_v43, %v1598_v35  ;;  %v308_v56 = vsel %vm284_vm0, %v1594_v43, %v307_v40  ;;  %v1611_v58 = vshrl.u32 %v4905_v45, 16  ;;  %v4922_v59 = vor.u32 %v1604_v50, %v1600_v37  ;;  %v3760_v24 = vld [vmem:[%s4856_s29 + $0x98] sm:$0xff]  ;;  %v3761_v25 = vld [vmem:[%s4856_s29 + $0xa0] sm:$0x3]  ;;  %v4754_v32 = vld [vmem:[%s5879_s1 + $0x8] sm:$0xff]  }
  0x1f   : > { %4286 = vmatprep.mubr.msk.bf16.mxu0 %vm494_vm1, %v1599_v55  ;;  %4143 = vmatmul.mubr.msk.bf16.vlgmr.msra.gmra.mrb[0].mxu1 %vm494_vm1, %v308_v56  ;;  %v319_v60 = vrot.slane %v317_v51, 1  ;;  %v1613_v61 = vshll.u32 %v4905_v45, 16  ;;  %v1618_v62 = vshll.u32 %v4912_v52, 16  ;;  %v4930_v2 = vpack.c.bf16 %v3754_v48, %v3753_v47  ;;  %v220_v26 = vld [vmem:[%s4856_s29 + $0xa0] sm:$0x3]  ;;  %v3762_v48 = vld [vmem:[%s4856_s29 + $0xa8] sm:$0xff] }
  0x20   : > { %4175 = vmatpush3.bf16.msra.mxu1 %v4851_v4  ;;  %v4932_v3 = vpack.c.bf16 %v3755_v53, %v3755_v53  ;;  %v4934_v6 = vpack.c.bf16 %v214_v54, %v214_v54  ;;  %v1610_v4 = vsel %vm284_vm0, %v4922_v59, %v1609_v57  ;;  %v329_v18 = vshll.u32 %v4928_v0, 16  ;;  %v3763_v54 = vld [vmem:[%s4856_s29 + $0xb0] sm:$0xff]  ;;  %v3764_v55 = vld [vmem:[%s4856_s29 + $0xb8] sm:$0x3] }
  0x21   : > { %v320_v12 = vsel %vm284_vm0, %v4922_v59, %v319_v60  ;;  %v1615_v13 = vrot.slane %v1613_v61, 1  ;;  %v1620_v16 = vrot.slane %v1618_v62, 1  ;;  %4287 = vmatmul.mubr.msk.bf16.vlgmr.msra.gmra.mrb[0].mxu0 %vm494_vm1, %v1610_v4  ;;  %v1622_v19 = vshrl.u32 %v4930_v2, 16  ;;  %4176 = vmatprep.subr.bf16.mxu1 %v4754_v32  ;;  %v223_v56 = vld [vmem:[%s4856_s29 + $0xb8] sm:$0x3] }
  0x22   : > { %4146 = vmatprep.mubr.msk.bf16.mxu1 %vm494_vm1, %v320_v12  ;;  %v1624_v20 = vshll.u32 %v4930_v2, 16  ;;  %v1629_v21 = vshll.u32 %v4932_v3, 16  ;;  %4319 = vmatpush3.bf16.msra.mxu0 %v4861_v5  ;;  %v341_v29 = vshll.u32 %v4934_v6, 16  ;;  %v4960_v30 = vpack.c.bf16 %v3757_v7, %v3756_v63  ;;  %v4972_v5 = vld [vmem:[%s5879_s1 + $0x60] sm:$0xff]  }
  0x23   : > { %v4957_v28 = vor.u32 %v1615_v13, %v1611_v58  ;;  %v4962_v31 = vpack.c.bf16 %v3758_v8, %v3758_v8  ;;  %v331_v33 = vrot.slane %v329_v18, 1  ;;  %4320 = vmatprep.subr.bf16.mxu0 %v4753_v11  ;;  %v4967_v37 = vpack.c.bf16 %v217_v17, %v217_v17  ;;  %v3766_v17 = vld [vmem:[%s4856_s29 + $0xc8] sm:$0xff]  ;;  %v3767_v18 = vld [vmem:[%s4856_s29 + $0xd0] sm:$0x3] }
  0x24   : > { %v1626_v34 = vrot.slane %v1624_v20, 1  ;;  %v1631_v35 = vrot.slane %v1629_v21, 1  ;;  %v343_v39 = vrot.slane %v341_v29, 1  ;;  %v1633_v40 = vshrl.u32 %v4960_v30, 16  ;;  %4177 = vmatpush3.bf16.msra.mxu1 %v4754_v32 }
  0x25   : > { %v1621_v38 = vsel %vm284_vm0, %v4957_v28, %v1620_v16  ;;  %v1635_v41 = vshll.u32 %v4960_v30, 16  ;;  %v332_v43 = vsel %vm284_vm0, %v4957_v28, %v331_v33  ;;  %v1640_v46 = vshll.u32 %v4962_v31, 16  ;;  %v3765_v16 = vld [vmem:[%s4856_s29 + $0xc0] sm:$0xff]  ;;  %v227_v33 = vld [vmem:[%s4856_s29 + $0xd8] sm:$0xff] }
  0x26   : > { %4290 = vmatprep.mubr.msk.bf16.mxu0 %vm494_vm1, %v1621_v38  ;;  %v4981_v44 = vor.u32 %v1626_v34, %v1622_v19  ;;  %v353_v47 = vshll.u32 %v4967_v37, 16  ;;  %v4987_v50 = vpack.c.bf16 %v3760_v24, %v3759_v23  ;;  %v4989_v51 = vpack.c.bf16 %v3761_v25, %v3761_v25  ;;  %4321 = vmatpush3.bf16.msra.mxu0 %v4753_v11  ;;  %v226_v24 = vld [vmem:[%s4856_s29 + $0xd0] sm:$0x3] }
  0x27   : > { %4147 = vmatmul.mubr.msk.bf16.gmra.mrb[4].mxu1 %vm494_vm1, %v332_v43  ;;  %v1637_v49 = vrot.slane %v1635_v41, 1  ;;  %v4991_v53 = vpack.c.bf16 %v220_v26, %v220_v26  ;;  %v1642_v60 = vrot.slane %v1640_v46, 1  ;;  %4354 = vmatprep.subr.bf16.mxu0 %v4972_v5  ;;  %v5009_v4 = vpack.c.bf16 %v3763_v54, %v3762_v48  ;;  %v5039_v41 = vld [vmem:[%s5879_s1 + $0x20] sm:$0xff]   ;;  %v229_v48 = vld [vmem:[%s4856_s29 + $0xe8] sm:$0x3] }
  0x28   : > { %v1632_v57 = vsel %vm284_vm0, %v4981_v44, %v1631_v35  ;;  %v344_v58 = vsel %vm284_vm0, %v4981_v44, %v343_v39  ;;  %v355_v61 = vrot.slane %v353_v47, 1  ;;  %v1644_v63 = vshrl.u32 %v4987_v50, 16  ;;  %4210 = vmatprep.subr.bf16.mxu1 %v5039_v41 }
  0x29   : > { %4150 = vmatprep.mubr.msk.bf16.mxu1 %vm494_vm1, %v344_v58  ;;  %v5002_v62 = vor.u32 %v1637_v49, %v1633_v40  ;;  %v1646_v7 = vshll.u32 %v4987_v50, 16  ;;  %v1651_v8 = vshll.u32 %v4989_v51, 16  ;;  %4291 = vmatmul.mubr.msk.bf16.gmra.mrb[4].mxu0 %vm494_vm1, %v1632_v57  ;;  %v365_v11 = vshll.u32 %v4991_v53, 16  ;;  %v228_v40 = vld [vmem:[%s4856_s29 + $0xe0] sm:$0xff] }
  0x2a   : > { %v5011_v12 = vpack.c.bf16 %v3764_v55, %v3764_v55  ;;  %v5013_v13 = vpack.c.bf16 %v223_v56, %v223_v56  ;;  %v1655_v26 = vshrl.u32 %v5009_v4, 16  ;;  %v1657_v29 = vshll.u32 %v5009_v4, 16 }
  0x2b   : > { %v1643_v19 = vsel %vm284_vm0, %v5002_v62, %v1642_v60  ;;  %v356_v20 = vsel %vm284_vm0, %v5002_v62, %v355_v61  ;;  %v1648_v21 = vrot.slane %v1646_v7, 1  ;;  %v1653_v23 = vrot.slane %v1651_v8, 1 }
  0x2c   : > { %4294 = vmatprep.mubr.msk.bf16.mxu0 %vm494_vm1, %v1643_v19  ;;  %v367_v25 = vrot.slane %v365_v11, 1  ;;  %v1662_v32 = vshll.u32 %v5011_v12, 16  ;;  %v377_v35 = vshll.u32 %v5013_v13, 16  ;;  %v5031_v38 = vpack.c.bf16 %v3766_v17, %v3765_v16  ;;  %v230_v11 = vld [vmem:[%s4856_s29 + $0xf0] sm:$0xff]  ;;  %v231_v16 = vld [vmem:[%s4856_s29 + $0xf8] sm:$0xff] }
  0x2d   : > { %v5028_v34 = vor.u32 %v1648_v21, %v1644_v63  ;;  %v5033_v39 = vpack.c.bf16 %v3767_v18, %v3767_v18  ;;  %v1659_v43 = vrot.slane %v1657_v29, 1  ;;  %v5041_v47 = vpack.c.bf16 %v226_v24, %v226_v24  ;;  %v232_v21 = vld [vmem:[%s4856_s29 + $0x100] sm:$0x3]  ;;  %v242_v63 = vld [vmem:[%s4856_s29 + $0x150] sm:$0xff] }
  0x2e   : > { %v1664_v46 = vrot.slane %v1662_v32, 1  ;;  %v379_v55 = vrot.slane %v377_v35, 1  ;;  %v1666_v56 = vshrl.u32 %v5031_v38, 16  ;;  %v1668_v58 = vshll.u32 %v5031_v38, 16 }
  0x2f   : > { %5904 = vst [vmem:[#allocation2_spill] sm:$0xff] %v5028_v34  ;;  %4151 = vmatmul.mubr.msk.bf16.gmra.mrb[8].mxu1 %vm494_vm1, %v356_v20  ;;  %v1654_v49 = vsel %vm284_vm0, %v5028_v34, %v1653_v23  ;;  %v368_v54 = vsel %vm284_vm0, %v5028_v34, %v367_v25  ;;  %v5052_v57 = vor.u32 %v1659_v43, %v1655_v26  ;;  %v1673_v60 = vshll.u32 %v5033_v39, 16 }
  0x30   : > { %4154 = vmatprep.mubr.msk.bf16.mxu1 %vm494_vm1, %v368_v54  ;;  %v389_v61 = vshll.u32 %v5041_v47, 16  ;;  %v5058_v7 = vpack.c.bf16 %v228_v40, %v227_v33  ;;  %v5060_v8 = vpack.c.bf16 %v229_v48, %v229_v48  ;;  %v1670_v18 = vrot.slane %v1668_v58, 1  ;;  %v234_v40 = vld [vmem:[%s4856_s29 + $0x110] sm:$0xff]  ;;  %v235_v48 = vld [vmem:[%s4856_s29 + $0x118] sm:$0x3] }
  0x31   : > { %5905 = vst [vmem:[#allocation3_spill] sm:$0xff] %v5052_v57  ;;  %4295 = vmatmul.mubr.msk.bf16.gmra.mrb[8].mxu0 %vm494_vm1, %v1654_v49  ;;  %v1665_v17 = vsel %vm284_vm0, %v5052_v57, %v1664_v46  ;;  %v5882_v19 = vrot.slane %v4874_v14, 1  ;;  %v2056_v20 = vrot.slane %v4876_v15, 1  ;;  %v380_v23 = vsel %vm284_vm0, %v5052_v57, %v379_v55  ;;  %v233_v15 = vld [vmem:[%s4856_s29 + $0x108] sm:$0xff]  ;;  %v236_v49 = vld [vmem:[%s4856_s29 + $0x120] sm:$0xff] }
  0x32   : > { %4298 = vmatprep.mubr.msk.bf16.mxu0 %vm494_vm1, %v1665_v17  ;;  %v1675_v24 = vrot.slane %v1673_v60, 1  ;;  %v391_v25 = vrot.slane %v389_v61, 1  ;;  %v396_v26 = vshll.u32 %v5058_v7, 16  ;;  %v5074_v29 = vor.u32 %v1670_v18, %v1666_v56  ;;  %v237_v56 = vld [vmem:[%s4856_s29 + $0x128] sm:$0xff]  ;;  %v244_v57 = vld [vmem:[%s4856_s29 + $0x160] sm:$0x3] }
  0x33   : > { %v394_v32 = vshrl.u32 %v5058_v7, 16  ;;  %v401_v33 = vshll.u32 %v5060_v8, 16  ;;  %v5078_v35 = vpack.c.bf16 %v231_v16, %v230_v11  ;;  %v5082_v46 = vpack.c.bf16 %v232_v21, %v232_v21 }
  0x34   : > { %5906 = vst [vmem:[#allocation4_spill] sm:$0xff] %v5074_v29  ;;  %v398_v43 = vrot.slane %v396_v26, 1  ;;  %v392_v54 = vsel %vm284_vm0, %v5074_v29, %v391_v25  ;;  %v1676_v58 = vsel %vm284_vm0, %v5074_v29, %v1675_v24  ;;  %v2057_v60 = vsel %vm941_vm2, %v5882_v19, %v2056_v20 }
  0x35   : > { %v406_v55 = vshrl.u32 %v5078_v35, 16  ;;  %v408_v61 = vshll.u32 %v5078_v35, 16  ;;  %v413_v11 = vshll.u32 %v5082_v46, 16  ;;  %v403_v17 = vrot.slane %v401_v33, 1 }
  0x36   : > { %v5099_v16 = vor.u32 %v398_v43, %v394_v32  ;;  %v5101_v18 = vpack.c.bf16 %v234_v40, %v233_v15  ;;  %v5103_v21 = vpack.c.bf16 %v235_v48, %v235_v48  ;;  %v5106_v20 = vpack.c.bf16 %v237_v56, %v236_v49  ;;  %v239_v40 = vld [vmem:[%s4856_s29 + $0x138] sm:$0xff]  ;;  %v240_v43 = vld [vmem:[%s4856_s29 + $0x140] sm:$0xff] }
  0x37   : > { %4155 = vmatmul.mubr.msk.bf16.gmra.mrb[12].mxu1 %vm494_vm1, %v380_v23  ;;  %v238_v23 = vld [vmem:[%s4856_s29 + $0x130] sm:$0x3]  ;;  %v410_v24 = vrot.slane %v408_v61, 1  ;;  %v415_v25 = vrot.slane %v413_v11, 1  ;;  %v5110_v26 = vrot.slane %v4891_v27, 1  ;;  %v5113_v32 = vrot.slane %v4905_v45, 1 }
  0x38   : > { %4158 = vmatprep.mubr.msk.bf16.mxu1 %vm494_vm1, %v392_v54  ;;  %5907 = vst [vmem:[#allocation5_spill] sm:$0xff] %v5099_v16  ;;  %v2062_v33 = vrot.slane %v4912_v52, 1  ;;  %v420_v15 = vshll.u32 %v5101_v18, 16  ;;  %v425_v49 = vshll.u32 %v5103_v21, 16  ;;  %v5123_v54 = vpack.c.bf16 %v238_v23, %v238_v23 }
  0x39   : > { %4299 = vmatmul.mubr.msk.bf16.gmra.mrb[12].mxu0 %vm494_vm1, %v1676_v58  ;;  %5908 = vst [vmem:[#allocation6_spill] sm:$0xff] %v5110_v26  ;;  %5909 = vst [vmem:[#allocation7_spill] sm:$0xff] %v5113_v32  ;;  %v5120_v48 = vor.u32 %v410_v24, %v406_v55  ;;  %v432_v56 = vshll.u32 %v5106_v20, 16  ;;  %v241_v58 = vld [vmem:[%s4856_s29 + $0x148] sm:$0x3]  ;;  %v404_v61 = vsel %vm284_vm0, %v5099_v16, %v403_v17  ;;  %v418_v52 = vshrl.u32 %v5101_v18, 16 }
  0x3a   : > { %4322 = vmatprep.mubr.msk.bf16.mxu0 %vm494_vm1, %v2057_v60  ;;  %v422_v11 = vrot.slane %v420_v15, 1  ;;  %v430_v19 = vshrl.u32 %v5106_v20, 16  ;;  %v243_v60 = vld [vmem:[%s4856_s29 + $0x158] sm:$0xff]  ;;  %v437_v23 = vshll.u32 %v5123_v54, 16  ;;  %v5136_v29 = vpack.c.bf16 %v240_v43, %v239_v40 }
  0x3b   : > { %5910 = vst [vmem:[#allocation8_spill] sm:$0xff] %v5120_v48  ;;  %v416_v55 = vsel %vm284_vm0, %v5120_v48, %v415_v25  ;;  %v434_v24 = vrot.slane %v432_v56, 1  ;;  %v5911_v17 = vrot.slane %v4897_v36, 1  ;;  %v2063_v16 = vsel %vm941_vm2, %v5113_v32, %v2062_v33  ;;  %v4757_v36 = vld [vmem:[%s5879_s1 + $0x68] sm:$0xff]  }
  0x3c   : > { %v427_v34 = vrot.slane %v425_v49, 1  ;;  %v5147_v25 = vor.u32 %v422_v11, %v418_v52  ;;  %v5149_v56 = vpack.c.bf16 %v241_v58, %v241_v58  ;;  %v444_v40 = vshll.u32 %v5136_v29, 16  ;;  %v245_v33 = vld [vmem:[%s4856_s29 + $0x168] sm:$0xff]  ;;  %v246_v49 = vld [vmem:[%s4856_s29 + $0x170] sm:$0xff] }
  0x3d   : > { %v2060_v15 = vsel %vm941_vm2, %v5110_v26, %v5911_v17  ;;  %v5152_v43 = vpack.c.bf16 %v243_v60, %v242_v63  ;;  %v439_v17 = vrot.slane %v437_v23, 1  ;;  %v5159_v48 = vpack.c.bf16 %v244_v57, %v244_v57 }
  0x3e   : > { %5912 = vst [vmem:[#allocation9_spill] sm:$0xff] %v5147_v25  ;;  %v5165_v58 = vrot.slane %v4930_v2, 1  ;;  %v2065_v63 = vrot.slane %v4932_v3, 1  ;;  %v2068_v57 = vrot.slane %v4962_v31, 1  ;;  %v442_v11 = vshrl.u32 %v5136_v29, 16  ;;  %v5184_v3 = vld [vmem:[%s5879_s1 + $0x70] sm:$0xff]  }
  0x3f   : > { %4159 = vmatmul.mubr.msk.bf16.gmra.mrb[16].mxu1 %vm494_vm1, %v404_v61  ;;  %v5157_v61 = vor.u32 %v434_v24, %v430_v19  ;;  %v456_v52 = vshll.u32 %v5152_v43, 16  ;;  %v5172_v19 = vrot.slane %v4960_v30, 1  ;;  %v428_v60 = vsel %vm284_vm0, %v5147_v25, %v427_v34  ;;  %v247_v34 = vld [vmem:[%s4856_s29 + $0x178] sm:$0x3] }
  0x40   : > { %4162 = vmatprep.mubr.msk.bf16.mxu1 %vm494_vm1, %v416_v55  ;;  %5914 = vst [vmem:[#allocation11_spill] sm:$0xff] %v5165_v58  ;;  %v446_v55 = vrot.slane %v444_v40, 1  ;;  %v449_v24 = vshll.u32 %v5149_v56, 16  ;;  %v5179_v23 = vpack.c.bf16 %v246_v49, %v245_v33  ;;  %v454_v31 = vshrl.u32 %v5152_v43, 16 }
  0x41   : > { %5913 = vst [vmem:[#allocation10_spill] sm:$0xff] %v5157_v61  ;;  %4323 = vmatmul.mubr.msk.bf16.vlgmr.msra.gmra.mrb[0].mxu0 %vm494_vm1, %v2060_v15  ;;  %v461_v15 = vshll.u32 %v5159_v48, 16  ;;  %v2066_v40 = vsel %vm941_vm2, %v5165_v58, %v2065_v63  ;;  %v2069_v33 = vsel %vm941_vm2, %v5172_v19, %v2068_v57  ;;  %v946_v63 = vrot.slane %v4885_v22, 1 }
  0x42   : > { %4355 = vmatpush3.bf16.msra.mxu0 %v4972_v5  ;;  %4326 = vmatprep.mubr.msk.bf16.mxu0 %vm494_vm1, %v2063_v16  ;;  %v440_v5 = vsel %vm284_vm0, %v5157_v61, %v439_v17  ;;  %v458_v16 = vrot.slane %v456_v52, 1  ;;  %v5197_v49 = vor.u32 %v446_v55, %v442_v11  ;;  %v451_v17 = vrot.slane %v449_v24, 1 }
  0x43   : > { %4356 = vmatprep.subr.bf16.mxu0 %v4757_v36  ;;  %v5199_v61 = vpack.c.bf16 %v247_v34, %v247_v34  ;;  %v468_v52 = vshll.u32 %v5179_v23, 16  ;;  %v463_v25 = vrot.slane %v461_v15, 1  ;;  %v2071_v57 = vrot.slane %v4989_v51, 1  ;;  %v3770_v15 = vld [vmem:[%s4856_s29 + $0xe8] sm:$0x3] }
  0x44   : > { %v5213_v11 = vrot.slane %v5009_v4, 1  ;;  %v2074_v55 = vrot.slane %v5011_v12, 1  ;;  %v452_v24 = vsel %vm284_vm0, %v5197_v49, %v451_v17  ;;  %v5916_v17 = vrot.slane %v4874_v14, 1 }
  0x45   : > { %v470_v22 = vrot.slane %v468_v52, 1  ;;  %v949_v52 = vrot.slane %v4902_v42, 1 }
  0x46   : > { %4357 = vmatpush3.bf16.msra.mxu0 %v4757_v36  ;;  %v5209_v36 = vrot.slane %v4987_v50, 1  ;;  %v2075_v12 = vsel %vm941_vm2, %v5213_v11, %v2074_v55  ;;  %v955_v55 = vrot.slane %v4934_v6, 1  ;;  %v5258_v6 = vrot.slane %v5058_v7, 1 }
  0x47   : > { %4163 = vmatmul.mubr.msk.bf16.gmra.mrb[20].mxu1 %vm494_vm1, %v428_v60  ;;  %4390 = vmatprep.subr.bf16.mxu0 %v5184_v3  ;;  %v5203_v60 = vor.u32 %v458_v16, %v454_v31  ;;  %v473_v31 = vshll.u32 %v5199_v61, 16 }
  0x48   : > { %4166 = vmatprep.mubr.msk.bf16.mxu1 %vm494_vm1, %v440_v5  ;;  %v466_v5 = vshrl.u32 %v5179_v23, 16  ;;  %v2072_v51 = vsel %vm941_vm2, %v5209_v36, %v2071_v57  ;;  %v952_v57 = vrot.slane %v4928_v0, 1 }
  0x49   : > { %4327 = vmatmul.mubr.msk.bf16.gmra.mrb[4].mxu0 %vm494_vm1, %v2066_v40  ;;  %v464_v16 = vsel %vm284_vm0, %v5203_v60, %v463_v25  ;;  %v475_v40 = vrot.slane %v473_v31, 1  ;;  %v5236_v25 = vsel %vm941_vm2, %v5916_v17, %v946_v63  ;;  %v3773_v31 = vld [vmem:[%s4856_s29 + $0x100] sm:$0x3]  ;;  %v5281_v17 = vrot.slane %v5078_v35, 1 }
  0x4a   : > { %4330 = vmatprep.mubr.msk.bf16.mxu0 %vm494_vm1, %v2069_v33  ;;  %v5229_v34 = vor.u32 %v470_v22, %v466_v5  ;;  %v5231_v33 = vpack.c.bf16 %v3770_v15, %v3770_v15  ;;  %v2077_v5 = vrot.slane %v5033_v39, 1  ;;  %v5249_v22 = vsel %vm941_vm2, %v5110_v26, %v949_v52  ;;  %v3791_v26 = vld [vmem:[%s4856_s29 + $0x190] sm:$0x3] }
  0x4b   : > { %v5253_v42 = vsel %vm941_vm2, %v5113_v32, %v952_v57  ;;  %v5264_v39 = vsel %vm941_vm2, %v5165_v58, %v955_v55  ;;  %v5285_v57 = vrot.slane %v5101_v18, 1  ;;  %v3789_v58 = vld [vmem:[%s4856_s29 + $0x180] sm:$0xff]  ;;  %v3790_v32 = vld [vmem:[%s4856_s29 + $0x188] sm:$0xff] }
  0x4c   : > { %5915 = vst [vmem:[#allocation12_spill] sm:$0xff] %v5231_v33  ;;  %v476_v0 = vsel %vm284_vm0, %v5229_v34, %v475_v40  ;;  %v2080_v63 = vrot.slane %v5231_v33, 1 }
  0x4f   : > { %4167 = vmatmul.mubr.msk.bf16.gmra.mrb[24].mxu1 %vm494_vm1, %v452_v24  ;;  %v5244_v24 = vrot.slane %v5031_v38, 1 }
  0x50   : > { %4170 = vmatprep.mubr.msk.bf16.mxu1 %vm494_vm1, %v464_v16  ;;  %v3776_v16 = vld [vmem:[%s4856_s29 + $0x118] sm:$0x3] }
  0x51   : > { %4331 = vmatmul.mubr.msk.bf16.gmra.mrb[8].mxu0 %vm494_vm1, %v2072_v51  ;;  %v2078_v15 = vsel %vm941_vm2, %v5244_v24, %v2077_v5  ;;  %v5270_v51 = vpack.c.bf16 %v3773_v31, %v3773_v31  ;;  %v5276_v40 = vpack.c.bf16 %v3776_v16, %v3776_v16  ;;  %v3779_v5 = vld [vmem:[%s4856_s29 + $0x130] sm:$0x3] }
  0x52   : > { %4334 = vmatprep.mubr.msk.bf16.mxu0 %vm494_vm1, %v2075_v12  ;;  %v2081_v12 = vsel %vm941_vm2, %v5258_v6, %v2080_v63  ;;  %v4758_v63 = vld [vmem:[%s5879_s1 + $0x28] sm:$0xff]   ;;  %v5297_v16 = vpack.c.bf16 %v3779_v5, %v3779_v5  ;;  %v5318_v5 = vrot.slane %v5136_v29, 1 }
  0x53   : > { %5917 = vst [vmem:[#allocation13_spill] sm:$0xff] %v5270_v51  ;;  %5918 = vst [vmem:[#allocation14_spill] sm:$0xff] %v5276_v40  ;;  %v2083_v52 = vrot.slane %v5270_v51, 1  ;;  %v2086_v55 = vrot.slane %v5276_v40, 1  ;;  %v5309_v40 = vld [vmem:[%s5879_s1 + $0x30] sm:$0xff]  }
  0x54   : > { %5919 = vst [vmem:[#allocation15_spill] sm:$0xff] %v5297_v16  ;;  %v3788_v51 = vld [vmem:[%s4856_s29 + $0x178] sm:$0x3] }
  0x55   : > { %v2084_v31 = vsel %vm941_vm2, %v5281_v17, %v2083_v52  ;;  %v2089_v52 = vrot.slane %v5297_v16, 1  ;;  %v5339_v16 = vrot.slane %v5152_v43, 1 }
  0x57   : > { %4171 = vmatmul.mubr.msk.bf16.gmra.mrb[28].mxu1 %vm494_vm1, %v476_v0  ;;  %v3782_v0 = vld [vmem:[%s4856_s29 + $0x148] sm:$0x3] }
  0x58   : > { %4178 = vmatprep.mubr.msk.bf16.mxu1 %vm494_vm1, %v4866_v9 }
  0x59   : > { %4335 = vmatmul.mubr.msk.bf16.gmra.mrb[12].mxu0 %vm494_vm1, %v2078_v15  ;;  %v2087_v15 = vsel %vm941_vm2, %v5285_v57, %v2086_v55 }
  0x5a   : > { %4338 = vmatprep.mubr.msk.bf16.mxu0 %vm494_vm1, %v2081_v12  ;;  %v5304_v12 = vpack.c.bf16 %v3782_v0, %v3782_v0  ;;  %v3785_v0 = vld [vmem:[%s4856_s29 + $0x160] sm:$0x3] }
  0x5c   : > { %5920 = vst [vmem:[#allocation16_spill] sm:$0xff] %v5304_v12  ;;  %v2092_v55 = vrot.slane %v5304_v12, 1 }
  0x5e   : > { %v2093_v12 = vsel %vm941_vm2, %v5318_v5, %v2092_v55  ;;  %v5355_v55 = vpack.c.bf16 %v3791_v26, %v3791_v26 }
  0x5f   : > { %4179 = vmatmul.mubr.msk.bf16.vlgmr.msra.gmra.mrb[0].mxu1 %vm494_vm1, %v4874_v14 }
  0x60   : > { %4211 = vmatpush3.bf16.msra.mxu1 %v5039_v41  ;;  %4182 = vmatprep.mubr.msk.bf16.mxu1 %vm494_vm1, %v4891_v27  ;;  %v5314_v41 = vrot.slane %v5106_v20, 1 }
  0x61   : > { %4212 = vmatprep.subr.bf16.mxu1 %v4758_v63  ;;  %4339 = vmatmul.mubr.msk.bf16.gmra.mrb[16].mxu0 %vm494_vm1, %v2084_v31 }
  0x62   : > { %4342 = vmatprep.mubr.msk.bf16.mxu0 %vm494_vm1, %v2087_v15  ;;  %v2090_v31 = vsel %vm941_vm2, %v5314_v41, %v2089_v52  ;;  %v5328_v15 = vpack.c.bf16 %v3785_v0, %v3785_v0  ;;  %v5343_v52 = vrot.slane %v5179_v23, 1 }
  0x64   : > { %4213 = vmatpush3.bf16.msra.mxu1 %v4758_v63  ;;  %5921 = vst [vmem:[#allocation17_spill] sm:$0xff] %v5328_v15  ;;  %v5334_v63 = vpack.c.bf16 %v3788_v51, %v3788_v51  ;;  %v2095_v33 = vrot.slane %v5328_v15, 1  ;;  %v2101_v15 = vrot.slane %v5355_v55, 1 }
  0x65   : > { %4246 = vmatprep.subr.bf16.mxu1 %v5309_v40 }
  0x66   : > { %5922 = vst [vmem:[#allocation18_spill] sm:$0xff] %v5334_v63  ;;  %v2098_v0 = vrot.slane %v5334_v63, 1  ;;  %v2096_v51 = vsel %vm941_vm2, %v5339_v16, %v2095_v33  ;;  %v943_v33 = vrot.slane %v4868_v10, 1  ;;  %v958_v10 = vrot.slane %v4967_v37, 1 }
  0x67   : > { %4183 = vmatmul.mubr.msk.bf16.gmra.mrb[4].mxu1 %vm494_vm1, %v4905_v45  ;;  %v964_v37 = vrot.slane %v5013_v13, 1  ;;  %v3903_v13 = vld [vmem:[%s4856_s29 + $0x198] sm:$0xff] }
  0x68   : > { %4186 = vmatprep.mubr.msk.bf16.mxu1 %vm494_vm1, %v4930_v2 }
  0x69   : > { %4343 = vmatmul.mubr.msk.bf16.gmra.mrb[20].mxu0 %vm494_vm1, %v2090_v31  ;;  %v2099_v31 = vsel %vm941_vm2, %v5343_v52, %v2098_v0  ;;  %v967_v0 = vrot.slane %v5041_v47, 1 }
  0x6a   : > { %4346 = vmatprep.mubr.msk.bf16.mxu0 %vm494_vm1, %v2093_v12  ;;  %v5353_v12 = vpack.c.bf16 %v3790_v32, %v3789_v58  ;;  %v4761_v32 = vld [vmem:[%s5879_s1 + $0x78] sm:$0xff]   ;;  %v5390_v58 = vld [vmem:[%s5879_s1 + $0x80] sm:$0xff]  }
  0x6b   : > { %v968_v47 = vsel %vm941_vm2, %v5244_v24, %v967_v0 }
  0x6c   : > { %v2100_v63 = vrot.slane %v5353_v12, 1 }
  0x6e   : > { %v2102_v26 = vsel %vm941_vm2, %v2100_v63, %v2101_v15 }
  0x6f   : > { %4187 = vmatmul.mubr.msk.bf16.gmra.mrb[8].mxu1 %vm494_vm1, %v4960_v30 }
  0x70   : > { %4190 = vmatprep.mubr.msk.bf16.mxu1 %vm494_vm1, %v4987_v50 }
  0x71   : > { %4347 = vmatmul.mubr.msk.bf16.gmra.mrb[24].mxu0 %vm494_vm1, %v2096_v51  ;;  %v3866_v51 = vld [vmem:[%s4856_s29 + $0x70] sm:$0x3] }
  0x72   : > { %4350 = vmatprep.mubr.msk.bf16.mxu0 %vm494_vm1, %v2099_v31  ;;  %v965_v31 = vsel %vm941_vm2, %v5213_v11, %v964_v37  ;;  %v3872_v37 = vld [vmem:[%s4856_s29 + $0xa0] sm:$0x3] }
  0x73   : > { %v5489_v0 = vpack.c.bf16 %v3872_v37, %v3872_v37  ;;  %v5923_v37 = vld [vmem:[#allocation2_spill] sm:$0xff] }
  0x77   : > { %4191 = vmatmul.mubr.msk.bf16.gmra.mrb[12].mxu1 %vm494_vm1, %v5009_v4 }
  0x78   : > { %4194 = vmatprep.mubr.msk.bf16.mxu1 %vm494_vm1, %v5031_v38 }
  0x79   : > { %4351 = vmatmul.mubr.msk.bf16.gmra.mrb[28].mxu0 %vm494_vm1, %v2102_v26  ;;  %v3904_v26 = vld [vmem:[%s4856_s29 + $0x1a0] sm:$0xff] }
  0x7a   : > { %4358 = vmatprep.mubr.msk.bf16.mxu0 %vm494_vm1, %v4891_v27 }
  0x7f   : > { %4195 = vmatmul.mubr.msk.bf16.gmra.mrb[16].mxu1 %vm494_vm1, %v5058_v7 }
  0x80   : > { %4198 = vmatprep.mubr.msk.bf16.mxu1 %vm494_vm1, %v5078_v35 }
  0x81   : > { %4359 = vmatmul.mubr.msk.bf16.vlgmr.msra.gmra.mrb[0].mxu0 %vm494_vm1, %v4905_v45 }
  0x82   : > { %4391 = vmatpush3.bf16.msra.mxu0 %v5184_v3  ;;  %4362 = vmatprep.mubr.msk.bf16.mxu0 %vm494_vm1, %v4930_v2  ;;  %v942_v3 = vrot.slane %v4866_v9, 1  ;;  %v4762_v9 = vld [vmem:[%s5879_s1 + $0x38] sm:$0xff]  }
  0x83   : > { %4392 = vmatprep.subr.bf16.mxu0 %v4761_v32 }
  0x84   : > { %v944_v15 = vsel %vm941_vm2, %v942_v3, %v943_v33  ;;  %v5466_v33 = vpack.c.bf16 %v3866_v51, %v3866_v51 }
  0x86   : > { %4393 = vmatpush3.bf16.msra.mxu0 %v4761_v32 }
  0x87   : > { %4199 = vmatmul.mubr.msk.bf16.gmra.mrb[20].mxu1 %vm494_vm1, %v5101_v18  ;;  %4426 = vmatprep.subr.bf16.mxu0 %v5390_v58 }
  0x88   : > { %4202 = vmatprep.mubr.msk.bf16.mxu1 %vm494_vm1, %v5106_v20 }
  0x89   : > { %4363 = vmatmul.mubr.msk.bf16.gmra.mrb[4].mxu0 %vm494_vm1, %v4960_v30 }
  0x8a   : > { %4366 = vmatprep.mubr.msk.bf16.mxu0 %vm494_vm1, %v4987_v50 }
  0x8f   : > { %4203 = vmatmul.mubr.msk.bf16.gmra.mrb[24].mxu1 %vm494_vm1, %v5136_v29 }
  0x90   : > { %4206 = vmatprep.mubr.msk.bf16.mxu1 %vm494_vm1, %v5152_v43 }
  0x91   : > { %4367 = vmatmul.mubr.msk.bf16.gmra.mrb[8].mxu0 %vm494_vm1, %v5009_v4 }
  0x92   : > { %4370 = vmatprep.mubr.msk.bf16.mxu0 %vm494_vm1, %v5031_v38 }
  0x97   : > { %4207 = vmatmul.mubr.msk.bf16.gmra.mrb[28].mxu1 %vm494_vm1, %v5179_v23 }
  0x98   : > { %4214 = vmatprep.mubr.msk.bf16.mxu1 %vm494_vm1, %v944_v15  ;;  %v5470_v15 = vpack.c.bf16 %v3904_v26, %v3903_v13  ;;  %v976_v26 = vrot.slane %v5103_v21, 1 }
  0x99   : > { %4371 = vmatmul.mubr.msk.bf16.gmra.mrb[12].mxu0 %vm494_vm1, %v5058_v7 }
  0x9a   : > { %4374 = vmatprep.mubr.msk.bf16.mxu0 %vm494_vm1, %v5078_v35  ;;  %v977_v21 = vsel %vm941_vm2, %v5285_v57, %v976_v26 }
  0x9f   : > { %4215 = vmatmul.mubr.msk.bf16.vlgmr.msra.gmra.mrb[0].mxu1 %vm494_vm1, %v5236_v25  ;;  %v961_v25 = vrot.slane %v4991_v53, 1 }
  0xa0   : > { %4247 = vmatpush3.bf16.msra.mxu1 %v5309_v40  ;;  %4218 = vmatprep.mubr.msk.bf16.mxu1 %vm494_vm1, %v5249_v22  ;;  %v3860_v22 = vld [vmem:[%s4856_s29 + $0x40] sm:$0x3]  ;;  %v3863_v40 = vld [vmem:[%s4856_s29 + $0x58] sm:$0x3] }
  0xa1   : > { %4248 = vmatprep.subr.bf16.mxu1 %v4762_v9  ;;  %4375 = vmatmul.mubr.msk.bf16.gmra.mrb[16].mxu0 %vm494_vm1, %v5101_v18  ;;  %v5464_v32 = vpack.c.bf16 %v3863_v40, %v3863_v40 }
  0xa2   : > { %4378 = vmatprep.mubr.msk.bf16.mxu0 %vm494_vm1, %v5106_v20 }
  0xa4   : > { %4249 = vmatpush3.bf16.msra.mxu1 %v4762_v9  ;;  %v970_v9 = vrot.slane %v5060_v8, 1 }
  0xa5   : > { %4462 = vmatprep.subr.bf16.mxu1 %v4835_v1  ;;  %v959_v1 = vsel %vm941_vm2, %v5172_v19, %v958_v10  ;;  %v2720_v10 = vshll.u32 %v5464_v32, 16 }
  0xa6   : > { %v971_v40 = vsel %vm941_vm2, %v5258_v6, %v970_v9  ;;  %v4764_v9 = vld [vmem:[%s5879_s1 + $0x88] sm:$0xff]  }
  0xa7   : > { %4219 = vmatmul.mubr.msk.bf16.gmra.mrb[4].mxu1 %vm494_vm1, %v5253_v42  ;;  %v5445_v42 = vpack.c.bf16 %v3860_v22, %v3860_v22  ;;  %v2731_v22 = vshll.u32 %v5466_v33, 16  ;;  %v2722_v8 = vrot.slane %v2720_v10, 1  ;;  %v979_v10 = vrot.slane %v5123_v54, 1 }
  0xa8   : > { %4222 = vmatprep.mubr.msk.bf16.mxu1 %vm494_vm1, %v5264_v39  ;;  %v962_v39 = vsel %vm941_vm2, %v5209_v36, %v961_v25 }
  0xa9   : > { %4379 = vmatmul.mubr.msk.bf16.gmra.mrb[20].mxu0 %vm494_vm1, %v5136_v29  ;;  %v2709_v53 = vshll.u32 %v5445_v42, 16  ;;  %v2723_v51 = vsel %vm284_vm0, %v4957_v28, %v2722_v8  ;;  %v980_v54 = vsel %vm941_vm2, %v5314_v41, %v979_v10 }
  0xaa   : > { %4382 = vmatprep.mubr.msk.bf16.mxu0 %vm494_vm1, %v5152_v43 }
  0xab   : > { %v2711_v3 = vrot.slane %v2709_v53, 1 }
  0xad   : > { %v2712_v25 = vsel %vm284_vm0, %v4922_v59, %v2711_v3  ;;  %v2733_v59 = vrot.slane %v2731_v22, 1  ;;  %v2753_v3 = vshll.u32 %v5489_v0, 16 }
  0xaf   : > { %4223 = vmatmul.mubr.msk.bf16.gmra.mrb[8].mxu1 %vm494_vm1, %v959_v1  ;;  %v3869_v1 = vld [vmem:[%s4856_s29 + $0x88] sm:$0x3]  ;;  %v2734_v13 = vsel %vm284_vm0, %v4981_v44, %v2733_v59  ;;  %v2755_v22 = vrot.slane %v2753_v3, 1 }
  0xb0   : > { %4226 = vmatprep.mubr.msk.bf16.mxu1 %vm494_vm1, %v962_v39  ;;  %v973_v39 = vrot.slane %v5082_v46, 1  ;;  %v5485_v53 = vpack.c.bf16 %v3869_v1, %v3869_v1 }
  0xb1   : > { %4383 = vmatmul.mubr.msk.bf16.gmra.mrb[24].mxu0 %vm494_vm1, %v5179_v23  ;;  %v2756_v8 = vsel %vm284_vm0, %v5923_v37, %v2755_v22 }
  0xb2   : > { %4386 = vmatprep.mubr.msk.bf16.mxu0 %vm494_vm1, %v5353_v12  ;;  %v974_v46 = vsel %vm941_vm2, %v5281_v17, %v973_v39 }
  0xb7   : > { %4227 = vmatmul.mubr.msk.bf16.gmra.mrb[12].mxu1 %vm494_vm1, %v965_v31  ;;  %v2742_v31 = vshll.u32 %v5485_v53, 16 }
  0xb8   : > { %4230 = vmatprep.mubr.msk.bf16.mxu1 %vm494_vm1, %v968_v47  ;;  %v3875_v47 = vld [vmem:[%s4856_s29 + $0xb8] sm:$0x3] }
  0xb9   : > { %4387 = vmatmul.mubr.msk.bf16.gmra.mrb[28].mxu0 %vm494_vm1, %v5470_v15  ;;  %v2744_v28 = vrot.slane %v2742_v31, 1  ;;  %v5511_v44 = vpack.c.bf16 %v3875_v47, %v3875_v47  ;;  %v3884_v31 = vld [vmem:[%s4856_s29 + $0x100] sm:$0x3] }
  0xba   : > { %4394 = vmatprep.mubr.msk.bf16.mxu0 %vm494_vm1, %v2712_v25  ;;  %v3878_v25 = vld [vmem:[%s4856_s29 + $0xd0] sm:$0x3] }
  0xbb   : > { %v5515_v1 = vpack.c.bf16 %v3878_v25, %v3878_v25  ;;  %v2764_v39 = vshll.u32 %v5511_v44, 16  ;;  %v5925_v25 = vld [vmem:[#allocation4_spill] sm:$0xff] }
  0xbd   : > { %v2775_v59 = vshll.u32 %v5515_v1, 16 }
  0xbf   : > { %4231 = vmatmul.mubr.msk.bf16.gmra.mrb[16].mxu1 %vm494_vm1, %v971_v40  ;;  %v982_v40 = vrot.slane %v5149_v56, 1  ;;  %v2777_v3 = vrot.slane %v2775_v59, 1  ;;  %v5537_v56 = vpack.c.bf16 %v3884_v31, %v3884_v31  ;;  %v5927_v31 = vld [vmem:[#allocation8_spill] sm:$0xff] }
  0xc0   : > { %4234 = vmatprep.mubr.msk.bf16.mxu1 %vm494_vm1, %v974_v46  ;;  %v3881_v46 = vld [vmem:[%s4856_s29 + $0xe8] sm:$0x3] }
  0xc1   : > { %4395 = vmatmul.mubr.msk.bf16.vlgmr.msra.gmra.mrb[0].mxu0 %vm494_vm1, %v2723_v51  ;;  %v985_v51 = vrot.slane %v5159_v48, 1  ;;  %v983_v26 = vsel %vm941_vm2, %v5318_v5, %v982_v40  ;;  %v5924_v48 = vld [vmem:[#allocation3_spill] sm:$0xff]  ;;  %v2797_v22 = vshll.u32 %v5537_v56, 16 }
  0xc2   : > { %4427 = vmatpush3.bf16.msra.mxu0 %v5390_v58  ;;  %4398 = vmatprep.mubr.msk.bf16.mxu0 %vm494_vm1, %v2734_v13  ;;  %v2745_v58 = vsel %vm284_vm0, %v5002_v62, %v2744_v28  ;;  %v2766_v62 = vrot.slane %v2764_v39, 1  ;;  %v5533_v13 = vpack.c.bf16 %v3881_v46, %v3881_v46  ;;  %v2778_v28 = vsel %vm284_vm0, %v5925_v25, %v2777_v3  ;;  %v3893_v3 = vld [vmem:[%s4856_s29 + $0x148] sm:$0x3] }
  0xc3   : > { %4428 = vmatprep.subr.bf16.mxu0 %v4764_v9  ;;  %v986_v47 = vsel %vm941_vm2, %v5339_v16, %v985_v51  ;;  %v2799_v40 = vrot.slane %v2797_v22, 1  ;;  %v4765_v22 = vld [vmem:[%s5879_s1 + $0x40] sm:$0xff]  }
  0xc4   : > { %v2786_v10 = vshll.u32 %v5533_v13, 16 }
  0xc6   : > { %4429 = vmatpush3.bf16.msra.mxu0 %v4764_v9  ;;  %v2767_v9 = vsel %vm284_vm0, %v5924_v48, %v2766_v62  ;;  %v2788_v39 = vrot.slane %v2786_v10, 1  ;;  %v2800_v62 = vsel %vm284_vm0, %v5927_v31, %v2799_v40  ;;  %v4766_v40 = vld [vmem:[%s5879_s1 + $0x48] sm:$0xff]  }
  0xc7   : > { %4235 = vmatmul.mubr.msk.bf16.gmra.mrb[20].mxu1 %vm494_vm1, %v977_v21  ;;  %v988_v21 = vrot.slane %v5199_v61, 1  ;;  %v5926_v61 = vld [vmem:[#allocation5_spill] sm:$0xff] }
  0xc8   : > { %4238 = vmatprep.mubr.msk.bf16.mxu1 %vm494_vm1, %v980_v54  ;;  %v3887_v54 = vld [vmem:[%s4856_s29 + $0x118] sm:$0x3]  ;;  %v2789_v46 = vsel %vm284_vm0, %v5926_v61, %v2788_v39 }
  0xc9   : > { %4399 = vmatmul.mubr.msk.bf16.gmra.mrb[4].mxu0 %vm494_vm1, %v2745_v58  ;;  %v3890_v58 = vld [vmem:[%s4856_s29 + $0x130] sm:$0x3]  ;;  %v5554_v37 = vpack.c.bf16 %v3887_v54, %v3887_v54  ;;  %v5929_v54 = vld [vmem:[#allocation10_spill] sm:$0xff] }
  0xca   : > { %4402 = vmatprep.mubr.msk.bf16.mxu0 %vm494_vm1, %v2756_v8  ;;  %v989_v8 = vsel %vm941_vm2, %v5343_v52, %v988_v21  ;;  %v5558_v59 = vpack.c.bf16 %v3890_v58, %v3890_v58 }
  0xcb   : > { %v2808_v51 = vshll.u32 %v5554_v37, 16 }
  0xcd   : > { %v2810_v48 = vrot.slane %v2808_v51, 1 }
  0xcf   : > { %4239 = vmatmul.mubr.msk.bf16.gmra.mrb[24].mxu1 %vm494_vm1, %v983_v26  ;;  %v2819_v26 = vshll.u32 %v5558_v59, 16 }
  0xd0   : > { %4242 = vmatprep.mubr.msk.bf16.mxu1 %vm494_vm1, %v986_v47  ;;  %v3896_v47 = vld [vmem:[%s4856_s29 + $0x160] sm:$0x3] }
  0xd1   : > { %4403 = vmatmul.mubr.msk.bf16.gmra.mrb[8].mxu0 %vm494_vm1, %v2767_v9  ;;  %v5573_v9 = vpack.c.bf16 %v3893_v3, %v3893_v3  ;;  %v2821_v10 = vrot.slane %v2819_v26, 1  ;;  %v5575_v25 = vpack.c.bf16 %v3896_v47, %v3896_v47  ;;  %v2858_v26 = vshll.u32 %v5353_v12, 16 }
  0xd2   : > { %4406 = vmatprep.mubr.msk.bf16.mxu0 %vm494_vm1, %v2778_v28 }
  0xd3   : > { %v2830_v21 = vshll.u32 %v5573_v9, 16  ;;  %v2822_v58 = vsel %vm284_vm0, %v5929_v54, %v2821_v10  ;;  %v2841_v39 = vshll.u32 %v5575_v25, 16  ;;  %v2856_v10 = vshrl.u32 %v5353_v12, 16 }
  0xd7   : > { %4243 = vmatmul.mubr.msk.bf16.gmra.mrb[28].mxu1 %vm494_vm1, %v989_v8  ;;  %v3899_v8 = vld [vmem:[%s4856_s29 + $0x178] sm:$0x3] }
  0xd8   : > { %4250 = vmatprep.mubr.msk.bf16.mxu1 %vm494_vm1, %v4874_v14  ;;  %v5928_v14 = vld [vmem:[#allocation9_spill] sm:$0xff]  ;;  %v5597_v51 = vpack.c.bf16 %v3899_v8, %v3899_v8 }
  0xd9   : > { %4407 = vmatmul.mubr.msk.bf16.gmra.mrb[12].mxu0 %vm494_vm1, %v2789_v46  ;;  %v2811_v28 = vsel %vm284_vm0, %v5928_v14, %v2810_v48  ;;  %v2832_v46 = vrot.slane %v2830_v21, 1 }
  0xda   : > { %4410 = vmatprep.mubr.msk.bf16.mxu0 %vm494_vm1, %v2800_v62  ;;  %v2852_v47 = vshll.u32 %v5597_v51, 16 }
  0xdb   : > { %v2833_v3 = vsel %vm284_vm0, %v5197_v49, %v2832_v46 }
  0xdf   : > { %4251 = vmatmul.mubr.msk.bf16.vlgmr.msra.gmra.mrb[0].mxu1 %vm494_vm1, %v4891_v27  ;;  %v3902_v27 = vld [vmem:[%s4856_s29 + $0x190] sm:$0x3] }
  0xe0   : > { %4464 = vmatpush3.bf16.msra.mxu1 %v4765_v22  ;;  %4254 = vmatprep.mubr.msk.bf16.mxu1 %vm494_vm1, %v4905_v45  ;;  %v2843_v45 = vrot.slane %v2841_v39, 1  ;;  %v5599_v62 = vpack.c.bf16 %v3902_v27, %v3902_v27  ;;  %v3905_v22 = vld [vmem:[%s4856_s29 + $0x1a8] sm:$0x3]  ;;  %v2869_v39 = vshll.u32 %v5470_v15, 16 }
  0xe1   : > { %4463 = vmatprep.subr.bf16.mxu1 %v4766_v40  ;;  %4411 = vmatmul.mubr.msk.bf16.gmra.mrb[16].mxu0 %vm494_vm1, %v2811_v28  ;;  %v2860_v28 = vrot.slane %v2858_v26, 1 }
  0xe2   : > { %4414 = vmatprep.mubr.msk.bf16.mxu0 %vm494_vm1, %v2822_v58  ;;  %v2844_v48 = vsel %vm284_vm0, %v5203_v60, %v2843_v45  ;;  %v2863_v21 = vshll.u32 %v5599_v62, 16  ;;  %v5616_v58 = vpack.c.bf16 %v3905_v22, %v3905_v22  ;;  %v2871_v46 = vrot.slane %v2869_v39, 1 }
  0xe3   : > { %v5619_v8 = vor.u32 %v2860_v28, %v2856_v10  ;;  %v3172_v28 = vrot.slane %v5464_v32, 1  ;;  %v3178_v32 = vrot.slane %v5485_v53, 1  ;;  %v3184_v53 = vrot.slane %v5511_v44, 1 }
  0xe4   : > { %4465 = vmatpush3.bf16.msra.mxu1 %v4766_v40  ;;  %v2867_v40 = vshrl.u32 %v5470_v15, 16  ;;  %v2874_v45 = vshll.u32 %v5616_v58, 16 }
  0xe7   : > { %4255 = vmatmul.mubr.msk.bf16.gmra.mrb[4].mxu1 %vm494_vm1, %v4930_v2  ;;  %v2854_v2 = vrot.slane %v2852_v47, 1  ;;  %v3169_v47 = vrot.slane %v5445_v42, 1 }
  0xe8   : > { %4258 = vmatprep.mubr.msk.bf16.mxu1 %vm494_vm1, %v4960_v30  ;;  %v2865_v30 = vrot.slane %v2863_v21, 1  ;;  %v3175_v21 = vrot.slane %v5466_v33, 1  ;;  %v3181_v33 = vrot.slane %v5489_v0, 1  ;;  %v3187_v0 = vrot.slane %v5515_v1, 1 }
  0xe9   : > { %4415 = vmatmul.mubr.msk.bf16.gmra.mrb[20].mxu0 %vm494_vm1, %v2833_v3  ;;  %v2855_v27 = vsel %vm284_vm0, %v5229_v34, %v2854_v2  ;;  %v2872_v3 = vor.u32 %v2871_v46, %v2867_v40  ;;  %v5933_v2 = vld [vmem:[#allocation12_spill] sm:$0xff]  ;;  %v3190_v1 = vrot.slane %v5533_v13, 1  ;;  %v3199_v46 = vrot.slane %v5558_v59, 1 }
  0xea   : > { %4418 = vmatprep.mubr.msk.bf16.mxu0 %vm494_vm1, %v2844_v48  ;;  %v2866_v26 = vsel %vm284_vm0, %v5619_v8, %v2865_v30  ;;  %v1684_v39 = vshll.u32 %v5933_v2, 16  ;;  %v5935_v30 = vld [vmem:[#allocation14_spill] sm:$0xff]  ;;  %v3202_v59 = vrot.slane %v5573_v9, 1 }
  0xef   : > { %4259 = vmatmul.mubr.msk.bf16.gmra.mrb[8].mxu1 %vm494_vm1, %v4987_v50  ;;  %v2876_v50 = vrot.slane %v2874_v45, 1  ;;  %v5936_v45 = vld [vmem:[#allocation15_spill] sm:$0xff] }
  0xf0   : > { %4262 = vmatprep.mubr.msk.bf16.mxu1 %vm494_vm1, %v5009_v4  ;;  %v5930_v4 = vld [vmem:[#allocation6_spill] sm:$0xff] }
  0xf1   : > { %4419 = vmatmul.mubr.msk.bf16.gmra.mrb[24].mxu0 %vm494_vm1, %v2855_v27  ;;  %v2877_v48 = vsel %vm284_vm0, %v2872_v3, %v2876_v50  ;;  %v3170_v10 = vsel %vm941_vm2, %v5930_v4, %v3169_v47  ;;  %v1706_v27 = vshll.u32 %v5935_v30, 16  ;;  %v5937_v3 = vld [vmem:[#allocation16_spill] sm:$0xff] }
  0xf2   : > { %4422 = vmatprep.mubr.msk.bf16.mxu0 %vm494_vm1, %v2866_v26  ;;  %v1717_v26 = vshll.u32 %v5936_v45, 16  ;;  %v1728_v50 = vshll.u32 %v5937_v3, 16 }
  0xf3   : > { %v1708_v13 = vrot.slane %v1706_v27, 1 }
  0xf4   : > { %v1730_v47 = vrot.slane %v1728_v50, 1 }
  0xf7   : > { %4263 = vmatmul.mubr.msk.bf16.gmra.mrb[12].mxu1 %vm494_vm1, %v5031_v38  ;;  %v5931_v38 = vld [vmem:[#allocation7_spill] sm:$0xff] }
  0xf8   : > { %4266 = vmatprep.mubr.msk.bf16.mxu1 %vm494_vm1, %v5058_v7  ;;  %v3173_v42 = vsel %vm941_vm2, %v5931_v38, %v3172_v28  ;;  %v5932_v7 = vld [vmem:[#allocation11_spill] sm:$0xff]  ;;  %v5939_v28 = vld [vmem:[#allocation18_spill] sm:$0xff] }
  0xf9   : > { %4423 = vmatmul.mubr.msk.bf16.gmra.mrb[28].mxu0 %vm494_vm1, %v2877_v48  ;;  %v3176_v22 = vsel %vm941_vm2, %v5932_v7, %v3175_v21  ;;  %v3203_v21 = vsel %vm941_vm2, %v5318_v5, %v3202_v59  ;;  %v1761_v5 = vshll.u32 %v5355_v55, 16  ;;  %v3213_v55 = vrot.slane %v5470_v15, 1 }
  0xfa   : > { %4430 = vmatprep.mubr.msk.bf16.mxu0 %vm494_vm1, %v3170_v10  ;;  %v1731_v10 = vsel %vm284_vm0, %v5197_v49, %v1730_v47 }
  0xff   : > { %4267 = vmatmul.mubr.msk.bf16.gmra.mrb[16].mxu1 %vm494_vm1, %v5078_v35  ;;  %v3179_v35 = vsel %vm941_vm2, %v5172_v19, %v3178_v32  ;;  %v1686_v19 = vrot.slane %v1684_v39, 1 }
 0x100   : > { %4270 = vmatprep.mubr.msk.bf16.mxu1 %vm494_vm1, %v5101_v18  ;;  %v3182_v18 = vsel %vm941_vm2, %v5209_v36, %v3181_v33  ;;  %v5934_v36 = vld [vmem:[#allocation13_spill] sm:$0xff] }
 0x101   : > { %4431 = vmatmul.mubr.msk.bf16.vlgmr.msra.gmra.mrb[0].mxu0 %vm494_vm1, %v3173_v42  ;;  %v1695_v44 = vshll.u32 %v5934_v36, 16  ;;  %v5761_v36 = vld [vmem:[%s5880_s2] ss:$0 sm:$0xff] }
 0x102   : > { %4434 = vmatprep.mubr.msk.bf16.mxu0 %vm494_vm1, %v3176_v22  ;;  %v1763_v22 = vrot.slane %v1761_v5, 1 }
 0x107   : > { %4271 = vmatmul.mubr.msk.bf16.gmra.mrb[20].mxu1 %vm494_vm1, %v5106_v20  ;;  %v3185_v20 = vsel %vm941_vm2, %v5213_v11, %v3184_v53  ;;  %v1687_v11 = vsel %vm284_vm0, %v5926_v61, %v1686_v19  ;;  %v3196_v61 = vrot.slane %v5554_v37, 1  ;;  %v1719_v37 = vrot.slane %v1717_v26, 1 }
 0x108   : > { %4274 = vmatprep.mubr.msk.bf16.mxu1 %vm494_vm1, %v5136_v29  ;;  %v3188_v29 = vsel %vm941_vm2, %v5244_v24, %v3187_v0  ;;  %v3191_v24 = vsel %vm941_vm2, %v5258_v6, %v3190_v1  ;;  %v1709_v6 = vsel %vm284_vm0, %v5928_v14, %v1708_v13  ;;  %v5938_v14 = vld [vmem:[#allocation17_spill] sm:$0xff] }
 0x109   : > { %4435 = vmatmul.mubr.msk.bf16.gmra.mrb[4].mxu0 %vm494_vm1, %v3179_v35  ;;  %v1739_v48 = vshll.u32 %v5938_v14, 16  ;;  %v1720_v4 = vsel %vm284_vm0, %v5929_v54, %v1719_v37  ;;  %v3211_v54 = vrot.slane %v5599_v62, 1 }
 0x10a   : > { %4438 = vmatprep.mubr.msk.bf16.mxu0 %vm494_vm1, %v3182_v18 }
 0x10b   : > { %v1741_v38 = vrot.slane %v1739_v48, 1 }
 0x10d   : > { %v1742_v49 = vsel %vm284_vm0, %v5203_v60, %v1741_v38  ;;  %v3212_v60 = vsel %vm941_vm2, %v2100_v63, %v3211_v54 }
 0x10f   : > { %4275 = vmatmul.mubr.msk.bf16.gmra.mrb[24].mxu1 %vm494_vm1, %v5152_v43  ;;  %v3193_v43 = vrot.slane %v5537_v56, 1 }
 0x110   : > { %4278 = vmatprep.mubr.msk.bf16.mxu1 %vm494_vm1, %v5179_v23  ;;  %v1697_v23 = vrot.slane %v1695_v44, 1 }
 0x111   : > { %4439 = vmatmul.mubr.msk.bf16.gmra.mrb[8].mxu0 %vm494_vm1, %v3185_v20  ;;  %v3194_v40 = vsel %vm941_vm2, %v5281_v17, %v3193_v43  ;;  %v3197_v17 = vsel %vm941_vm2, %v5285_v57, %v3196_v61  ;;  %v3205_v57 = vrot.slane %v5575_v25, 1  ;;  %v3208_v25 = vrot.slane %v5597_v51, 1 }
 0x112   : > { %4442 = vmatprep.mubr.msk.bf16.mxu0 %vm494_vm1, %v3188_v29  ;;  %v1698_v56 = vsel %vm284_vm0, %v5927_v31, %v1697_v23  ;;  %v3200_v31 = vsel %vm941_vm2, %v5314_v41, %v3199_v46  ;;  %v1750_v41 = vshll.u32 %v5939_v28, 16  ;;  %v1764_v51 = vsel %vm284_vm0, %v5619_v8, %v1763_v22 }
 0x113   : > { %v3206_v9 = vsel %vm941_vm2, %v5339_v16, %v3205_v57  ;;  %v3209_v16 = vsel %vm941_vm2, %v5343_v52, %v3208_v25 }
 0x114   : > { %v1752_v42 = vrot.slane %v1750_v41, 1 }
 0x116   : > { %v1753_v7 = vsel %vm284_vm0, %v5229_v34, %v1752_v42  ;;  %v3214_v34 = vrot.slane %v5616_v58, 1 }
 0x117   : > { %4279 = vmatmul.mubr.msk.bf16.gmra.mrb[28].mxu1 %vm494_vm1, %v5353_v12 }
 0x118   : > { %4302 = vmatprep.mubr.msk.bf16.mxu1 %vm494_vm1, %v1687_v11  ;;  %v3215_v52 = vsel %vm941_vm2, %v3213_v55, %v3214_v34 }
 0x119   : > { %4443 = vmatmul.mubr.msk.bf16.gmra.mrb[12].mxu0 %vm494_vm1, %v3191_v24 }
 0x11a   : > { %4446 = vmatprep.mubr.msk.bf16.mxu0 %vm494_vm1, %v3194_v40 }
 0x11f   : > { %4303 = vmatmul.mubr.msk.bf16.vlgmr.msra.gmra.mrb[16].mxu1 %vm494_vm1, %v1698_v56 }
 0x120   : > { %4306 = vmatprep.mubr.msk.bf16.mxu1 %vm494_vm1, %v1709_v6 }
 0x121   : > { %4447 = vmatmul.mubr.msk.bf16.gmra.mrb[16].mxu0 %vm494_vm1, %v3197_v17 }
 0x122   : > { %4450 = vmatprep.mubr.msk.bf16.mxu0 %vm494_vm1, %v3200_v31 }
 0x127   : > { %4307 = vmatmul.mubr.msk.bf16.gmra.mrb[20].mxu1 %vm494_vm1, %v1720_v4 }
 0x128   : > { %4310 = vmatprep.mubr.msk.bf16.mxu1 %vm494_vm1, %v1731_v10 }
 0x129   : > { %4451 = vmatmul.mubr.msk.bf16.gmra.mrb[20].mxu0 %vm494_vm1, %v3203_v21 }
 0x12a   : > { %4454 = vmatprep.mubr.msk.bf16.mxu0 %vm494_vm1, %v3206_v9 }
 0x12f   : > { %4311 = vmatmul.mubr.msk.bf16.gmra.mrb[24].mxu1 %vm494_vm1, %v1742_v49 }
 0x130   : > { %4314 = vmatprep.mubr.msk.bf16.mxu1 %vm494_vm1, %v1753_v7 }
 0x131   : > { %4455 = vmatmul.mubr.msk.bf16.gmra.mrb[24].mxu0 %vm494_vm1, %v3209_v16 }
 0x132   : > { %4458 = vmatprep.mubr.msk.bf16.mxu0 %vm494_vm1, %v3212_v60 }
 0x137   : > { %4315 = vmatmul.mubr.msk.bf16.gmra.mrb[28].mxu1 %vm494_vm1, %v1764_v51 }
 0x139   : > { %4459 = vmatmul.mubr.msk.bf16.gmra.mrb[28].mxu0 %vm494_vm1, %v3215_v52 }
 0x1b2   : > { %v4252_v12 = vpop.f32.mrb[0].mxu1 }
 0x1b3   : > { %v1430_v63 = vpop.f32.mrb[1].mxu1 }
 0x1b4   : > { %v4253_v62 = vpop.f32.mrb[2].mxu1 }
 0x1b5   : > { %v1433_v32 = vpop.f32.mrb[3].mxu1 }
 0x1ba   : > { %v4256_v33 = vpop.f32.mrb[4].mxu1 }
 0x1bb   : > { %v1446_v35 = vpop.f32.mrb[5].mxu1 }
 0x1bc   : > { %v4257_v18 = vpop.f32.mrb[6].mxu1 }
 0x1bd   : > { %v1449_v15 = vpop.f32.mrb[7].mxu1 }
 0x1c2   : > { %v4260_v53 = vpop.f32.mrb[8].mxu1 }
 0x1c3   : > { %v1462_v58 = vpop.f32.mrb[9].mxu1 }
 0x1c4   : > { %v4261_v0 = vpop.f32.mrb[10].mxu1 }
 0x1c5   : > { %v1465_v2 = vpop.f32.mrb[11].mxu1 }
 0x1ca   : > { %v5750_v8 = vpop.f32.mrb[12].mxu1 }
 0x1cb   : > { %v5752_v39 = vpop.f32.mrb[13].mxu1 }
 0x1cc   : > { %v5754_v20 = vpop.f32.mrb[14].mxu1 }
 0x1cd   : > { %v5756_v29 = vpop.f32.mrb[15].mxu1 }
 0x1d4   : > { %v4432_v19 = vpop.f32.mrb[0].mxu0 }
 0x1d5   : > { %v4466_v44 = vadd.f32 %v4432_v19, %v4252_v12  ;;  %v3315_v1 = vpop.f32.mrb[1].mxu0 }
 0x1d6   : > { %v4467_v43 = vadd.f32 %v3315_v1, %v1430_v63  ;;  %v4433_v11 = vpop.f32.mrb[2].mxu0 }
 0x1d7   : > { %v3483_v30 = vadd.f32 %v4466_v44, %v5761_v36  ;;  %v4468_v27 = vadd.f32 %v4433_v11, %v4253_v62  ;;  %v3318_v23 = vpop.f32.mrb[3].mxu0 }
 0x1d8   : > { %v3481_v24 = vadd.f32 %v4467_v43, %v5761_v36  ;;  %v4469_v40 = vadd.f32 %v3318_v23, %v1433_v32 }
 0x1d9   : > { %v3515_v13 = vmax.f32 %v3483_v30, 0.0  ;;  %v3484_v56 = vadd.f32 %v4468_v27, %v5761_v36 }
 0x1da   : > { %v3513_v61 = vmax.f32 %v3481_v24, 0.0  ;;  %v3482_v46 = vadd.f32 %v4469_v40, %v5761_v36 }
 0x1db   : > { %3547 = vst.msk [vmem:[%s5768_s19 + $0x10] sm:$0xff] %vm494_vm1, %v3515_v13  ;;  %v3516_v45 = vmax.f32 %v3484_v56, 0.0 }
 0x1dc   : > { %3545 = vst.msk [vmem:[%s5768_s19] sm:$0xff] %vm494_vm1, %v3513_v61  ;;  %v3514_v26 = vmax.f32 %v3482_v46, 0.0  ;;  %v4436_v6 = vpop.f32.mrb[4].mxu0 }
 0x1dd   : > { %3548 = vst.msk [vmem:[%s5768_s19 + $0x18] sm:$0xff] %vm494_vm1, %v3516_v45  ;;  %v4470_v3 = vadd.f32 %v4436_v6, %v4256_v33  ;;  %v3331_v50 = vpop.f32.mrb[5].mxu0 }
 0x1de   : > { %3546 = vst.msk [vmem:[%s5768_s19 + $0x8] sm:$0xff] %vm494_vm1, %v3514_v26  ;;  %v4471_v17 = vadd.f32 %v3331_v50, %v1446_v35  ;;  %v4437_v31 = vpop.f32.mrb[6].mxu0 }
 0x1df   : > { %v3487_v37 = vadd.f32 %v4470_v3, %v5761_v36  ;;  %v4472_v47 = vadd.f32 %v4437_v31, %v4257_v18  ;;  %v3334_v59 = vpop.f32.mrb[7].mxu0 }
 0x1e0   : > { %v3485_v14 = vadd.f32 %v4471_v17, %v5761_v36  ;;  %v4473_v48 = vadd.f32 %v3334_v59, %v1449_v15 }
 0x1e1   : > { %v3519_v4 = vmax.f32 %v3487_v37, 0.0  ;;  %v3488_v57 = vadd.f32 %v4472_v47, %v5761_v36 }
 0x1e2   : > { %v3517_v10 = vmax.f32 %v3485_v14, 0.0  ;;  %v3486_v28 = vadd.f32 %v4473_v48, %v5761_v36 }
 0x1e3   : > { %3551 = vst.msk [vmem:[%s5768_s19 + $0x30] sm:$0xff] %vm494_vm1, %v3519_v4  ;;  %v3520_v41 = vmax.f32 %v3488_v57, 0.0 }
 0x1e4   : > { %3549 = vst.msk [vmem:[%s5768_s19 + $0x20] sm:$0xff] %vm494_vm1, %v3517_v10  ;;  %v3518_v21 = vmax.f32 %v3486_v28, 0.0  ;;  %v4440_v38 = vpop.f32.mrb[8].mxu0 }
 0x1e5   : > { %3552 = vst.msk [vmem:[%s5768_s19 + $0x38] sm:$0xff] %vm494_vm1, %v3520_v41  ;;  %v4474_v9 = vadd.f32 %v4440_v38, %v4260_v53  ;;  %v3347_v42 = vpop.f32.mrb[9].mxu0 }
 0x1e6   : > { %3550 = vst.msk [vmem:[%s5768_s19 + $0x28] sm:$0xff] %vm494_vm1, %v3518_v21  ;;  %v4475_v49 = vadd.f32 %v3347_v42, %v1462_v58  ;;  %v4441_v25 = vpop.f32.mrb[10].mxu0 }
 0x1e7   : > { %v3491_v54 = vadd.f32 %v4474_v9, %v5761_v36  ;;  %v4476_v5 = vadd.f32 %v4441_v25, %v4261_v0  ;;  %v3350_v7 = vpop.f32.mrb[11].mxu0 }
 0x1e8   : > { %v3489_v16 = vadd.f32 %v4475_v49, %v5761_v36  ;;  %v4477_v60 = vadd.f32 %v3350_v7, %v1465_v2 }
 0x1e9   : > { %v3523_v22 = vmax.f32 %v3491_v54, 0.0  ;;  %v3492_v55 = vadd.f32 %v4476_v5, %v5761_v36 }
 0x1ea   : > { %v3521_v34 = vmax.f32 %v3489_v16, 0.0  ;;  %v3490_v51 = vadd.f32 %v4477_v60, %v5761_v36 }
 0x1eb   : > { %3555 = vst.msk [vmem:[%s5768_s19 + $0x50] sm:$0xff] %vm494_vm1, %v3523_v22  ;;  %v3524_v52 = vmax.f32 %v3492_v55, 0.0 }
 0x1ec   : > { %3553 = vst.msk [vmem:[%s5768_s19 + $0x40] sm:$0xff] %vm494_vm1, %v3521_v34  ;;  %v3522_v12 = vmax.f32 %v3490_v51, 0.0  ;;  %v4444_v63 = vpop.f32.mrb[12].mxu0 }
 0x1ed   : > { %3556 = vst.msk [vmem:[%s5768_s19 + $0x58] sm:$0xff] %vm494_vm1, %v3524_v52  ;;  %v4478_v62 = vadd.f32 %v4444_v63, %v5750_v8  ;;  %v3363_v32 = vpop.f32.mrb[13].mxu0 }
 0x1ee   : > { %3554 = vst.msk [vmem:[%s5768_s19 + $0x48] sm:$0xff] %vm494_vm1, %v3522_v12  ;;  %v4479_v33 = vadd.f32 %v3363_v32, %v5752_v39  ;;  %v4445_v35 = vpop.f32.mrb[14].mxu0 }
 0x1ef   : > { %v3495_v18 = vadd.f32 %v4478_v62, %v5761_v36  ;;  %v4480_v15 = vadd.f32 %v4445_v35, %v5754_v20  ;;  %v3366_v53 = vpop.f32.mrb[15].mxu0 }
 0x1f0   : > { %v3493_v58 = vadd.f32 %v4479_v33, %v5761_v36  ;;  %v4481_v0 = vadd.f32 %v3366_v53, %v5756_v29 }
 0x1f1   : > { %v3527_v2 = vmax.f32 %v3495_v18, 0.0  ;;  %v3496_v8 = vadd.f32 %v4480_v15, %v5761_v36 }
 0x1f2   : > { %v4304_v19 = vpop.f32.mrb[16].mxu1  ;;  %v3525_v44 = vmax.f32 %v3493_v58, 0.0  ;;  %v3494_v39 = vadd.f32 %v4481_v0, %v5761_v36 }
 0x1f3   : > { %v1928_v1 = vpop.f32.mrb[17].mxu1  ;;  %3559 = vst.msk [vmem:[%s5768_s19 + $0x70] sm:$0xff] %vm494_vm1, %v3527_v2  ;;  %v3528_v43 = vmax.f32 %v3496_v8, 0.0 }
 0x1f4   : > { %v4305_v11 = vpop.f32.mrb[18].mxu1  ;;  %3557 = vst.msk [vmem:[%s5768_s19 + $0x60] sm:$0xff] %vm494_vm1, %v3525_v44  ;;  %v3526_v20 = vmax.f32 %v3494_v39, 0.0  ;;  %v4448_v30 = vpop.f32.mrb[16].mxu0 }
 0x1f5   : > { %v1931_v27 = vpop.f32.mrb[19].mxu1  ;;  %3560 = vst.msk [vmem:[%s5768_s19 + $0x78] sm:$0xff] %vm494_vm1, %v3528_v43  ;;  %v4482_v29 = vadd.f32 %v4448_v30, %v4304_v19  ;;  %v3379_v23 = vpop.f32.mrb[17].mxu0 }
 0x1f6   : > { %3558 = vst.msk [vmem:[%s5768_s19 + $0x68] sm:$0xff] %vm494_vm1, %v3526_v20  ;;  %v4483_v24 = vadd.f32 %v3379_v23, %v1928_v1  ;;  %v4449_v40 = vpop.f32.mrb[18].mxu0 }
 0x1f7   : > { %v3499_v13 = vadd.f32 %v4482_v29, %v5761_v36  ;;  %v4484_v56 = vadd.f32 %v4449_v40, %v4305_v11  ;;  %v3382_v61 = vpop.f32.mrb[19].mxu0 }
 0x1f8   : > { %v3497_v46 = vadd.f32 %v4483_v24, %v5761_v36  ;;  %v4485_v45 = vadd.f32 %v3382_v61, %v1931_v27 }
 0x1f9   : > { %v3531_v26 = vmax.f32 %v3499_v13, 0.0  ;;  %v3500_v6 = vadd.f32 %v4484_v56, %v5761_v36 }
 0x1fa   : > { %v4308_v3 = vpop.f32.mrb[20].mxu1  ;;  %v3529_v50 = vmax.f32 %v3497_v46, 0.0  ;;  %v3498_v17 = vadd.f32 %v4485_v45, %v5761_v36 }
 0x1fb   : > { %v1944_v31 = vpop.f32.mrb[21].mxu1  ;;  %3563 = vst.msk [vmem:[%s5768_s19 + $0x90] sm:$0xff] %vm494_vm1, %v3531_v26  ;;  %v3532_v37 = vmax.f32 %v3500_v6, 0.0 }
 0x1fc   : > { %v4309_v47 = vpop.f32.mrb[22].mxu1  ;;  %3561 = vst.msk [vmem:[%s5768_s19 + $0x80] sm:$0xff] %vm494_vm1, %v3529_v50  ;;  %v3530_v59 = vmax.f32 %v3498_v17, 0.0  ;;  %v4452_v14 = vpop.f32.mrb[20].mxu0 }
 0x1fd   : > { %v1947_v48 = vpop.f32.mrb[23].mxu1  ;;  %3564 = vst.msk [vmem:[%s5768_s19 + $0x98] sm:$0xff] %vm494_vm1, %v3532_v37  ;;  %v4486_v4 = vadd.f32 %v4452_v14, %v4308_v3  ;;  %v3395_v57 = vpop.f32.mrb[21].mxu0 }
 0x1fe   : > { %3562 = vst.msk [vmem:[%s5768_s19 + $0x88] sm:$0xff] %vm494_vm1, %v3530_v59  ;;  %v4487_v10 = vadd.f32 %v3395_v57, %v1944_v31  ;;  %v4453_v28 = vpop.f32.mrb[22].mxu0 }
 0x1ff   : > { %v3503_v41 = vadd.f32 %v4486_v4, %v5761_v36  ;;  %v4488_v21 = vadd.f32 %v4453_v28, %v4309_v47  ;;  %v3398_v38 = vpop.f32.mrb[23].mxu0 }
 0x200   : > { %v3501_v9 = vadd.f32 %v4487_v10, %v5761_v36  ;;  %v4489_v42 = vadd.f32 %v3398_v38, %v1947_v48 }
 0x201   : > { %v3535_v49 = vmax.f32 %v3503_v41, 0.0  ;;  %v3504_v25 = vadd.f32 %v4488_v21, %v5761_v36 }
 0x202   : > { %v4312_v54 = vpop.f32.mrb[24].mxu1  ;;  %v3533_v5 = vmax.f32 %v3501_v9, 0.0  ;;  %v3502_v7 = vadd.f32 %v4489_v42, %v5761_v36 }
 0x203   : > { %v1960_v16 = vpop.f32.mrb[25].mxu1  ;;  %3567 = vst.msk [vmem:[%s5768_s19 + $0xb0] sm:$0xff] %vm494_vm1, %v3535_v49  ;;  %v3536_v60 = vmax.f32 %v3504_v25, 0.0 }
 0x204   : > { %v4313_v22 = vpop.f32.mrb[26].mxu1  ;;  %3565 = vst.msk [vmem:[%s5768_s19 + $0xa0] sm:$0xff] %vm494_vm1, %v3533_v5  ;;  %v3534_v55 = vmax.f32 %v3502_v7, 0.0  ;;  %v4456_v34 = vpop.f32.mrb[24].mxu0 }
 0x205   : > { %v1963_v51 = vpop.f32.mrb[27].mxu1  ;;  %3568 = vst.msk [vmem:[%s5768_s19 + $0xb8] sm:$0xff] %vm494_vm1, %v3536_v60  ;;  %v4490_v52 = vadd.f32 %v4456_v34, %v4312_v54  ;;  %v3411_v12 = vpop.f32.mrb[25].mxu0 }
 0x206   : > { %3566 = vst.msk [vmem:[%s5768_s19 + $0xa8] sm:$0xff] %vm494_vm1, %v3534_v55  ;;  %v4491_v63 = vadd.f32 %v3411_v12, %v1960_v16  ;;  %v4457_v62 = vpop.f32.mrb[26].mxu0 }
 0x207   : > { %v3507_v32 = vadd.f32 %v4490_v52, %v5761_v36  ;;  %v4492_v33 = vadd.f32 %v4457_v62, %v4313_v22  ;;  %v3414_v35 = vpop.f32.mrb[27].mxu0 }
 0x208   : > { %v3505_v18 = vadd.f32 %v4491_v63, %v5761_v36  ;;  %v4493_v15 = vadd.f32 %v3414_v35, %v1963_v51 }
 0x209   : > { %v3539_v53 = vmax.f32 %v3507_v32, 0.0  ;;  %v3508_v58 = vadd.f32 %v4492_v33, %v5761_v36 }
 0x20a   : > { %v4316_v0 = vpop.f32.mrb[28].mxu1  ;;  %v3537_v2 = vmax.f32 %v3505_v18, 0.0  ;;  %v3506_v8 = vadd.f32 %v4493_v15, %v5761_v36 }
 0x20b   : > { %v1976_v19 = vpop.f32.mrb[29].mxu1  ;;  %3571 = vst.msk [vmem:[%s5768_s19 + $0xd0] sm:$0xff] %vm494_vm1, %v3539_v53  ;;  %v3540_v44 = vmax.f32 %v3508_v58, 0.0 }
 0x20c   : > { %v4317_v39 = vpop.f32.mrb[30].mxu1  ;;  %3569 = vst.msk [vmem:[%s5768_s19 + $0xc0] sm:$0xff] %vm494_vm1, %v3537_v2  ;;  %v3538_v1 = vmax.f32 %v3506_v8, 0.0  ;;  %v4460_v43 = vpop.f32.mrb[28].mxu0 }
 0x20d   : > { %v1979_v11 = vpop.f32.mrb[31].mxu1  ;;  %3572 = vst.msk [vmem:[%s5768_s19 + $0xd8] sm:$0xff] %vm494_vm1, %v3540_v44  ;;  %v4494_v20 = vadd.f32 %v4460_v43, %v4316_v0  ;;  %v3427_v30 = vpop.f32.mrb[29].mxu0 }
 0x20e   : > { %3570 = vst.msk [vmem:[%s5768_s19 + $0xc8] sm:$0xff] %vm494_vm1, %v3538_v1  ;;  %v4495_v27 = vadd.f32 %v3427_v30, %v1976_v19  ;;  %v4461_v29 = vpop.f32.mrb[30].mxu0 }
 0x20f   : > { %v3511_v23 = vadd.f32 %v4494_v20, %v5761_v36  ;;  %v4496_v24 = vadd.f32 %v4461_v29, %v4317_v39  ;;  %v3430_v40 = vpop.f32.mrb[31].mxu0 }
 0x210   : > { %v3509_v13 = vadd.f32 %v4495_v27, %v5761_v36  ;;  %v4497_v56 = vadd.f32 %v3430_v40, %v1979_v11 }
 0x211   : > { %v3543_v61 = vmax.f32 %v3511_v23, 0.0  ;;  %v3512_v46 = vadd.f32 %v4496_v24, %v5761_v36 }
 0x212   : > { %v3541_v45 = vmax.f32 %v3509_v13, 0.0  ;;  %v3510_v26 = vadd.f32 %v4497_v56, %v5761_v36 }
 0x213   : > { %3575 = vst.msk [vmem:[%s5768_s19 + $0xf0] sm:$0xff] %vm494_vm1, %v3543_v61  ;;  %v3544_v6 = vmax.f32 %v3512_v46, 0.0 }
 0x214   : > { %3573 = vst.msk [vmem:[%s5768_s19 + $0xe0] sm:$0xff] %vm494_vm1, %v3541_v45  ;;  %v3542_v3 = vmax.f32 %v3510_v26, 0.0 }
 0x215   : > { %3576 = vst.msk [vmem:[%s5768_s19 + $0xf8] sm:$0xff] %vm494_vm1, %v3544_v6 }
 0x216   : > { %3574 = vst.msk [vmem:[%s5768_s19 + $0xe8] sm:$0xff] %vm494_vm1, %v3542_v3 }
 0x217 PF: > { %s13_s14 = sadd.s32 1, %s4789_s14   ;;  %s5940_s12 = smov %s4785_s13 }
 0x218   : > { %p10_p5 = scmp.ge.s32.totalorder %s13_s14, 4   ;;  %s5941_s13 = smov %s5943_s15 }
 0x21a   :  { %12 = sbr.rel (!%p10_p5) target bundleno = 2 (0x2), region = 73 }

// kernel: conv_tokenizer.6
= control target key start
LH: loop header
LB: loop body
LE: loop exit
PB: predicated region body
PF: predicated region fallthrough
CT: control target
= control target key end

     0   :  { %s4812_s12 = smov 0   ;;  %s4814_s13 = smov 0   ;;  %s5879_s0 = inlined_call_operand.vmem [shape: f32[2,18,18,32], index: 0, kind: input, shape index: {}]   ;;  %s5880_s1 = inlined_call_operand.vmem [shape: bf16[9,32,64], index: 1, kind: input, shape index: {}]   ;;  %s5881_s2 = inlined_call_operand.vmem [shape: f32[1,64], index: 2, kind: input, shape index: {}]   ;;  %s5882_s3 = inlined_call_operand.vmem [shape: f32[2,16,16,64], index: 3, kind: output, shape index: {}]  }
   0x1   :  { %s4816_s14 = smov 0  }
   0x2 LB: > { %s25_s15 = sadd.s32 1, %s4786_s13  ;;  %p3679_p0 = scmp.ge.s32.totalorder %s4790_s14, 1  ;;  %s4790_s14 = sphi %s4816_s14, %s13_s14   ;;  %s4786_s13 = sphi %s4814_s13, %s5942_s13   ;;  %s4782_s12 = sphi %s4812_s12, %s5941_s12  }
   0x3   : > { %p27_p1 = scmp.ge.s32.totalorder %s25_s15, 2  ;;  %p151_p2 = scmp.lt.s32.totalorder %s4790_s14, 3 }
   0x5   : > { %s5944_s15 = smov (%p27_p1, %s25_s15), 0  ;;  %p152_p3 = pnand %p3679_p0, %p151_p2 }
   0x7   : > { %155 = sbr.rel (%p152_p3) target bundleno = 535 (0x217), region = 32 }
   0xe   : > { %v4748_v0 = vld [vmem:[%s5880_s1 + $0x10] sm:$0xff]   ;;  %p180_p4 = scmp.lt.s32.totalorder %s4782_s12, 1  ;;  %v4836_v1 = vld [vmem:[%s5880_s1 + $0x40] sm:$0xff]   ;;  %v4750_v2 = vld [vmem:[%s5880_s1 + $0x18] sm:$0xff]   ;;  %vm284_vm0 = vsmask.f32 7424 }
   0xf   : > { %4139 = vmatprep.subr.bf16.mxu1 %v4748_v0  ;;  %4283 = vmatprep.subr.bf16.mxu0 %v4836_v1  ;;  %v4751_v3 = vld [vmem:[%s5880_s1 + $0x48] sm:$0xff]   ;;  %v4852_v4 = vld [vmem:[%s5880_s1] sm:$0xff]   ;;  %v4862_v5 = vld [vmem:[%s5880_s1 + $0x50] sm:$0xff]   ;;  %vm494_vm1 = vcmask 261120   ;;  %vm941_vm2 = vcmask 1046528   ;;  %vm3545_vm3 = vcmask 523264  }
  0x10   : > { %s5946_s12 = smov (!%p180_p4, %s4782_s12), 1  ;;  %4140 = vmatpush3.bf16.msra.mxu1 %v4748_v0  ;;  %4284 = vmatpush3.bf16.msra.mxu0 %v4836_v1 }
  0x11   : > { %4141 = vmatprep.subr.bf16.mxu1 %v4750_v2  ;;  %s4723_s24 = smul.u32 432, %s5946_s12  ;;  %4285 = vmatprep.subr.bf16.mxu0 %v4751_v3  ;;  %s3976_s16 = sshll.u32 %s5946_s12, 8 }
  0x12   : > { %s5769_s19 = scalar_lea.vmem %s5882_s3, %s3976_s16 }
  0x13   : > { %s4857_s29 = scalar_lea.vmem %s5879_s0, %s4723_s24 }
  0x14   : > { %4142 = vmatpush3.bf16.msra.mxu1 %v4750_v2  ;;  %v200_v6 = vld [vmem:[%s4857_s29] sm:$0xff]  ;;  %v201_v7 = vld [vmem:[%s4857_s29 + $0x8] sm:$0xff]  ;;  %v202_v8 = vld [vmem:[%s4857_s29 + $0x10] sm:$0x3]  ;;  %4286 = vmatpush3.bf16.msra.mxu0 %v4751_v3 }
  0x15   : > { %v4867_v9 = vpack.c.bf16 %v201_v7, %v200_v6  ;;  %v4869_v10 = vpack.c.bf16 %v202_v8, %v202_v8  ;;  %4175 = vmatprep.subr.bf16.mxu1 %v4852_v4  ;;  %v3745_v11 = vld [vmem:[%s4857_s29 + $0x18] sm:$0xff]  ;;  %v3746_v12 = vld [vmem:[%s4857_s29 + $0x20] sm:$0xff]  ;;  %v3747_v13 = vld [vmem:[%s4857_s29 + $0x28] sm:$0x3]  ;;  %4319 = vmatprep.subr.bf16.mxu0 %v4862_v5 }
  0x16   : > { %v4875_v14 = vpack.c.bf16 %v3746_v12, %v3745_v11  ;;  %v4877_v15 = vpack.c.bf16 %v3747_v13, %v3747_v13  ;;  %v205_v16 = vld [vmem:[%s4857_s29 + $0x28] sm:$0x3]  ;;  %v3748_v17 = vld [vmem:[%s4857_s29 + $0x30] sm:$0xff]  ;;  %v3749_v18 = vld [vmem:[%s4857_s29 + $0x38] sm:$0xff] }
  0x17   : > { %v286_v19 = vshrl.u32 %v4867_v9, 16  ;;  %v288_v20 = vshll.u32 %v4867_v9, 16  ;;  %v293_v21 = vshll.u32 %v4869_v10, 16  ;;  %v4886_v22 = vpack.c.bf16 %v205_v16, %v205_v16  ;;  %v3750_v23 = vld [vmem:[%s4857_s29 + $0x40] sm:$0x3]  ;;  %v3751_v32 = vld [vmem:[%s4857_s29 + $0x48] sm:$0xff] }
  0x18   : > { %v1589_v24 = vshrl.u32 %v4875_v14, 16  ;;  %v1591_v25 = vshll.u32 %v4875_v14, 16  ;;  %v1596_v26 = vshll.u32 %v4877_v15, 16  ;;  %v4892_v27 = vpack.c.bf16 %v3749_v18, %v3748_v17  ;;  %v208_v28 = vld [vmem:[%s4857_s29 + $0x40] sm:$0x3]  ;;  %v3752_v33 = vld [vmem:[%s4857_s29 + $0x50] sm:$0xff] }
  0x19   : > { %v290_v29 = vrot.slane %v288_v20, 1  ;;  %v295_v30 = vrot.slane %v293_v21, 1  ;;  %v305_v31 = vshll.u32 %v4886_v22, 16  ;;  %v4898_v36 = vpack.c.bf16 %v3750_v23, %v3750_v23  ;;  %v3753_v38 = vld [vmem:[%s4857_s29 + $0x58] sm:$0x3]  ;;  %v3754_v47 = vld [vmem:[%s4857_s29 + $0x60] sm:$0xff] }
  0x1a   : > { %v1593_v34 = vrot.slane %v1591_v25, 1  ;;  %v1598_v35 = vrot.slane %v1596_v26, 1  ;;  %v1600_v37 = vshrl.u32 %v4892_v27, 16  ;;  %v1602_v41 = vshll.u32 %v4892_v27, 16  ;;  %v211_v46 = vld [vmem:[%s4857_s29 + $0x58] sm:$0x3] }
  0x1b   : > { %v291_v39 = vor.u32 %v290_v29, %v286_v19  ;;  %v307_v40 = vrot.slane %v305_v31, 1  ;;  %v4903_v42 = vpack.c.bf16 %v208_v28, %v208_v28  ;;  %v1607_v44 = vshll.u32 %v4898_v36, 16  ;;  %v3755_v48 = vld [vmem:[%s4857_s29 + $0x68] sm:$0xff]  ;;  %v3756_v53 = vld [vmem:[%s4857_s29 + $0x70] sm:$0x3]  ;;  %v3757_v63 = vld [vmem:[%s4857_s29 + $0x78] sm:$0xff] }
  0x1c   : > { %v1594_v43 = vor.u32 %v1593_v34, %v1589_v24  ;;  %v4906_v45 = vpack.c.bf16 %v3752_v33, %v3751_v32  ;;  %v1604_v50 = vrot.slane %v1602_v41, 1  ;;  %v4913_v52 = vpack.c.bf16 %v3753_v38, %v3753_v38  ;;  %v214_v54 = vld [vmem:[%s4857_s29 + $0x70] sm:$0x3]  ;;  %v3758_v7 = vld [vmem:[%s4857_s29 + $0x80] sm:$0xff]  ;;  %v3759_v8 = vld [vmem:[%s4857_s29 + $0x88] sm:$0x3] }
  0x1d   : > { %v296_v49 = vsel %vm284_vm0, %v291_v39, %v295_v30  ;;  %v317_v51 = vshll.u32 %v4903_v42, 16  ;;  %v1609_v57 = vrot.slane %v1607_v44, 1  ;;  %v4929_v0 = vpack.c.bf16 %v211_v46, %v211_v46  ;;  %v4754_v11 = vld [vmem:[%s5880_s1 + $0x58] sm:$0xff]   ;;  %v217_v17 = vld [vmem:[%s4857_s29 + $0x88] sm:$0x3]  ;;  %v3760_v23 = vld [vmem:[%s4857_s29 + $0x90] sm:$0xff] }
  0x1e   : > { %4143 = vmatprep.mubr.msk.bf16.mxu1 %vm494_vm1, %v296_v49  ;;  %v1599_v55 = vsel %vm284_vm0, %v1594_v43, %v1598_v35  ;;  %v308_v56 = vsel %vm284_vm0, %v1594_v43, %v307_v40  ;;  %v1611_v58 = vshrl.u32 %v4906_v45, 16  ;;  %v4923_v59 = vor.u32 %v1604_v50, %v1600_v37  ;;  %v3761_v24 = vld [vmem:[%s4857_s29 + $0x98] sm:$0xff]  ;;  %v3762_v25 = vld [vmem:[%s4857_s29 + $0xa0] sm:$0x3]  ;;  %v4755_v32 = vld [vmem:[%s5880_s1 + $0x8] sm:$0xff]  }
  0x1f   : > { %4287 = vmatprep.mubr.msk.bf16.mxu0 %vm494_vm1, %v1599_v55  ;;  %4144 = vmatmul.mubr.msk.bf16.vlgmr.msra.gmra.mrb[0].mxu1 %vm494_vm1, %v308_v56  ;;  %v319_v60 = vrot.slane %v317_v51, 1  ;;  %v1613_v61 = vshll.u32 %v4906_v45, 16  ;;  %v1618_v62 = vshll.u32 %v4913_v52, 16  ;;  %v4931_v2 = vpack.c.bf16 %v3755_v48, %v3754_v47  ;;  %v220_v26 = vld [vmem:[%s4857_s29 + $0xa0] sm:$0x3]  ;;  %v3763_v48 = vld [vmem:[%s4857_s29 + $0xa8] sm:$0xff] }
  0x20   : > { %4176 = vmatpush3.bf16.msra.mxu1 %v4852_v4  ;;  %v4933_v3 = vpack.c.bf16 %v3756_v53, %v3756_v53  ;;  %v4935_v6 = vpack.c.bf16 %v214_v54, %v214_v54  ;;  %v1610_v4 = vsel %vm284_vm0, %v4923_v59, %v1609_v57  ;;  %v329_v18 = vshll.u32 %v4929_v0, 16  ;;  %v3764_v54 = vld [vmem:[%s4857_s29 + $0xb0] sm:$0xff]  ;;  %v3765_v55 = vld [vmem:[%s4857_s29 + $0xb8] sm:$0x3] }
  0x21   : > { %v320_v12 = vsel %vm284_vm0, %v4923_v59, %v319_v60  ;;  %v1615_v13 = vrot.slane %v1613_v61, 1  ;;  %v1620_v16 = vrot.slane %v1618_v62, 1  ;;  %4288 = vmatmul.mubr.msk.bf16.vlgmr.msra.gmra.mrb[0].mxu0 %vm494_vm1, %v1610_v4  ;;  %v1622_v19 = vshrl.u32 %v4931_v2, 16  ;;  %4177 = vmatprep.subr.bf16.mxu1 %v4755_v32  ;;  %v223_v56 = vld [vmem:[%s4857_s29 + $0xb8] sm:$0x3] }
  0x22   : > { %4147 = vmatprep.mubr.msk.bf16.mxu1 %vm494_vm1, %v320_v12  ;;  %v1624_v20 = vshll.u32 %v4931_v2, 16  ;;  %v1629_v21 = vshll.u32 %v4933_v3, 16  ;;  %4320 = vmatpush3.bf16.msra.mxu0 %v4862_v5  ;;  %v341_v29 = vshll.u32 %v4935_v6, 16  ;;  %v4961_v30 = vpack.c.bf16 %v3758_v7, %v3757_v63  ;;  %v4973_v5 = vld [vmem:[%s5880_s1 + $0x60] sm:$0xff]  }
  0x23   : > { %v4958_v28 = vor.u32 %v1615_v13, %v1611_v58  ;;  %v4963_v31 = vpack.c.bf16 %v3759_v8, %v3759_v8  ;;  %v331_v33 = vrot.slane %v329_v18, 1  ;;  %4321 = vmatprep.subr.bf16.mxu0 %v4754_v11  ;;  %v4968_v37 = vpack.c.bf16 %v217_v17, %v217_v17  ;;  %v3767_v17 = vld [vmem:[%s4857_s29 + $0xc8] sm:$0xff]  ;;  %v3768_v18 = vld [vmem:[%s4857_s29 + $0xd0] sm:$0x3] }
  0x24   : > { %v1626_v34 = vrot.slane %v1624_v20, 1  ;;  %v1631_v35 = vrot.slane %v1629_v21, 1  ;;  %v343_v39 = vrot.slane %v341_v29, 1  ;;  %v1633_v40 = vshrl.u32 %v4961_v30, 16  ;;  %4178 = vmatpush3.bf16.msra.mxu1 %v4755_v32 }
  0x25   : > { %v1621_v38 = vsel %vm284_vm0, %v4958_v28, %v1620_v16  ;;  %v1635_v41 = vshll.u32 %v4961_v30, 16  ;;  %v332_v43 = vsel %vm284_vm0, %v4958_v28, %v331_v33  ;;  %v1640_v46 = vshll.u32 %v4963_v31, 16  ;;  %v3766_v16 = vld [vmem:[%s4857_s29 + $0xc0] sm:$0xff]  ;;  %v227_v33 = vld [vmem:[%s4857_s29 + $0xd8] sm:$0xff] }
  0x26   : > { %4291 = vmatprep.mubr.msk.bf16.mxu0 %vm494_vm1, %v1621_v38  ;;  %v4982_v44 = vor.u32 %v1626_v34, %v1622_v19  ;;  %v353_v47 = vshll.u32 %v4968_v37, 16  ;;  %v4988_v50 = vpack.c.bf16 %v3761_v24, %v3760_v23  ;;  %v4990_v51 = vpack.c.bf16 %v3762_v25, %v3762_v25  ;;  %4322 = vmatpush3.bf16.msra.mxu0 %v4754_v11  ;;  %v226_v24 = vld [vmem:[%s4857_s29 + $0xd0] sm:$0x3] }
  0x27   : > { %4148 = vmatmul.mubr.msk.bf16.gmra.mrb[4].mxu1 %vm494_vm1, %v332_v43  ;;  %v1637_v49 = vrot.slane %v1635_v41, 1  ;;  %v4992_v53 = vpack.c.bf16 %v220_v26, %v220_v26  ;;  %v1642_v60 = vrot.slane %v1640_v46, 1  ;;  %4355 = vmatprep.subr.bf16.mxu0 %v4973_v5  ;;  %v5010_v4 = vpack.c.bf16 %v3764_v54, %v3763_v48  ;;  %v5040_v41 = vld [vmem:[%s5880_s1 + $0x20] sm:$0xff]   ;;  %v229_v48 = vld [vmem:[%s4857_s29 + $0xe8] sm:$0x3] }
  0x28   : > { %v1632_v57 = vsel %vm284_vm0, %v4982_v44, %v1631_v35  ;;  %v344_v58 = vsel %vm284_vm0, %v4982_v44, %v343_v39  ;;  %v355_v61 = vrot.slane %v353_v47, 1  ;;  %v1644_v63 = vshrl.u32 %v4988_v50, 16  ;;  %4211 = vmatprep.subr.bf16.mxu1 %v5040_v41 }
  0x29   : > { %4151 = vmatprep.mubr.msk.bf16.mxu1 %vm494_vm1, %v344_v58  ;;  %v5003_v62 = vor.u32 %v1637_v49, %v1633_v40  ;;  %v1646_v7 = vshll.u32 %v4988_v50, 16  ;;  %v1651_v8 = vshll.u32 %v4990_v51, 16  ;;  %4292 = vmatmul.mubr.msk.bf16.gmra.mrb[4].mxu0 %vm494_vm1, %v1632_v57  ;;  %v365_v11 = vshll.u32 %v4992_v53, 16  ;;  %v228_v40 = vld [vmem:[%s4857_s29 + $0xe0] sm:$0xff] }
  0x2a   : > { %v5012_v12 = vpack.c.bf16 %v3765_v55, %v3765_v55  ;;  %v5014_v13 = vpack.c.bf16 %v223_v56, %v223_v56  ;;  %v1655_v26 = vshrl.u32 %v5010_v4, 16  ;;  %v1657_v29 = vshll.u32 %v5010_v4, 16 }
  0x2b   : > { %v1643_v19 = vsel %vm284_vm0, %v5003_v62, %v1642_v60  ;;  %v356_v20 = vsel %vm284_vm0, %v5003_v62, %v355_v61  ;;  %v1648_v21 = vrot.slane %v1646_v7, 1  ;;  %v1653_v23 = vrot.slane %v1651_v8, 1 }
  0x2c   : > { %4295 = vmatprep.mubr.msk.bf16.mxu0 %vm494_vm1, %v1643_v19  ;;  %v367_v25 = vrot.slane %v365_v11, 1  ;;  %v1662_v32 = vshll.u32 %v5012_v12, 16  ;;  %v377_v35 = vshll.u32 %v5014_v13, 16  ;;  %v5032_v38 = vpack.c.bf16 %v3767_v17, %v3766_v16  ;;  %v230_v11 = vld [vmem:[%s4857_s29 + $0xf0] sm:$0xff]  ;;  %v231_v16 = vld [vmem:[%s4857_s29 + $0xf8] sm:$0xff] }
  0x2d   : > { %v5029_v34 = vor.u32 %v1648_v21, %v1644_v63  ;;  %v5034_v39 = vpack.c.bf16 %v3768_v18, %v3768_v18  ;;  %v1659_v43 = vrot.slane %v1657_v29, 1  ;;  %v5042_v47 = vpack.c.bf16 %v226_v24, %v226_v24  ;;  %v232_v21 = vld [vmem:[%s4857_s29 + $0x100] sm:$0x3]  ;;  %v242_v63 = vld [vmem:[%s4857_s29 + $0x150] sm:$0xff] }
  0x2e   : > { %v1664_v46 = vrot.slane %v1662_v32, 1  ;;  %v379_v55 = vrot.slane %v377_v35, 1  ;;  %v1666_v56 = vshrl.u32 %v5032_v38, 16  ;;  %v1668_v58 = vshll.u32 %v5032_v38, 16 }
  0x2f   : > { %5905 = vst [vmem:[#allocation2_spill] sm:$0xff] %v5029_v34  ;;  %4152 = vmatmul.mubr.msk.bf16.gmra.mrb[8].mxu1 %vm494_vm1, %v356_v20  ;;  %v1654_v49 = vsel %vm284_vm0, %v5029_v34, %v1653_v23  ;;  %v368_v54 = vsel %vm284_vm0, %v5029_v34, %v367_v25  ;;  %v5053_v57 = vor.u32 %v1659_v43, %v1655_v26  ;;  %v1673_v60 = vshll.u32 %v5034_v39, 16 }
  0x30   : > { %4155 = vmatprep.mubr.msk.bf16.mxu1 %vm494_vm1, %v368_v54  ;;  %v389_v61 = vshll.u32 %v5042_v47, 16  ;;  %v5059_v7 = vpack.c.bf16 %v228_v40, %v227_v33  ;;  %v5061_v8 = vpack.c.bf16 %v229_v48, %v229_v48  ;;  %v1670_v18 = vrot.slane %v1668_v58, 1  ;;  %v234_v40 = vld [vmem:[%s4857_s29 + $0x110] sm:$0xff]  ;;  %v235_v48 = vld [vmem:[%s4857_s29 + $0x118] sm:$0x3] }
  0x31   : > { %5906 = vst [vmem:[#allocation3_spill] sm:$0xff] %v5053_v57  ;;  %4296 = vmatmul.mubr.msk.bf16.gmra.mrb[8].mxu0 %vm494_vm1, %v1654_v49  ;;  %v1665_v17 = vsel %vm284_vm0, %v5053_v57, %v1664_v46  ;;  %v5883_v19 = vrot.slane %v4875_v14, 1  ;;  %v2056_v20 = vrot.slane %v4877_v15, 1  ;;  %v380_v23 = vsel %vm284_vm0, %v5053_v57, %v379_v55  ;;  %v233_v15 = vld [vmem:[%s4857_s29 + $0x108] sm:$0xff]  ;;  %v236_v49 = vld [vmem:[%s4857_s29 + $0x120] sm:$0xff] }
  0x32   : > { %4299 = vmatprep.mubr.msk.bf16.mxu0 %vm494_vm1, %v1665_v17  ;;  %v1675_v24 = vrot.slane %v1673_v60, 1  ;;  %v391_v25 = vrot.slane %v389_v61, 1  ;;  %v396_v26 = vshll.u32 %v5059_v7, 16  ;;  %v5075_v29 = vor.u32 %v1670_v18, %v1666_v56  ;;  %v237_v56 = vld [vmem:[%s4857_s29 + $0x128] sm:$0xff]  ;;  %v244_v57 = vld [vmem:[%s4857_s29 + $0x160] sm:$0x3] }
  0x33   : > { %v394_v32 = vshrl.u32 %v5059_v7, 16  ;;  %v401_v33 = vshll.u32 %v5061_v8, 16  ;;  %v5079_v35 = vpack.c.bf16 %v231_v16, %v230_v11  ;;  %v5083_v46 = vpack.c.bf16 %v232_v21, %v232_v21 }
  0x34   : > { %5907 = vst [vmem:[#allocation4_spill] sm:$0xff] %v5075_v29  ;;  %v398_v43 = vrot.slane %v396_v26, 1  ;;  %v392_v54 = vsel %vm284_vm0, %v5075_v29, %v391_v25  ;;  %v1676_v58 = vsel %vm284_vm0, %v5075_v29, %v1675_v24  ;;  %v2057_v60 = vsel %vm941_vm2, %v5883_v19, %v2056_v20 }
  0x35   : > { %v406_v55 = vshrl.u32 %v5079_v35, 16  ;;  %v408_v61 = vshll.u32 %v5079_v35, 16  ;;  %v413_v11 = vshll.u32 %v5083_v46, 16  ;;  %v403_v17 = vrot.slane %v401_v33, 1 }
  0x36   : > { %v5100_v16 = vor.u32 %v398_v43, %v394_v32  ;;  %v5102_v18 = vpack.c.bf16 %v234_v40, %v233_v15  ;;  %v5104_v21 = vpack.c.bf16 %v235_v48, %v235_v48  ;;  %v5107_v20 = vpack.c.bf16 %v237_v56, %v236_v49  ;;  %v239_v40 = vld [vmem:[%s4857_s29 + $0x138] sm:$0xff]  ;;  %v240_v43 = vld [vmem:[%s4857_s29 + $0x140] sm:$0xff] }
  0x37   : > { %4156 = vmatmul.mubr.msk.bf16.gmra.mrb[12].mxu1 %vm494_vm1, %v380_v23  ;;  %v238_v23 = vld [vmem:[%s4857_s29 + $0x130] sm:$0x3]  ;;  %v410_v24 = vrot.slane %v408_v61, 1  ;;  %v415_v25 = vrot.slane %v413_v11, 1  ;;  %v5111_v26 = vrot.slane %v4892_v27, 1  ;;  %v5114_v32 = vrot.slane %v4906_v45, 1 }
  0x38   : > { %4159 = vmatprep.mubr.msk.bf16.mxu1 %vm494_vm1, %v392_v54  ;;  %5908 = vst [vmem:[#allocation5_spill] sm:$0xff] %v5100_v16  ;;  %v2062_v33 = vrot.slane %v4913_v52, 1  ;;  %v420_v15 = vshll.u32 %v5102_v18, 16  ;;  %v425_v49 = vshll.u32 %v5104_v21, 16  ;;  %v5124_v54 = vpack.c.bf16 %v238_v23, %v238_v23 }
  0x39   : > { %4300 = vmatmul.mubr.msk.bf16.gmra.mrb[12].mxu0 %vm494_vm1, %v1676_v58  ;;  %5909 = vst [vmem:[#allocation6_spill] sm:$0xff] %v5111_v26  ;;  %5910 = vst [vmem:[#allocation7_spill] sm:$0xff] %v5114_v32  ;;  %v5121_v48 = vor.u32 %v410_v24, %v406_v55  ;;  %v432_v56 = vshll.u32 %v5107_v20, 16  ;;  %v241_v58 = vld [vmem:[%s4857_s29 + $0x148] sm:$0x3]  ;;  %v404_v61 = vsel %vm284_vm0, %v5100_v16, %v403_v17  ;;  %v418_v52 = vshrl.u32 %v5102_v18, 16 }
  0x3a   : > { %4323 = vmatprep.mubr.msk.bf16.mxu0 %vm494_vm1, %v2057_v60  ;;  %v422_v11 = vrot.slane %v420_v15, 1  ;;  %v430_v19 = vshrl.u32 %v5107_v20, 16  ;;  %v243_v60 = vld [vmem:[%s4857_s29 + $0x158] sm:$0xff]  ;;  %v437_v23 = vshll.u32 %v5124_v54, 16  ;;  %v5137_v29 = vpack.c.bf16 %v240_v43, %v239_v40 }
  0x3b   : > { %5911 = vst [vmem:[#allocation8_spill] sm:$0xff] %v5121_v48  ;;  %v416_v55 = vsel %vm284_vm0, %v5121_v48, %v415_v25  ;;  %v434_v24 = vrot.slane %v432_v56, 1  ;;  %v5912_v17 = vrot.slane %v4898_v36, 1  ;;  %v2063_v16 = vsel %vm941_vm2, %v5114_v32, %v2062_v33  ;;  %v4758_v36 = vld [vmem:[%s5880_s1 + $0x68] sm:$0xff]  }
  0x3c   : > { %v427_v34 = vrot.slane %v425_v49, 1  ;;  %v5148_v25 = vor.u32 %v422_v11, %v418_v52  ;;  %v5150_v56 = vpack.c.bf16 %v241_v58, %v241_v58  ;;  %v444_v40 = vshll.u32 %v5137_v29, 16  ;;  %v245_v33 = vld [vmem:[%s4857_s29 + $0x168] sm:$0xff]  ;;  %v246_v49 = vld [vmem:[%s4857_s29 + $0x170] sm:$0xff] }
  0x3d   : > { %v2060_v15 = vsel %vm941_vm2, %v5111_v26, %v5912_v17  ;;  %v5153_v43 = vpack.c.bf16 %v243_v60, %v242_v63  ;;  %v439_v17 = vrot.slane %v437_v23, 1  ;;  %v5160_v48 = vpack.c.bf16 %v244_v57, %v244_v57 }
  0x3e   : > { %5913 = vst [vmem:[#allocation9_spill] sm:$0xff] %v5148_v25  ;;  %v5166_v58 = vrot.slane %v4931_v2, 1  ;;  %v2065_v63 = vrot.slane %v4933_v3, 1  ;;  %v2068_v57 = vrot.slane %v4963_v31, 1  ;;  %v442_v11 = vshrl.u32 %v5137_v29, 16  ;;  %v5185_v3 = vld [vmem:[%s5880_s1 + $0x70] sm:$0xff]  }
  0x3f   : > { %4160 = vmatmul.mubr.msk.bf16.gmra.mrb[16].mxu1 %vm494_vm1, %v404_v61  ;;  %v5158_v61 = vor.u32 %v434_v24, %v430_v19  ;;  %v456_v52 = vshll.u32 %v5153_v43, 16  ;;  %v5173_v19 = vrot.slane %v4961_v30, 1  ;;  %v428_v60 = vsel %vm284_vm0, %v5148_v25, %v427_v34  ;;  %v247_v34 = vld [vmem:[%s4857_s29 + $0x178] sm:$0x3] }
  0x40   : > { %4163 = vmatprep.mubr.msk.bf16.mxu1 %vm494_vm1, %v416_v55  ;;  %5915 = vst [vmem:[#allocation11_spill] sm:$0xff] %v5166_v58  ;;  %v446_v55 = vrot.slane %v444_v40, 1  ;;  %v449_v24 = vshll.u32 %v5150_v56, 16  ;;  %v5180_v23 = vpack.c.bf16 %v246_v49, %v245_v33  ;;  %v454_v31 = vshrl.u32 %v5153_v43, 16 }
  0x41   : > { %5914 = vst [vmem:[#allocation10_spill] sm:$0xff] %v5158_v61  ;;  %4324 = vmatmul.mubr.msk.bf16.vlgmr.msra.gmra.mrb[0].mxu0 %vm494_vm1, %v2060_v15  ;;  %v461_v15 = vshll.u32 %v5160_v48, 16  ;;  %v2066_v40 = vsel %vm941_vm2, %v5166_v58, %v2065_v63  ;;  %v2069_v33 = vsel %vm941_vm2, %v5173_v19, %v2068_v57  ;;  %v946_v63 = vrot.slane %v4886_v22, 1 }
  0x42   : > { %4356 = vmatpush3.bf16.msra.mxu0 %v4973_v5  ;;  %4327 = vmatprep.mubr.msk.bf16.mxu0 %vm494_vm1, %v2063_v16  ;;  %v440_v5 = vsel %vm284_vm0, %v5158_v61, %v439_v17  ;;  %v458_v16 = vrot.slane %v456_v52, 1  ;;  %v5198_v49 = vor.u32 %v446_v55, %v442_v11  ;;  %v451_v17 = vrot.slane %v449_v24, 1 }
  0x43   : > { %4357 = vmatprep.subr.bf16.mxu0 %v4758_v36  ;;  %v5200_v61 = vpack.c.bf16 %v247_v34, %v247_v34  ;;  %v468_v52 = vshll.u32 %v5180_v23, 16  ;;  %v463_v25 = vrot.slane %v461_v15, 1  ;;  %v2071_v57 = vrot.slane %v4990_v51, 1  ;;  %v3771_v15 = vld [vmem:[%s4857_s29 + $0xe8] sm:$0x3] }
  0x44   : > { %v5214_v11 = vrot.slane %v5010_v4, 1  ;;  %v2074_v55 = vrot.slane %v5012_v12, 1  ;;  %v452_v24 = vsel %vm284_vm0, %v5198_v49, %v451_v17  ;;  %v5917_v17 = vrot.slane %v4875_v14, 1 }
  0x45   : > { %v470_v22 = vrot.slane %v468_v52, 1  ;;  %v949_v52 = vrot.slane %v4903_v42, 1 }
  0x46   : > { %4358 = vmatpush3.bf16.msra.mxu0 %v4758_v36  ;;  %v5210_v36 = vrot.slane %v4988_v50, 1  ;;  %v2075_v12 = vsel %vm941_vm2, %v5214_v11, %v2074_v55  ;;  %v955_v55 = vrot.slane %v4935_v6, 1  ;;  %v5259_v6 = vrot.slane %v5059_v7, 1 }
  0x47   : > { %4164 = vmatmul.mubr.msk.bf16.gmra.mrb[20].mxu1 %vm494_vm1, %v428_v60  ;;  %4391 = vmatprep.subr.bf16.mxu0 %v5185_v3  ;;  %v5204_v60 = vor.u32 %v458_v16, %v454_v31  ;;  %v473_v31 = vshll.u32 %v5200_v61, 16 }
  0x48   : > { %4167 = vmatprep.mubr.msk.bf16.mxu1 %vm494_vm1, %v440_v5  ;;  %v466_v5 = vshrl.u32 %v5180_v23, 16  ;;  %v2072_v51 = vsel %vm941_vm2, %v5210_v36, %v2071_v57  ;;  %v952_v57 = vrot.slane %v4929_v0, 1 }
  0x49   : > { %4328 = vmatmul.mubr.msk.bf16.gmra.mrb[4].mxu0 %vm494_vm1, %v2066_v40  ;;  %v464_v16 = vsel %vm284_vm0, %v5204_v60, %v463_v25  ;;  %v475_v40 = vrot.slane %v473_v31, 1  ;;  %v5237_v25 = vsel %vm941_vm2, %v5917_v17, %v946_v63  ;;  %v3774_v31 = vld [vmem:[%s4857_s29 + $0x100] sm:$0x3]  ;;  %v5282_v17 = vrot.slane %v5079_v35, 1 }
  0x4a   : > { %4331 = vmatprep.mubr.msk.bf16.mxu0 %vm494_vm1, %v2069_v33  ;;  %v5230_v34 = vor.u32 %v470_v22, %v466_v5  ;;  %v5232_v33 = vpack.c.bf16 %v3771_v15, %v3771_v15  ;;  %v2077_v5 = vrot.slane %v5034_v39, 1  ;;  %v5250_v22 = vsel %vm941_vm2, %v5111_v26, %v949_v52  ;;  %v3792_v26 = vld [vmem:[%s4857_s29 + $0x190] sm:$0x3] }
  0x4b   : > { %v5254_v42 = vsel %vm941_vm2, %v5114_v32, %v952_v57  ;;  %v5265_v39 = vsel %vm941_vm2, %v5166_v58, %v955_v55  ;;  %v5286_v57 = vrot.slane %v5102_v18, 1  ;;  %v3790_v58 = vld [vmem:[%s4857_s29 + $0x180] sm:$0xff]  ;;  %v3791_v32 = vld [vmem:[%s4857_s29 + $0x188] sm:$0xff] }
  0x4c   : > { %5916 = vst [vmem:[#allocation12_spill] sm:$0xff] %v5232_v33  ;;  %v476_v0 = vsel %vm284_vm0, %v5230_v34, %v475_v40  ;;  %v2080_v63 = vrot.slane %v5232_v33, 1 }
  0x4f   : > { %4168 = vmatmul.mubr.msk.bf16.gmra.mrb[24].mxu1 %vm494_vm1, %v452_v24  ;;  %v5245_v24 = vrot.slane %v5032_v38, 1 }
  0x50   : > { %4171 = vmatprep.mubr.msk.bf16.mxu1 %vm494_vm1, %v464_v16  ;;  %v3777_v16 = vld [vmem:[%s4857_s29 + $0x118] sm:$0x3] }
  0x51   : > { %4332 = vmatmul.mubr.msk.bf16.gmra.mrb[8].mxu0 %vm494_vm1, %v2072_v51  ;;  %v2078_v15 = vsel %vm941_vm2, %v5245_v24, %v2077_v5  ;;  %v5271_v51 = vpack.c.bf16 %v3774_v31, %v3774_v31  ;;  %v5277_v40 = vpack.c.bf16 %v3777_v16, %v3777_v16  ;;  %v3780_v5 = vld [vmem:[%s4857_s29 + $0x130] sm:$0x3] }
  0x52   : > { %4335 = vmatprep.mubr.msk.bf16.mxu0 %vm494_vm1, %v2075_v12  ;;  %v2081_v12 = vsel %vm941_vm2, %v5259_v6, %v2080_v63  ;;  %v4759_v63 = vld [vmem:[%s5880_s1 + $0x28] sm:$0xff]   ;;  %v5298_v16 = vpack.c.bf16 %v3780_v5, %v3780_v5  ;;  %v5319_v5 = vrot.slane %v5137_v29, 1 }
  0x53   : > { %5918 = vst [vmem:[#allocation13_spill] sm:$0xff] %v5271_v51  ;;  %5919 = vst [vmem:[#allocation14_spill] sm:$0xff] %v5277_v40  ;;  %v2083_v52 = vrot.slane %v5271_v51, 1  ;;  %v2086_v55 = vrot.slane %v5277_v40, 1  ;;  %v5310_v40 = vld [vmem:[%s5880_s1 + $0x30] sm:$0xff]  }
  0x54   : > { %5920 = vst [vmem:[#allocation15_spill] sm:$0xff] %v5298_v16  ;;  %v3789_v51 = vld [vmem:[%s4857_s29 + $0x178] sm:$0x3] }
  0x55   : > { %v2084_v31 = vsel %vm941_vm2, %v5282_v17, %v2083_v52  ;;  %v2089_v52 = vrot.slane %v5298_v16, 1  ;;  %v5340_v16 = vrot.slane %v5153_v43, 1 }
  0x57   : > { %4172 = vmatmul.mubr.msk.bf16.gmra.mrb[28].mxu1 %vm494_vm1, %v476_v0  ;;  %v3783_v0 = vld [vmem:[%s4857_s29 + $0x148] sm:$0x3] }
  0x58   : > { %4179 = vmatprep.mubr.msk.bf16.mxu1 %vm494_vm1, %v4867_v9 }
  0x59   : > { %4336 = vmatmul.mubr.msk.bf16.gmra.mrb[12].mxu0 %vm494_vm1, %v2078_v15  ;;  %v2087_v15 = vsel %vm941_vm2, %v5286_v57, %v2086_v55 }
  0x5a   : > { %4339 = vmatprep.mubr.msk.bf16.mxu0 %vm494_vm1, %v2081_v12  ;;  %v5305_v12 = vpack.c.bf16 %v3783_v0, %v3783_v0  ;;  %v3786_v0 = vld [vmem:[%s4857_s29 + $0x160] sm:$0x3] }
  0x5c   : > { %5921 = vst [vmem:[#allocation16_spill] sm:$0xff] %v5305_v12  ;;  %v2092_v55 = vrot.slane %v5305_v12, 1 }
  0x5e   : > { %v2093_v12 = vsel %vm941_vm2, %v5319_v5, %v2092_v55  ;;  %v5356_v55 = vpack.c.bf16 %v3792_v26, %v3792_v26 }
  0x5f   : > { %4180 = vmatmul.mubr.msk.bf16.vlgmr.msra.gmra.mrb[0].mxu1 %vm494_vm1, %v4875_v14 }
  0x60   : > { %4212 = vmatpush3.bf16.msra.mxu1 %v5040_v41  ;;  %4183 = vmatprep.mubr.msk.bf16.mxu1 %vm494_vm1, %v4892_v27  ;;  %v5315_v41 = vrot.slane %v5107_v20, 1 }
  0x61   : > { %4213 = vmatprep.subr.bf16.mxu1 %v4759_v63  ;;  %4340 = vmatmul.mubr.msk.bf16.gmra.mrb[16].mxu0 %vm494_vm1, %v2084_v31 }
  0x62   : > { %4343 = vmatprep.mubr.msk.bf16.mxu0 %vm494_vm1, %v2087_v15  ;;  %v2090_v31 = vsel %vm941_vm2, %v5315_v41, %v2089_v52  ;;  %v5329_v15 = vpack.c.bf16 %v3786_v0, %v3786_v0  ;;  %v5344_v52 = vrot.slane %v5180_v23, 1 }
  0x64   : > { %4214 = vmatpush3.bf16.msra.mxu1 %v4759_v63  ;;  %5922 = vst [vmem:[#allocation17_spill] sm:$0xff] %v5329_v15  ;;  %v5335_v63 = vpack.c.bf16 %v3789_v51, %v3789_v51  ;;  %v2095_v33 = vrot.slane %v5329_v15, 1  ;;  %v2101_v15 = vrot.slane %v5356_v55, 1 }
  0x65   : > { %4247 = vmatprep.subr.bf16.mxu1 %v5310_v40 }
  0x66   : > { %5923 = vst [vmem:[#allocation18_spill] sm:$0xff] %v5335_v63  ;;  %v2098_v0 = vrot.slane %v5335_v63, 1  ;;  %v2096_v51 = vsel %vm941_vm2, %v5340_v16, %v2095_v33  ;;  %v943_v33 = vrot.slane %v4869_v10, 1  ;;  %v958_v10 = vrot.slane %v4968_v37, 1 }
  0x67   : > { %4184 = vmatmul.mubr.msk.bf16.gmra.mrb[4].mxu1 %vm494_vm1, %v4906_v45  ;;  %v964_v37 = vrot.slane %v5014_v13, 1  ;;  %v3904_v13 = vld [vmem:[%s4857_s29 + $0x198] sm:$0xff] }
  0x68   : > { %4187 = vmatprep.mubr.msk.bf16.mxu1 %vm494_vm1, %v4931_v2 }
  0x69   : > { %4344 = vmatmul.mubr.msk.bf16.gmra.mrb[20].mxu0 %vm494_vm1, %v2090_v31  ;;  %v2099_v31 = vsel %vm941_vm2, %v5344_v52, %v2098_v0  ;;  %v967_v0 = vrot.slane %v5042_v47, 1 }
  0x6a   : > { %4347 = vmatprep.mubr.msk.bf16.mxu0 %vm494_vm1, %v2093_v12  ;;  %v5354_v12 = vpack.c.bf16 %v3791_v32, %v3790_v58  ;;  %v4762_v32 = vld [vmem:[%s5880_s1 + $0x78] sm:$0xff]   ;;  %v5391_v58 = vld [vmem:[%s5880_s1 + $0x80] sm:$0xff]  }
  0x6b   : > { %v968_v47 = vsel %vm941_vm2, %v5245_v24, %v967_v0 }
  0x6c   : > { %v2100_v63 = vrot.slane %v5354_v12, 1 }
  0x6e   : > { %v2102_v26 = vsel %vm941_vm2, %v2100_v63, %v2101_v15 }
  0x6f   : > { %4188 = vmatmul.mubr.msk.bf16.gmra.mrb[8].mxu1 %vm494_vm1, %v4961_v30 }
  0x70   : > { %4191 = vmatprep.mubr.msk.bf16.mxu1 %vm494_vm1, %v4988_v50 }
  0x71   : > { %4348 = vmatmul.mubr.msk.bf16.gmra.mrb[24].mxu0 %vm494_vm1, %v2096_v51  ;;  %v3867_v51 = vld [vmem:[%s4857_s29 + $0x70] sm:$0x3] }
  0x72   : > { %4351 = vmatprep.mubr.msk.bf16.mxu0 %vm494_vm1, %v2099_v31  ;;  %v965_v31 = vsel %vm941_vm2, %v5214_v11, %v964_v37  ;;  %v3873_v37 = vld [vmem:[%s4857_s29 + $0xa0] sm:$0x3] }
  0x73   : > { %v5490_v0 = vpack.c.bf16 %v3873_v37, %v3873_v37  ;;  %v5924_v37 = vld [vmem:[#allocation2_spill] sm:$0xff] }
  0x77   : > { %4192 = vmatmul.mubr.msk.bf16.gmra.mrb[12].mxu1 %vm494_vm1, %v5010_v4 }
  0x78   : > { %4195 = vmatprep.mubr.msk.bf16.mxu1 %vm494_vm1, %v5032_v38 }
  0x79   : > { %4352 = vmatmul.mubr.msk.bf16.gmra.mrb[28].mxu0 %vm494_vm1, %v2102_v26  ;;  %v3905_v26 = vld [vmem:[%s4857_s29 + $0x1a0] sm:$0xff] }
  0x7a   : > { %4359 = vmatprep.mubr.msk.bf16.mxu0 %vm494_vm1, %v4892_v27 }
  0x7f   : > { %4196 = vmatmul.mubr.msk.bf16.gmra.mrb[16].mxu1 %vm494_vm1, %v5059_v7 }
  0x80   : > { %4199 = vmatprep.mubr.msk.bf16.mxu1 %vm494_vm1, %v5079_v35 }
  0x81   : > { %4360 = vmatmul.mubr.msk.bf16.vlgmr.msra.gmra.mrb[0].mxu0 %vm494_vm1, %v4906_v45 }
  0x82   : > { %4392 = vmatpush3.bf16.msra.mxu0 %v5185_v3  ;;  %4363 = vmatprep.mubr.msk.bf16.mxu0 %vm494_vm1, %v4931_v2  ;;  %v942_v3 = vrot.slane %v4867_v9, 1  ;;  %v4763_v9 = vld [vmem:[%s5880_s1 + $0x38] sm:$0xff]  }
  0x83   : > { %4393 = vmatprep.subr.bf16.mxu0 %v4762_v32 }
  0x84   : > { %v944_v15 = vsel %vm941_vm2, %v942_v3, %v943_v33  ;;  %v5467_v33 = vpack.c.bf16 %v3867_v51, %v3867_v51 }
  0x86   : > { %4394 = vmatpush3.bf16.msra.mxu0 %v4762_v32 }
  0x87   : > { %4200 = vmatmul.mubr.msk.bf16.gmra.mrb[20].mxu1 %vm494_vm1, %v5102_v18  ;;  %4427 = vmatprep.subr.bf16.mxu0 %v5391_v58 }
  0x88   : > { %4203 = vmatprep.mubr.msk.bf16.mxu1 %vm494_vm1, %v5107_v20 }
  0x89   : > { %4364 = vmatmul.mubr.msk.bf16.gmra.mrb[4].mxu0 %vm494_vm1, %v4961_v30 }
  0x8a   : > { %4367 = vmatprep.mubr.msk.bf16.mxu0 %vm494_vm1, %v4988_v50 }
  0x8f   : > { %4204 = vmatmul.mubr.msk.bf16.gmra.mrb[24].mxu1 %vm494_vm1, %v5137_v29 }
  0x90   : > { %4207 = vmatprep.mubr.msk.bf16.mxu1 %vm494_vm1, %v5153_v43 }
  0x91   : > { %4368 = vmatmul.mubr.msk.bf16.gmra.mrb[8].mxu0 %vm494_vm1, %v5010_v4 }
  0x92   : > { %4371 = vmatprep.mubr.msk.bf16.mxu0 %vm494_vm1, %v5032_v38 }
  0x97   : > { %4208 = vmatmul.mubr.msk.bf16.gmra.mrb[28].mxu1 %vm494_vm1, %v5180_v23 }
  0x98   : > { %4215 = vmatprep.mubr.msk.bf16.mxu1 %vm494_vm1, %v944_v15  ;;  %v5471_v15 = vpack.c.bf16 %v3905_v26, %v3904_v13  ;;  %v976_v26 = vrot.slane %v5104_v21, 1 }
  0x99   : > { %4372 = vmatmul.mubr.msk.bf16.gmra.mrb[12].mxu0 %vm494_vm1, %v5059_v7 }
  0x9a   : > { %4375 = vmatprep.mubr.msk.bf16.mxu0 %vm494_vm1, %v5079_v35  ;;  %v977_v21 = vsel %vm941_vm2, %v5286_v57, %v976_v26 }
  0x9f   : > { %4216 = vmatmul.mubr.msk.bf16.vlgmr.msra.gmra.mrb[0].mxu1 %vm494_vm1, %v5237_v25  ;;  %v961_v25 = vrot.slane %v4992_v53, 1 }
  0xa0   : > { %4248 = vmatpush3.bf16.msra.mxu1 %v5310_v40  ;;  %4219 = vmatprep.mubr.msk.bf16.mxu1 %vm494_vm1, %v5250_v22  ;;  %v3861_v22 = vld [vmem:[%s4857_s29 + $0x40] sm:$0x3]  ;;  %v3864_v40 = vld [vmem:[%s4857_s29 + $0x58] sm:$0x3] }
  0xa1   : > { %4249 = vmatprep.subr.bf16.mxu1 %v4763_v9  ;;  %4376 = vmatmul.mubr.msk.bf16.gmra.mrb[16].mxu0 %vm494_vm1, %v5102_v18  ;;  %v5465_v32 = vpack.c.bf16 %v3864_v40, %v3864_v40 }
  0xa2   : > { %4379 = vmatprep.mubr.msk.bf16.mxu0 %vm494_vm1, %v5107_v20 }
  0xa4   : > { %4250 = vmatpush3.bf16.msra.mxu1 %v4763_v9  ;;  %v970_v9 = vrot.slane %v5061_v8, 1 }
  0xa5   : > { %4463 = vmatprep.subr.bf16.mxu1 %v4836_v1  ;;  %v959_v1 = vsel %vm941_vm2, %v5173_v19, %v958_v10  ;;  %v2720_v10 = vshll.u32 %v5465_v32, 16 }
  0xa6   : > { %v971_v40 = vsel %vm941_vm2, %v5259_v6, %v970_v9  ;;  %v4765_v9 = vld [vmem:[%s5880_s1 + $0x88] sm:$0xff]  }
  0xa7   : > { %4220 = vmatmul.mubr.msk.bf16.gmra.mrb[4].mxu1 %vm494_vm1, %v5254_v42  ;;  %v5446_v42 = vpack.c.bf16 %v3861_v22, %v3861_v22  ;;  %v2731_v22 = vshll.u32 %v5467_v33, 16  ;;  %v2722_v8 = vrot.slane %v2720_v10, 1  ;;  %v979_v10 = vrot.slane %v5124_v54, 1 }
  0xa8   : > { %4223 = vmatprep.mubr.msk.bf16.mxu1 %vm494_vm1, %v5265_v39  ;;  %v962_v39 = vsel %vm941_vm2, %v5210_v36, %v961_v25 }
  0xa9   : > { %4380 = vmatmul.mubr.msk.bf16.gmra.mrb[20].mxu0 %vm494_vm1, %v5137_v29  ;;  %v2709_v53 = vshll.u32 %v5446_v42, 16  ;;  %v2723_v51 = vsel %vm284_vm0, %v4958_v28, %v2722_v8  ;;  %v980_v54 = vsel %vm941_vm2, %v5315_v41, %v979_v10 }
  0xaa   : > { %4383 = vmatprep.mubr.msk.bf16.mxu0 %vm494_vm1, %v5153_v43 }
  0xab   : > { %v2711_v3 = vrot.slane %v2709_v53, 1 }
  0xad   : > { %v2712_v25 = vsel %vm284_vm0, %v4923_v59, %v2711_v3  ;;  %v2733_v59 = vrot.slane %v2731_v22, 1  ;;  %v2753_v3 = vshll.u32 %v5490_v0, 16 }
  0xaf   : > { %4224 = vmatmul.mubr.msk.bf16.gmra.mrb[8].mxu1 %vm494_vm1, %v959_v1  ;;  %v3870_v1 = vld [vmem:[%s4857_s29 + $0x88] sm:$0x3]  ;;  %v2734_v13 = vsel %vm284_vm0, %v4982_v44, %v2733_v59  ;;  %v2755_v22 = vrot.slane %v2753_v3, 1 }
  0xb0   : > { %4227 = vmatprep.mubr.msk.bf16.mxu1 %vm494_vm1, %v962_v39  ;;  %v973_v39 = vrot.slane %v5083_v46, 1  ;;  %v5486_v53 = vpack.c.bf16 %v3870_v1, %v3870_v1 }
  0xb1   : > { %4384 = vmatmul.mubr.msk.bf16.gmra.mrb[24].mxu0 %vm494_vm1, %v5180_v23  ;;  %v2756_v8 = vsel %vm284_vm0, %v5924_v37, %v2755_v22 }
  0xb2   : > { %4387 = vmatprep.mubr.msk.bf16.mxu0 %vm494_vm1, %v5354_v12  ;;  %v974_v46 = vsel %vm941_vm2, %v5282_v17, %v973_v39 }
  0xb7   : > { %4228 = vmatmul.mubr.msk.bf16.gmra.mrb[12].mxu1 %vm494_vm1, %v965_v31  ;;  %v2742_v31 = vshll.u32 %v5486_v53, 16 }
  0xb8   : > { %4231 = vmatprep.mubr.msk.bf16.mxu1 %vm494_vm1, %v968_v47  ;;  %v3876_v47 = vld [vmem:[%s4857_s29 + $0xb8] sm:$0x3] }
  0xb9   : > { %4388 = vmatmul.mubr.msk.bf16.gmra.mrb[28].mxu0 %vm494_vm1, %v5471_v15  ;;  %v2744_v28 = vrot.slane %v2742_v31, 1  ;;  %v5512_v44 = vpack.c.bf16 %v3876_v47, %v3876_v47  ;;  %v3885_v31 = vld [vmem:[%s4857_s29 + $0x100] sm:$0x3] }
  0xba   : > { %4395 = vmatprep.mubr.msk.bf16.mxu0 %vm494_vm1, %v2712_v25  ;;  %v3879_v25 = vld [vmem:[%s4857_s29 + $0xd0] sm:$0x3] }
  0xbb   : > { %v5516_v1 = vpack.c.bf16 %v3879_v25, %v3879_v25  ;;  %v2764_v39 = vshll.u32 %v5512_v44, 16  ;;  %v5926_v25 = vld [vmem:[#allocation4_spill] sm:$0xff] }
  0xbd   : > { %v2775_v59 = vshll.u32 %v5516_v1, 16 }
  0xbf   : > { %4232 = vmatmul.mubr.msk.bf16.gmra.mrb[16].mxu1 %vm494_vm1, %v971_v40  ;;  %v982_v40 = vrot.slane %v5150_v56, 1  ;;  %v2777_v3 = vrot.slane %v2775_v59, 1  ;;  %v5538_v56 = vpack.c.bf16 %v3885_v31, %v3885_v31  ;;  %v5928_v31 = vld [vmem:[#allocation8_spill] sm:$0xff] }
  0xc0   : > { %4235 = vmatprep.mubr.msk.bf16.mxu1 %vm494_vm1, %v974_v46  ;;  %v3882_v46 = vld [vmem:[%s4857_s29 + $0xe8] sm:$0x3] }
  0xc1   : > { %4396 = vmatmul.mubr.msk.bf16.vlgmr.msra.gmra.mrb[0].mxu0 %vm494_vm1, %v2723_v51  ;;  %v985_v51 = vrot.slane %v5160_v48, 1  ;;  %v983_v26 = vsel %vm941_vm2, %v5319_v5, %v982_v40  ;;  %v5925_v48 = vld [vmem:[#allocation3_spill] sm:$0xff]  ;;  %v2797_v22 = vshll.u32 %v5538_v56, 16 }
  0xc2   : > { %4428 = vmatpush3.bf16.msra.mxu0 %v5391_v58  ;;  %4399 = vmatprep.mubr.msk.bf16.mxu0 %vm494_vm1, %v2734_v13  ;;  %v2745_v58 = vsel %vm284_vm0, %v5003_v62, %v2744_v28  ;;  %v2766_v62 = vrot.slane %v2764_v39, 1  ;;  %v5534_v13 = vpack.c.bf16 %v3882_v46, %v3882_v46  ;;  %v2778_v28 = vsel %vm284_vm0, %v5926_v25, %v2777_v3  ;;  %v3894_v3 = vld [vmem:[%s4857_s29 + $0x148] sm:$0x3] }
  0xc3   : > { %4429 = vmatprep.subr.bf16.mxu0 %v4765_v9  ;;  %v986_v47 = vsel %vm941_vm2, %v5340_v16, %v985_v51  ;;  %v2799_v40 = vrot.slane %v2797_v22, 1  ;;  %v4766_v22 = vld [vmem:[%s5880_s1 + $0x40] sm:$0xff]  }
  0xc4   : > { %v2786_v10 = vshll.u32 %v5534_v13, 16 }
  0xc6   : > { %4430 = vmatpush3.bf16.msra.mxu0 %v4765_v9  ;;  %v2767_v9 = vsel %vm284_vm0, %v5925_v48, %v2766_v62  ;;  %v2788_v39 = vrot.slane %v2786_v10, 1  ;;  %v2800_v62 = vsel %vm284_vm0, %v5928_v31, %v2799_v40  ;;  %v4767_v40 = vld [vmem:[%s5880_s1 + $0x48] sm:$0xff]  }
  0xc7   : > { %4236 = vmatmul.mubr.msk.bf16.gmra.mrb[20].mxu1 %vm494_vm1, %v977_v21  ;;  %v988_v21 = vrot.slane %v5200_v61, 1  ;;  %v5927_v61 = vld [vmem:[#allocation5_spill] sm:$0xff] }
  0xc8   : > { %4239 = vmatprep.mubr.msk.bf16.mxu1 %vm494_vm1, %v980_v54  ;;  %v3888_v54 = vld [vmem:[%s4857_s29 + $0x118] sm:$0x3]  ;;  %v2789_v46 = vsel %vm284_vm0, %v5927_v61, %v2788_v39 }
  0xc9   : > { %4400 = vmatmul.mubr.msk.bf16.gmra.mrb[4].mxu0 %vm494_vm1, %v2745_v58  ;;  %v3891_v58 = vld [vmem:[%s4857_s29 + $0x130] sm:$0x3]  ;;  %v5555_v37 = vpack.c.bf16 %v3888_v54, %v3888_v54  ;;  %v5930_v54 = vld [vmem:[#allocation10_spill] sm:$0xff] }
  0xca   : > { %4403 = vmatprep.mubr.msk.bf16.mxu0 %vm494_vm1, %v2756_v8  ;;  %v989_v8 = vsel %vm941_vm2, %v5344_v52, %v988_v21  ;;  %v5559_v59 = vpack.c.bf16 %v3891_v58, %v3891_v58 }
  0xcb   : > { %v2808_v51 = vshll.u32 %v5555_v37, 16 }
  0xcd   : > { %v2810_v48 = vrot.slane %v2808_v51, 1 }
  0xcf   : > { %4240 = vmatmul.mubr.msk.bf16.gmra.mrb[24].mxu1 %vm494_vm1, %v983_v26  ;;  %v2819_v26 = vshll.u32 %v5559_v59, 16 }
  0xd0   : > { %4243 = vmatprep.mubr.msk.bf16.mxu1 %vm494_vm1, %v986_v47  ;;  %v3897_v47 = vld [vmem:[%s4857_s29 + $0x160] sm:$0x3] }
  0xd1   : > { %4404 = vmatmul.mubr.msk.bf16.gmra.mrb[8].mxu0 %vm494_vm1, %v2767_v9  ;;  %v5574_v9 = vpack.c.bf16 %v3894_v3, %v3894_v3  ;;  %v2821_v10 = vrot.slane %v2819_v26, 1  ;;  %v5576_v25 = vpack.c.bf16 %v3897_v47, %v3897_v47  ;;  %v2858_v26 = vshll.u32 %v5354_v12, 16 }
  0xd2   : > { %4407 = vmatprep.mubr.msk.bf16.mxu0 %vm494_vm1, %v2778_v28 }
  0xd3   : > { %v2830_v21 = vshll.u32 %v5574_v9, 16  ;;  %v2822_v58 = vsel %vm284_vm0, %v5930_v54, %v2821_v10  ;;  %v2841_v39 = vshll.u32 %v5576_v25, 16  ;;  %v2856_v10 = vshrl.u32 %v5354_v12, 16 }
  0xd7   : > { %4244 = vmatmul.mubr.msk.bf16.gmra.mrb[28].mxu1 %vm494_vm1, %v989_v8  ;;  %v3900_v8 = vld [vmem:[%s4857_s29 + $0x178] sm:$0x3] }
  0xd8   : > { %4251 = vmatprep.mubr.msk.bf16.mxu1 %vm494_vm1, %v4875_v14  ;;  %v5929_v14 = vld [vmem:[#allocation9_spill] sm:$0xff]  ;;  %v5598_v51 = vpack.c.bf16 %v3900_v8, %v3900_v8 }
  0xd9   : > { %4408 = vmatmul.mubr.msk.bf16.gmra.mrb[12].mxu0 %vm494_vm1, %v2789_v46  ;;  %v2811_v28 = vsel %vm284_vm0, %v5929_v14, %v2810_v48  ;;  %v2832_v46 = vrot.slane %v2830_v21, 1 }
  0xda   : > { %4411 = vmatprep.mubr.msk.bf16.mxu0 %vm494_vm1, %v2800_v62  ;;  %v2852_v47 = vshll.u32 %v5598_v51, 16 }
  0xdb   : > { %v2833_v3 = vsel %vm284_vm0, %v5198_v49, %v2832_v46 }
  0xdf   : > { %4252 = vmatmul.mubr.msk.bf16.vlgmr.msra.gmra.mrb[0].mxu1 %vm494_vm1, %v4892_v27  ;;  %v3903_v27 = vld [vmem:[%s4857_s29 + $0x190] sm:$0x3] }
  0xe0   : > { %4465 = vmatpush3.bf16.msra.mxu1 %v4766_v22  ;;  %4255 = vmatprep.mubr.msk.bf16.mxu1 %vm494_vm1, %v4906_v45  ;;  %v2843_v45 = vrot.slane %v2841_v39, 1  ;;  %v5600_v62 = vpack.c.bf16 %v3903_v27, %v3903_v27  ;;  %v3906_v22 = vld [vmem:[%s4857_s29 + $0x1a8] sm:$0x3]  ;;  %v2869_v39 = vshll.u32 %v5471_v15, 16 }
  0xe1   : > { %4464 = vmatprep.subr.bf16.mxu1 %v4767_v40  ;;  %4412 = vmatmul.mubr.msk.bf16.gmra.mrb[16].mxu0 %vm494_vm1, %v2811_v28  ;;  %v2860_v28 = vrot.slane %v2858_v26, 1 }
  0xe2   : > { %4415 = vmatprep.mubr.msk.bf16.mxu0 %vm494_vm1, %v2822_v58  ;;  %v2844_v48 = vsel %vm284_vm0, %v5204_v60, %v2843_v45  ;;  %v2863_v21 = vshll.u32 %v5600_v62, 16  ;;  %v5617_v58 = vpack.c.bf16 %v3906_v22, %v3906_v22  ;;  %v2871_v46 = vrot.slane %v2869_v39, 1 }
  0xe3   : > { %v5620_v8 = vor.u32 %v2860_v28, %v2856_v10  ;;  %v3172_v28 = vrot.slane %v5465_v32, 1  ;;  %v3178_v32 = vrot.slane %v5486_v53, 1  ;;  %v3184_v53 = vrot.slane %v5512_v44, 1 }
  0xe4   : > { %4466 = vmatpush3.bf16.msra.mxu1 %v4767_v40  ;;  %v2867_v40 = vshrl.u32 %v5471_v15, 16  ;;  %v2874_v45 = vshll.u32 %v5617_v58, 16 }
  0xe7   : > { %4256 = vmatmul.mubr.msk.bf16.gmra.mrb[4].mxu1 %vm494_vm1, %v4931_v2  ;;  %v2854_v2 = vrot.slane %v2852_v47, 1  ;;  %v3169_v47 = vrot.slane %v5446_v42, 1 }
  0xe8   : > { %4259 = vmatprep.mubr.msk.bf16.mxu1 %vm494_vm1, %v4961_v30  ;;  %v2865_v30 = vrot.slane %v2863_v21, 1  ;;  %v3175_v21 = vrot.slane %v5467_v33, 1  ;;  %v3181_v33 = vrot.slane %v5490_v0, 1  ;;  %v3187_v0 = vrot.slane %v5516_v1, 1 }
  0xe9   : > { %4416 = vmatmul.mubr.msk.bf16.gmra.mrb[20].mxu0 %vm494_vm1, %v2833_v3  ;;  %v2855_v27 = vsel %vm284_vm0, %v5230_v34, %v2854_v2  ;;  %v2872_v3 = vor.u32 %v2871_v46, %v2867_v40  ;;  %v5934_v2 = vld [vmem:[#allocation12_spill] sm:$0xff]  ;;  %v3190_v1 = vrot.slane %v5534_v13, 1  ;;  %v3199_v46 = vrot.slane %v5559_v59, 1 }
  0xea   : > { %4419 = vmatprep.mubr.msk.bf16.mxu0 %vm494_vm1, %v2844_v48  ;;  %v2866_v26 = vsel %vm284_vm0, %v5620_v8, %v2865_v30  ;;  %v1684_v39 = vshll.u32 %v5934_v2, 16  ;;  %v5936_v30 = vld [vmem:[#allocation14_spill] sm:$0xff]  ;;  %v3202_v59 = vrot.slane %v5574_v9, 1 }
  0xef   : > { %4260 = vmatmul.mubr.msk.bf16.gmra.mrb[8].mxu1 %vm494_vm1, %v4988_v50  ;;  %v2876_v50 = vrot.slane %v2874_v45, 1  ;;  %v5937_v45 = vld [vmem:[#allocation15_spill] sm:$0xff] }
  0xf0   : > { %4263 = vmatprep.mubr.msk.bf16.mxu1 %vm494_vm1, %v5010_v4  ;;  %v5931_v4 = vld [vmem:[#allocation6_spill] sm:$0xff] }
  0xf1   : > { %4420 = vmatmul.mubr.msk.bf16.gmra.mrb[24].mxu0 %vm494_vm1, %v2855_v27  ;;  %v2877_v48 = vsel %vm284_vm0, %v2872_v3, %v2876_v50  ;;  %v3170_v10 = vsel %vm941_vm2, %v5931_v4, %v3169_v47  ;;  %v1706_v27 = vshll.u32 %v5936_v30, 16  ;;  %v5938_v3 = vld [vmem:[#allocation16_spill] sm:$0xff] }
  0xf2   : > { %4423 = vmatprep.mubr.msk.bf16.mxu0 %vm494_vm1, %v2866_v26  ;;  %v1717_v26 = vshll.u32 %v5937_v45, 16  ;;  %v1728_v50 = vshll.u32 %v5938_v3, 16 }
  0xf3   : > { %v1708_v13 = vrot.slane %v1706_v27, 1 }
  0xf4   : > { %v1730_v47 = vrot.slane %v1728_v50, 1 }
  0xf7   : > { %4264 = vmatmul.mubr.msk.bf16.gmra.mrb[12].mxu1 %vm494_vm1, %v5032_v38  ;;  %v5932_v38 = vld [vmem:[#allocation7_spill] sm:$0xff] }
  0xf8   : > { %4267 = vmatprep.mubr.msk.bf16.mxu1 %vm494_vm1, %v5059_v7  ;;  %v3173_v42 = vsel %vm941_vm2, %v5932_v38, %v3172_v28  ;;  %v5933_v7 = vld [vmem:[#allocation11_spill] sm:$0xff]  ;;  %v5940_v28 = vld [vmem:[#allocation18_spill] sm:$0xff] }
  0xf9   : > { %4424 = vmatmul.mubr.msk.bf16.gmra.mrb[28].mxu0 %vm494_vm1, %v2877_v48  ;;  %v3176_v22 = vsel %vm941_vm2, %v5933_v7, %v3175_v21  ;;  %v3203_v21 = vsel %vm941_vm2, %v5319_v5, %v3202_v59  ;;  %v1761_v5 = vshll.u32 %v5356_v55, 16  ;;  %v3213_v55 = vrot.slane %v5471_v15, 1 }
  0xfa   : > { %4431 = vmatprep.mubr.msk.bf16.mxu0 %vm494_vm1, %v3170_v10  ;;  %v1731_v10 = vsel %vm284_vm0, %v5198_v49, %v1730_v47 }
  0xff   : > { %4268 = vmatmul.mubr.msk.bf16.gmra.mrb[16].mxu1 %vm494_vm1, %v5079_v35  ;;  %v3179_v35 = vsel %vm941_vm2, %v5173_v19, %v3178_v32  ;;  %v1686_v19 = vrot.slane %v1684_v39, 1 }
 0x100   : > { %4271 = vmatprep.mubr.msk.bf16.mxu1 %vm494_vm1, %v5102_v18  ;;  %v3182_v18 = vsel %vm941_vm2, %v5210_v36, %v3181_v33  ;;  %v5935_v36 = vld [vmem:[#allocation13_spill] sm:$0xff] }
 0x101   : > { %4432 = vmatmul.mubr.msk.bf16.vlgmr.msra.gmra.mrb[0].mxu0 %vm494_vm1, %v3173_v42  ;;  %v1695_v44 = vshll.u32 %v5935_v36, 16  ;;  %v5762_v36 = vld [vmem:[%s5881_s2] ss:$0 sm:$0xff] }
 0x102   : > { %4435 = vmatprep.mubr.msk.bf16.mxu0 %vm494_vm1, %v3176_v22  ;;  %v1763_v22 = vrot.slane %v1761_v5, 1 }
 0x107   : > { %4272 = vmatmul.mubr.msk.bf16.gmra.mrb[20].mxu1 %vm494_vm1, %v5107_v20  ;;  %v3185_v20 = vsel %vm941_vm2, %v5214_v11, %v3184_v53  ;;  %v1687_v11 = vsel %vm284_vm0, %v5927_v61, %v1686_v19  ;;  %v3196_v61 = vrot.slane %v5555_v37, 1  ;;  %v1719_v37 = vrot.slane %v1717_v26, 1 }
 0x108   : > { %4275 = vmatprep.mubr.msk.bf16.mxu1 %vm494_vm1, %v5137_v29  ;;  %v3188_v29 = vsel %vm941_vm2, %v5245_v24, %v3187_v0  ;;  %v3191_v24 = vsel %vm941_vm2, %v5259_v6, %v3190_v1  ;;  %v1709_v6 = vsel %vm284_vm0, %v5929_v14, %v1708_v13  ;;  %v5939_v14 = vld [vmem:[#allocation17_spill] sm:$0xff] }
 0x109   : > { %4436 = vmatmul.mubr.msk.bf16.gmra.mrb[4].mxu0 %vm494_vm1, %v3179_v35  ;;  %v1739_v48 = vshll.u32 %v5939_v14, 16  ;;  %v1720_v4 = vsel %vm284_vm0, %v5930_v54, %v1719_v37  ;;  %v3211_v54 = vrot.slane %v5600_v62, 1 }
 0x10a   : > { %4439 = vmatprep.mubr.msk.bf16.mxu0 %vm494_vm1, %v3182_v18 }
 0x10b   : > { %v1741_v38 = vrot.slane %v1739_v48, 1 }
 0x10d   : > { %v1742_v49 = vsel %vm284_vm0, %v5204_v60, %v1741_v38  ;;  %v3212_v60 = vsel %vm941_vm2, %v2100_v63, %v3211_v54 }
 0x10f   : > { %4276 = vmatmul.mubr.msk.bf16.gmra.mrb[24].mxu1 %vm494_vm1, %v5153_v43  ;;  %v3193_v43 = vrot.slane %v5538_v56, 1 }
 0x110   : > { %4279 = vmatprep.mubr.msk.bf16.mxu1 %vm494_vm1, %v5180_v23  ;;  %v1697_v23 = vrot.slane %v1695_v44, 1 }
 0x111   : > { %4440 = vmatmul.mubr.msk.bf16.gmra.mrb[8].mxu0 %vm494_vm1, %v3185_v20  ;;  %v3194_v40 = vsel %vm941_vm2, %v5282_v17, %v3193_v43  ;;  %v3197_v17 = vsel %vm941_vm2, %v5286_v57, %v3196_v61  ;;  %v3205_v57 = vrot.slane %v5576_v25, 1  ;;  %v3208_v25 = vrot.slane %v5598_v51, 1 }
 0x112   : > { %4443 = vmatprep.mubr.msk.bf16.mxu0 %vm494_vm1, %v3188_v29  ;;  %v1698_v56 = vsel %vm284_vm0, %v5928_v31, %v1697_v23  ;;  %v3200_v31 = vsel %vm941_vm2, %v5315_v41, %v3199_v46  ;;  %v1750_v41 = vshll.u32 %v5940_v28, 16  ;;  %v1764_v51 = vsel %vm284_vm0, %v5620_v8, %v1763_v22 }
 0x113   : > { %v3206_v9 = vsel %vm941_vm2, %v5340_v16, %v3205_v57  ;;  %v3209_v16 = vsel %vm941_vm2, %v5344_v52, %v3208_v25 }
 0x114   : > { %v1752_v42 = vrot.slane %v1750_v41, 1 }
 0x116   : > { %v1753_v7 = vsel %vm284_vm0, %v5230_v34, %v1752_v42  ;;  %v3214_v34 = vrot.slane %v5617_v58, 1 }
 0x117   : > { %4280 = vmatmul.mubr.msk.bf16.gmra.mrb[28].mxu1 %vm494_vm1, %v5354_v12 }
 0x118   : > { %4303 = vmatprep.mubr.msk.bf16.mxu1 %vm494_vm1, %v1687_v11  ;;  %v3215_v52 = vsel %vm941_vm2, %v3213_v55, %v3214_v34 }
 0x119   : > { %4444 = vmatmul.mubr.msk.bf16.gmra.mrb[12].mxu0 %vm494_vm1, %v3191_v24 }
 0x11a   : > { %4447 = vmatprep.mubr.msk.bf16.mxu0 %vm494_vm1, %v3194_v40 }
 0x11f   : > { %4304 = vmatmul.mubr.msk.bf16.vlgmr.msra.gmra.mrb[16].mxu1 %vm494_vm1, %v1698_v56 }
 0x120   : > { %4307 = vmatprep.mubr.msk.bf16.mxu1 %vm494_vm1, %v1709_v6 }
 0x121   : > { %4448 = vmatmul.mubr.msk.bf16.gmra.mrb[16].mxu0 %vm494_vm1, %v3197_v17 }
 0x122   : > { %4451 = vmatprep.mubr.msk.bf16.mxu0 %vm494_vm1, %v3200_v31 }
 0x127   : > { %4308 = vmatmul.mubr.msk.bf16.gmra.mrb[20].mxu1 %vm494_vm1, %v1720_v4 }
 0x128   : > { %4311 = vmatprep.mubr.msk.bf16.mxu1 %vm494_vm1, %v1731_v10 }
 0x129   : > { %4452 = vmatmul.mubr.msk.bf16.gmra.mrb[20].mxu0 %vm494_vm1, %v3203_v21 }
 0x12a   : > { %4455 = vmatprep.mubr.msk.bf16.mxu0 %vm494_vm1, %v3206_v9 }
 0x12f   : > { %4312 = vmatmul.mubr.msk.bf16.gmra.mrb[24].mxu1 %vm494_vm1, %v1742_v49 }
 0x130   : > { %4315 = vmatprep.mubr.msk.bf16.mxu1 %vm494_vm1, %v1753_v7 }
 0x131   : > { %4456 = vmatmul.mubr.msk.bf16.gmra.mrb[24].mxu0 %vm494_vm1, %v3209_v16 }
 0x132   : > { %4459 = vmatprep.mubr.msk.bf16.mxu0 %vm494_vm1, %v3212_v60 }
 0x137   : > { %4316 = vmatmul.mubr.msk.bf16.gmra.mrb[28].mxu1 %vm494_vm1, %v1764_v51 }
 0x139   : > { %4460 = vmatmul.mubr.msk.bf16.gmra.mrb[28].mxu0 %vm494_vm1, %v3215_v52 }
 0x1b2   : > { %v4253_v12 = vpop.f32.mrb[0].mxu1 }
 0x1b3   : > { %v1430_v63 = vpop.f32.mrb[1].mxu1 }
 0x1b4   : > { %v4254_v62 = vpop.f32.mrb[2].mxu1 }
 0x1b5   : > { %v1433_v32 = vpop.f32.mrb[3].mxu1 }
 0x1ba   : > { %v4257_v33 = vpop.f32.mrb[4].mxu1 }
 0x1bb   : > { %v1446_v35 = vpop.f32.mrb[5].mxu1 }
 0x1bc   : > { %v4258_v18 = vpop.f32.mrb[6].mxu1 }
 0x1bd   : > { %v1449_v15 = vpop.f32.mrb[7].mxu1 }
 0x1c2   : > { %v4261_v53 = vpop.f32.mrb[8].mxu1 }
 0x1c3   : > { %v1462_v58 = vpop.f32.mrb[9].mxu1 }
 0x1c4   : > { %v4262_v0 = vpop.f32.mrb[10].mxu1 }
 0x1c5   : > { %v1465_v2 = vpop.f32.mrb[11].mxu1 }
 0x1ca   : > { %v5751_v8 = vpop.f32.mrb[12].mxu1 }
 0x1cb   : > { %v5753_v39 = vpop.f32.mrb[13].mxu1 }
 0x1cc   : > { %v5755_v20 = vpop.f32.mrb[14].mxu1 }
 0x1cd   : > { %v5757_v29 = vpop.f32.mrb[15].mxu1 }
 0x1d4   : > { %v4433_v19 = vpop.f32.mrb[0].mxu0 }
 0x1d5   : > { %v4467_v44 = vadd.f32 %v4433_v19, %v4253_v12  ;;  %v3315_v1 = vpop.f32.mrb[1].mxu0 }
 0x1d6   : > { %v4468_v43 = vadd.f32 %v3315_v1, %v1430_v63  ;;  %v4434_v11 = vpop.f32.mrb[2].mxu0 }
 0x1d7   : > { %v3483_v30 = vadd.f32 %v4467_v44, %v5762_v36  ;;  %v4469_v27 = vadd.f32 %v4434_v11, %v4254_v62  ;;  %v3318_v23 = vpop.f32.mrb[3].mxu0 }
 0x1d8   : > { %v3481_v24 = vadd.f32 %v4468_v43, %v5762_v36  ;;  %v4470_v40 = vadd.f32 %v3318_v23, %v1433_v32 }
 0x1d9   : > { %v3515_v13 = vmax.f32 %v3483_v30, 0.0  ;;  %v3484_v56 = vadd.f32 %v4469_v27, %v5762_v36 }
 0x1da   : > { %v3513_v61 = vmax.f32 %v3481_v24, 0.0  ;;  %v3482_v46 = vadd.f32 %v4470_v40, %v5762_v36 }
 0x1db   : > { %3548 = vst.msk [vmem:[%s5769_s19 + $0x10] sm:$0xff] %vm3545_vm3, %v3515_v13  ;;  %v3516_v45 = vmax.f32 %v3484_v56, 0.0 }
 0x1dc   : > { %3546 = vst.msk [vmem:[%s5769_s19] sm:$0xff] %vm3545_vm3, %v3513_v61  ;;  %v3514_v26 = vmax.f32 %v3482_v46, 0.0  ;;  %v4437_v6 = vpop.f32.mrb[4].mxu0 }
 0x1dd   : > { %3549 = vst.msk [vmem:[%s5769_s19 + $0x18] sm:$0xff] %vm3545_vm3, %v3516_v45  ;;  %v4471_v3 = vadd.f32 %v4437_v6, %v4257_v33  ;;  %v3331_v50 = vpop.f32.mrb[5].mxu0 }
 0x1de   : > { %3547 = vst.msk [vmem:[%s5769_s19 + $0x8] sm:$0xff] %vm3545_vm3, %v3514_v26  ;;  %v4472_v17 = vadd.f32 %v3331_v50, %v1446_v35  ;;  %v4438_v31 = vpop.f32.mrb[6].mxu0 }
 0x1df   : > { %v3487_v37 = vadd.f32 %v4471_v3, %v5762_v36  ;;  %v4473_v47 = vadd.f32 %v4438_v31, %v4258_v18  ;;  %v3334_v59 = vpop.f32.mrb[7].mxu0 }
 0x1e0   : > { %v3485_v14 = vadd.f32 %v4472_v17, %v5762_v36  ;;  %v4474_v48 = vadd.f32 %v3334_v59, %v1449_v15 }
 0x1e1   : > { %v3519_v4 = vmax.f32 %v3487_v37, 0.0  ;;  %v3488_v57 = vadd.f32 %v4473_v47, %v5762_v36 }
 0x1e2   : > { %v3517_v10 = vmax.f32 %v3485_v14, 0.0  ;;  %v3486_v28 = vadd.f32 %v4474_v48, %v5762_v36 }
 0x1e3   : > { %3552 = vst.msk [vmem:[%s5769_s19 + $0x30] sm:$0xff] %vm3545_vm3, %v3519_v4  ;;  %v3520_v41 = vmax.f32 %v3488_v57, 0.0 }
 0x1e4   : > { %3550 = vst.msk [vmem:[%s5769_s19 + $0x20] sm:$0xff] %vm3545_vm3, %v3517_v10  ;;  %v3518_v21 = vmax.f32 %v3486_v28, 0.0  ;;  %v4441_v38 = vpop.f32.mrb[8].mxu0 }
 0x1e5   : > { %3553 = vst.msk [vmem:[%s5769_s19 + $0x38] sm:$0xff] %vm3545_vm3, %v3520_v41  ;;  %v4475_v9 = vadd.f32 %v4441_v38, %v4261_v53  ;;  %v3347_v42 = vpop.f32.mrb[9].mxu0 }
 0x1e6   : > { %3551 = vst.msk [vmem:[%s5769_s19 + $0x28] sm:$0xff] %vm3545_vm3, %v3518_v21  ;;  %v4476_v49 = vadd.f32 %v3347_v42, %v1462_v58  ;;  %v4442_v25 = vpop.f32.mrb[10].mxu0 }
 0x1e7   : > { %v3491_v54 = vadd.f32 %v4475_v9, %v5762_v36  ;;  %v4477_v5 = vadd.f32 %v4442_v25, %v4262_v0  ;;  %v3350_v7 = vpop.f32.mrb[11].mxu0 }
 0x1e8   : > { %v3489_v16 = vadd.f32 %v4476_v49, %v5762_v36  ;;  %v4478_v60 = vadd.f32 %v3350_v7, %v1465_v2 }
 0x1e9   : > { %v3523_v22 = vmax.f32 %v3491_v54, 0.0  ;;  %v3492_v55 = vadd.f32 %v4477_v5, %v5762_v36 }
 0x1ea   : > { %v3521_v34 = vmax.f32 %v3489_v16, 0.0  ;;  %v3490_v51 = vadd.f32 %v4478_v60, %v5762_v36 }
 0x1eb   : > { %3556 = vst.msk [vmem:[%s5769_s19 + $0x50] sm:$0xff] %vm3545_vm3, %v3523_v22  ;;  %v3524_v52 = vmax.f32 %v3492_v55, 0.0 }
 0x1ec   : > { %3554 = vst.msk [vmem:[%s5769_s19 + $0x40] sm:$0xff] %vm3545_vm3, %v3521_v34  ;;  %v3522_v12 = vmax.f32 %v3490_v51, 0.0  ;;  %v4445_v63 = vpop.f32.mrb[12].mxu0 }
 0x1ed   : > { %3557 = vst.msk [vmem:[%s5769_s19 + $0x58] sm:$0xff] %vm3545_vm3, %v3524_v52  ;;  %v4479_v62 = vadd.f32 %v4445_v63, %v5751_v8  ;;  %v3363_v32 = vpop.f32.mrb[13].mxu0 }
 0x1ee   : > { %3555 = vst.msk [vmem:[%s5769_s19 + $0x48] sm:$0xff] %vm3545_vm3, %v3522_v12  ;;  %v4480_v33 = vadd.f32 %v3363_v32, %v5753_v39  ;;  %v4446_v35 = vpop.f32.mrb[14].mxu0 }
 0x1ef   : > { %v3495_v18 = vadd.f32 %v4479_v62, %v5762_v36  ;;  %v4481_v15 = vadd.f32 %v4446_v35, %v5755_v20  ;;  %v3366_v53 = vpop.f32.mrb[15].mxu0 }
 0x1f0   : > { %v3493_v58 = vadd.f32 %v4480_v33, %v5762_v36  ;;  %v4482_v0 = vadd.f32 %v3366_v53, %v5757_v29 }
 0x1f1   : > { %v3527_v2 = vmax.f32 %v3495_v18, 0.0  ;;  %v3496_v8 = vadd.f32 %v4481_v15, %v5762_v36 }
 0x1f2   : > { %v4305_v19 = vpop.f32.mrb[16].mxu1  ;;  %v3525_v44 = vmax.f32 %v3493_v58, 0.0  ;;  %v3494_v39 = vadd.f32 %v4482_v0, %v5762_v36 }
 0x1f3   : > { %v1928_v1 = vpop.f32.mrb[17].mxu1  ;;  %3560 = vst.msk [vmem:[%s5769_s19 + $0x70] sm:$0xff] %vm3545_vm3, %v3527_v2  ;;  %v3528_v43 = vmax.f32 %v3496_v8, 0.0 }
 0x1f4   : > { %v4306_v11 = vpop.f32.mrb[18].mxu1  ;;  %3558 = vst.msk [vmem:[%s5769_s19 + $0x60] sm:$0xff] %vm3545_vm3, %v3525_v44  ;;  %v3526_v20 = vmax.f32 %v3494_v39, 0.0  ;;  %v4449_v30 = vpop.f32.mrb[16].mxu0 }
 0x1f5   : > { %v1931_v27 = vpop.f32.mrb[19].mxu1  ;;  %3561 = vst.msk [vmem:[%s5769_s19 + $0x78] sm:$0xff] %vm3545_vm3, %v3528_v43  ;;  %v4483_v29 = vadd.f32 %v4449_v30, %v4305_v19  ;;  %v3379_v23 = vpop.f32.mrb[17].mxu0 }
 0x1f6   : > { %3559 = vst.msk [vmem:[%s5769_s19 + $0x68] sm:$0xff] %vm3545_vm3, %v3526_v20  ;;  %v4484_v24 = vadd.f32 %v3379_v23, %v1928_v1  ;;  %v4450_v40 = vpop.f32.mrb[18].mxu0 }
 0x1f7   : > { %v3499_v13 = vadd.f32 %v4483_v29, %v5762_v36  ;;  %v4485_v56 = vadd.f32 %v4450_v40, %v4306_v11  ;;  %v3382_v61 = vpop.f32.mrb[19].mxu0 }
 0x1f8   : > { %v3497_v46 = vadd.f32 %v4484_v24, %v5762_v36  ;;  %v4486_v45 = vadd.f32 %v3382_v61, %v1931_v27 }
 0x1f9   : > { %v3531_v26 = vmax.f32 %v3499_v13, 0.0  ;;  %v3500_v6 = vadd.f32 %v4485_v56, %v5762_v36 }
 0x1fa   : > { %v4309_v3 = vpop.f32.mrb[20].mxu1  ;;  %v3529_v50 = vmax.f32 %v3497_v46, 0.0  ;;  %v3498_v17 = vadd.f32 %v4486_v45, %v5762_v36 }
 0x1fb   : > { %v1944_v31 = vpop.f32.mrb[21].mxu1  ;;  %3564 = vst.msk [vmem:[%s5769_s19 + $0x90] sm:$0xff] %vm3545_vm3, %v3531_v26  ;;  %v3532_v37 = vmax.f32 %v3500_v6, 0.0 }
 0x1fc   : > { %v4310_v47 = vpop.f32.mrb[22].mxu1  ;;  %3562 = vst.msk [vmem:[%s5769_s19 + $0x80] sm:$0xff] %vm3545_vm3, %v3529_v50  ;;  %v3530_v59 = vmax.f32 %v3498_v17, 0.0  ;;  %v4453_v14 = vpop.f32.mrb[20].mxu0 }
 0x1fd   : > { %v1947_v48 = vpop.f32.mrb[23].mxu1  ;;  %3565 = vst.msk [vmem:[%s5769_s19 + $0x98] sm:$0xff] %vm3545_vm3, %v3532_v37  ;;  %v4487_v4 = vadd.f32 %v4453_v14, %v4309_v3  ;;  %v3395_v57 = vpop.f32.mrb[21].mxu0 }
 0x1fe   : > { %3563 = vst.msk [vmem:[%s5769_s19 + $0x88] sm:$0xff] %vm3545_vm3, %v3530_v59  ;;  %v4488_v10 = vadd.f32 %v3395_v57, %v1944_v31  ;;  %v4454_v28 = vpop.f32.mrb[22].mxu0 }
 0x1ff   : > { %v3503_v41 = vadd.f32 %v4487_v4, %v5762_v36  ;;  %v4489_v21 = vadd.f32 %v4454_v28, %v4310_v47  ;;  %v3398_v38 = vpop.f32.mrb[23].mxu0 }
 0x200   : > { %v3501_v9 = vadd.f32 %v4488_v10, %v5762_v36  ;;  %v4490_v42 = vadd.f32 %v3398_v38, %v1947_v48 }
 0x201   : > { %v3535_v49 = vmax.f32 %v3503_v41, 0.0  ;;  %v3504_v25 = vadd.f32 %v4489_v21, %v5762_v36 }
 0x202   : > { %v4313_v54 = vpop.f32.mrb[24].mxu1  ;;  %v3533_v5 = vmax.f32 %v3501_v9, 0.0  ;;  %v3502_v7 = vadd.f32 %v4490_v42, %v5762_v36 }
 0x203   : > { %v1960_v16 = vpop.f32.mrb[25].mxu1  ;;  %3568 = vst.msk [vmem:[%s5769_s19 + $0xb0] sm:$0xff] %vm3545_vm3, %v3535_v49  ;;  %v3536_v60 = vmax.f32 %v3504_v25, 0.0 }
 0x204   : > { %v4314_v22 = vpop.f32.mrb[26].mxu1  ;;  %3566 = vst.msk [vmem:[%s5769_s19 + $0xa0] sm:$0xff] %vm3545_vm3, %v3533_v5  ;;  %v3534_v55 = vmax.f32 %v3502_v7, 0.0  ;;  %v4457_v34 = vpop.f32.mrb[24].mxu0 }
 0x205   : > { %v1963_v51 = vpop.f32.mrb[27].mxu1  ;;  %3569 = vst.msk [vmem:[%s5769_s19 + $0xb8] sm:$0xff] %vm3545_vm3, %v3536_v60  ;;  %v4491_v52 = vadd.f32 %v4457_v34, %v4313_v54  ;;  %v3411_v12 = vpop.f32.mrb[25].mxu0 }
 0x206   : > { %3567 = vst.msk [vmem:[%s5769_s19 + $0xa8] sm:$0xff] %vm3545_vm3, %v3534_v55  ;;  %v4492_v63 = vadd.f32 %v3411_v12, %v1960_v16  ;;  %v4458_v62 = vpop.f32.mrb[26].mxu0 }
 0x207   : > { %v3507_v32 = vadd.f32 %v4491_v52, %v5762_v36  ;;  %v4493_v33 = vadd.f32 %v4458_v62, %v4314_v22  ;;  %v3414_v35 = vpop.f32.mrb[27].mxu0 }
 0x208   : > { %v3505_v18 = vadd.f32 %v4492_v63, %v5762_v36  ;;  %v4494_v15 = vadd.f32 %v3414_v35, %v1963_v51 }
 0x209   : > { %v3539_v53 = vmax.f32 %v3507_v32, 0.0  ;;  %v3508_v58 = vadd.f32 %v4493_v33, %v5762_v36 }
 0x20a   : > { %v4317_v0 = vpop.f32.mrb[28].mxu1  ;;  %v3537_v2 = vmax.f32 %v3505_v18, 0.0  ;;  %v3506_v8 = vadd.f32 %v4494_v15, %v5762_v36 }
 0x20b   : > { %v1976_v19 = vpop.f32.mrb[29].mxu1  ;;  %3572 = vst.msk [vmem:[%s5769_s19 + $0xd0] sm:$0xff] %vm3545_vm3, %v3539_v53  ;;  %v3540_v44 = vmax.f32 %v3508_v58, 0.0 }
 0x20c   : > { %v4318_v39 = vpop.f32.mrb[30].mxu1  ;;  %3570 = vst.msk [vmem:[%s5769_s19 + $0xc0] sm:$0xff] %vm3545_vm3, %v3537_v2  ;;  %v3538_v1 = vmax.f32 %v3506_v8, 0.0  ;;  %v4461_v43 = vpop.f32.mrb[28].mxu0 }
 0x20d   : > { %v1979_v11 = vpop.f32.mrb[31].mxu1  ;;  %3573 = vst.msk [vmem:[%s5769_s19 + $0xd8] sm:$0xff] %vm3545_vm3, %v3540_v44  ;;  %v4495_v20 = vadd.f32 %v4461_v43, %v4317_v0  ;;  %v3427_v30 = vpop.f32.mrb[29].mxu0 }
 0x20e   : > { %3571 = vst.msk [vmem:[%s5769_s19 + $0xc8] sm:$0xff] %vm3545_vm3, %v3538_v1  ;;  %v4496_v27 = vadd.f32 %v3427_v30, %v1976_v19  ;;  %v4462_v29 = vpop.f32.mrb[30].mxu0 }
 0x20f   : > { %v3511_v23 = vadd.f32 %v4495_v20, %v5762_v36  ;;  %v4497_v24 = vadd.f32 %v4462_v29, %v4318_v39  ;;  %v3430_v40 = vpop.f32.mrb[31].mxu0 }
 0x210   : > { %v3509_v13 = vadd.f32 %v4496_v27, %v5762_v36  ;;  %v4498_v56 = vadd.f32 %v3430_v40, %v1979_v11 }
 0x211   : > { %v3543_v61 = vmax.f32 %v3511_v23, 0.0  ;;  %v3512_v46 = vadd.f32 %v4497_v24, %v5762_v36 }
 0x212   : > { %v3541_v45 = vmax.f32 %v3509_v13, 0.0  ;;  %v3510_v26 = vadd.f32 %v4498_v56, %v5762_v36 }
 0x213   : > { %3576 = vst.msk [vmem:[%s5769_s19 + $0xf0] sm:$0xff] %vm3545_vm3, %v3543_v61  ;;  %v3544_v6 = vmax.f32 %v3512_v46, 0.0 }
 0x214   : > { %3574 = vst.msk [vmem:[%s5769_s19 + $0xe0] sm:$0xff] %vm3545_vm3, %v3541_v45  ;;  %v3542_v3 = vmax.f32 %v3510_v26, 0.0 }
 0x215   : > { %3577 = vst.msk [vmem:[%s5769_s19 + $0xf8] sm:$0xff] %vm3545_vm3, %v3544_v6 }
 0x216   : > { %3575 = vst.msk [vmem:[%s5769_s19 + $0xe8] sm:$0xff] %vm3545_vm3, %v3542_v3 }
 0x217 PF: > { %s13_s14 = sadd.s32 1, %s4790_s14   ;;  %s5941_s12 = smov %s4786_s13 }
 0x218   : > { %p10_p5 = scmp.ge.s32.totalorder %s13_s14, 4   ;;  %s5942_s13 = smov %s5944_s15 }
 0x21a   :  { %12 = sbr.rel (!%p10_p5) target bundleno = 2 (0x2), region = 73 }

</bundles_post_ra>
